<compile_context>
chip_gen: v7x
topology: tpu7x:2x2x1
jax: 0.10.0
libtpu: 0.0.40
codegen_flags: <defaults>
</compile_context>

<pallas_src>
import functools

import jax
import jax.numpy as jnp
from jax.experimental import pallas as pl
from jax.experimental.pallas import tpu as pltpu

MERSENNE_PRIME = 2**31 - 1


def poly_hash(x, coeff_a, coeff_b, output_range):
    """PolyHash: ((x * a + b) mod P) mod range, one output per hash coefficient."""
    xu = x.astype(jnp.uint32)[:, None]                               # (batch, 1)
    h = (xu * coeff_a[None, :] + coeff_b[None, :]) % jnp.uint32(MERSENNE_PRIME)
    return (h % jnp.uint32(output_range)).astype(jnp.int32)          # (batch, n_hashes)


def hash_emb_kernel(idx0_ref, idx1_ref, table_ref, weights_ref, out_ref,
                    *, n_hash, dim):
    """One grid step = one batch tile of tb rows.

    idx0_ref:    VMEM (tb, n_hash) int32   -- hash0(x)
    idx1_ref:    VMEM (tb, 1)      int32   -- hash1(x)
    table_ref:   VMEM (B, dim - n_hash) f32 (full table, grid-invariant)
    weights_ref: VMEM (K, n_hash)       f32 (full table, grid-invariant)
    out_ref:     VMEM (tb, dim)         f32
    """
    d_vec = dim - n_hash
    tb = out_ref.shape[0]
    num_b = table_ref.shape[0]
    num_k = weights_ref.shape[0]

    idx0 = idx0_ref[...]                                  # (tb, n_hash)
    idx1 = idx1_ref[...]                                  # (tb, 1)

    # --- w = weights[hash1(x)] via a single one-hot matmul on the MXU -------
    k_iota = jax.lax.broadcasted_iota(jnp.int32, (tb, num_k), 1)
    onehot1 = (k_iota == idx1).astype(jnp.float32)        # (tb, K)
    w = jnp.dot(onehot1, weights_ref[...],
                preferred_element_type=jnp.float32)       # (tb, n_hash)

    # --- left = sum_h w[:,h] * table[idx0[:,h]] via one scatter-matmul ------
    # S[b, idx0[b, h]] += w[b, h]  (duplicate hash indices MUST accumulate)
    b_iota = jax.lax.broadcasted_iota(jnp.int32, (tb, num_b), 1)
    s = jnp.zeros((tb, num_b), jnp.float32)
    for h in range(n_hash):                               # static, n_hash is tiny
        s = s + (b_iota == idx0[:, h:h + 1]).astype(jnp.float32) * w[:, h:h + 1]
    left = jnp.dot(s, table_ref[...],
                   preferred_element_type=jnp.float32)    # (tb, d_vec)

    right = w * (dim ** -0.5)                             # (tb, n_hash)

    # Single whole-tile store (one tile-wide lane concat, no per-row stores).
    out_ref[...] = jnp.concatenate([left, right], axis=1).astype(out_ref.dtype)


def hash_embedding2_forward(x, table, weights, h0_a, h0_b, h1_a, h1_b,
                            *, dim, n_hash, tile_b=256):
    batch = x.shape[0]
    b_tab, d_vec = table.shape
    k_tab = weights.shape[0]
    assert d_vec == dim - n_hash

    # Pad batch up to a multiple of the tile (padded rows sliced off at the end).
    padded = pl.cdiv(batch, tile_b) * tile_b
    if padded != batch:
        x = jnp.pad(x, (0, padded - batch))

    # Hash computation (integer glue, plain JAX).
    idx0 = poly_hash(x, h0_a, h0_b, b_tab)                # (padded, n_hash)
    idx1 = poly_hash(x, h1_a, h1_b, k_tab)                # (padded, 1)

    kernel = functools.partial(hash_emb_kernel, n_hash=n_hash, dim=dim)

    out = pl.pallas_call(
        kernel,
        out_shape=jax.ShapeDtypeStruct((padded, dim), jnp.float32),
        grid_spec=pltpu.PrefetchScalarGridSpec(
            num_scalar_prefetch=0,
            grid=(padded // tile_b,),
            in_specs=[
                pl.BlockSpec((tile_b, n_hash), lambda i: (i, 0)),   # idx0 tile
                pl.BlockSpec((tile_b, 1), lambda i: (i, 0)),        # idx1 tile
                pl.BlockSpec((b_tab, d_vec), lambda i: (0, 0)),     # full table
                pl.BlockSpec((k_tab, n_hash), lambda i: (0, 0)),    # full weights
            ],
            out_specs=pl.BlockSpec((tile_b, dim), lambda i: (i, 0)),
        ),
        compiler_params=pltpu.CompilerParams(
            dimension_semantics=("parallel",),
            vmem_limit_bytes=32 * 1024 * 1024,
        ),
    )(idx0, idx1, table, weights)

    return out[:batch]


def reference_forward(x, table, weights, h0_a, h0_b, h1_a, h1_b, *, dim, n_hash):
    """Pure-JAX mirror of the PyTorch forward."""
    idx0 = poly_hash(x, h0_a, h0_b, table.shape[0])       # (batch, n_hash)
    idx1 = poly_hash(x, h1_a, h1_b, weights.shape[0])     # (batch, 1)
    vecs = table[idx0]                                    # (batch, n_hash, dim - n_hash)
    w = weights[idx1]                                     # (batch, 1, n_hash)
    left = jnp.einsum("bon,bnd->bod", w, vecs)            # (batch, 1, dim - n_hash)
    res = jnp.concatenate([left, w * (1.0 / (dim ** 0.5))], axis=2)
    return res.squeeze(1)                                 # (batch, dim)


if __name__ == "__main__":
    # Module config (small, consistent with __init__):
    num_params, dim, n_hash = 4096, 32, 4
    batch = 512                                           # 2 grid steps at tile_b=256

    d_vec = dim - n_hash
    B = max(num_params // (2 * d_vec), 1)                 # 73
    K = max(num_params // (2 * n_hash), 1)                # 512
    assert B * d_vec + K * n_hash <= num_params

    key = jax.random.PRNGKey(0)
    k_tab, k_w, k_h0, k_h1, k_x = jax.random.split(key, 5)

    # reset_parameters():
    table = jax.random.uniform(k_tab, (B, d_vec), jnp.float32,
                               -dim ** (-0.5), dim ** (-0.5))
    weights = jax.random.uniform(k_w, (K, n_hash), jnp.float32, -1.0, 1.0)

    # PolyHash coefficients (deterministic, synthetic).
    h0_c = jax.random.randint(k_h0, (2, n_hash), 1, MERSENNE_PRIME,
                              dtype=jnp.int32).astype(jnp.uint32)
    h1_c = jax.random.randint(k_h1, (2, 1), 1, MERSENNE_PRIME,
                              dtype=jnp.int32).astype(jnp.uint32)

    # Input ids.
    x = jax.random.randint(k_x, (batch,), 0, 1_000_000, dtype=jnp.int32)

    out = hash_embedding2_forward(x, table, weights,
                                  h0_c[0], h0_c[1], h1_c[0], h1_c[1],
                                  dim=dim, n_hash=n_hash)
    out = jax.block_until_ready(out)

    ref = reference_forward(x, table, weights,
                            h0_c[0], h0_c[1], h1_c[0], h1_c[1],
                            dim=dim, n_hash=n_hash)

    assert out.shape == (batch, dim), out.shape
    max_err = float(jnp.max(jnp.abs(out - ref)))
    assert max_err < 1e-4, f"mismatch vs reference: {max_err}"
    print("KERNEL_OK")
</pallas_src>

<mosaic_0001>
module attributes {stable_mosaic.version = 11 : i64} {
  func.func @hash_emb_kernel(%arg0: i32, %arg1: memref<256x4xi32, #tpu.memory_space<vmem>>, %arg2: memref<256x1xi32, #tpu.memory_space<vmem>>, %arg3: memref<73x28xf32, #tpu.memory_space<vmem>>, %arg4: memref<512x4xf32, #tpu.memory_space<vmem>>, %arg5: memref<256x32xf32, #tpu.memory_space<vmem>>) attributes {dimension_semantics = [#tpu.dimension_semantics<parallel>], iteration_bounds = array<i64: 2>, scalar_prefetch = 0 : i64, scratch_operands = 0 : i64, tpu.core_type = #tpu.core_type<tc>, window_params = [{transform_indices = @transform_0, window_bounds = array<i64: 256, 4>}, {transform_indices = @transform_1, window_bounds = array<i64: 256, 1>}, {pipeline_mode = #tpu.pipeline_mode<synchronous>, transform_indices = @transform_2, window_bounds = array<i64: 73, 28>}, {pipeline_mode = #tpu.pipeline_mode<synchronous>, transform_indices = @transform_3, window_bounds = array<i64: 512, 4>}, {transform_indices = @transform_4, window_bounds = array<i64: 256, 32>}]} {
    %c0 = arith.constant 0 : index
    %c0_0 = arith.constant 0 : index
    %0 = vector.load %arg1[%c0, %c0_0] : memref<256x4xi32, #tpu.memory_space<vmem>>, vector<256x4xi32>
    %c0_1 = arith.constant 0 : index
    %c0_2 = arith.constant 0 : index
    %1 = vector.load %arg2[%c0_1, %c0_2] : memref<256x1xi32, #tpu.memory_space<vmem>>, vector<256x1xi32>
    %2 = tpu.iota {dimensions = array<i32: 1>} : vector<256x512xi32>
    %3 = vector.broadcast %1 : vector<256x1xi32> to vector<256x512xi32>
    %4 = arith.cmpi eq, %2, %3 : vector<256x512xi32>
    %5 = arith.extui %4 : vector<256x512xi1> to vector<256x512xi32>
    %6 = arith.sitofp %5 : vector<256x512xi32> to vector<256x512xf32>
    %c0_3 = arith.constant 0 : index
    %c0_4 = arith.constant 0 : index
    %7 = vector.load %arg4[%c0_3, %c0_4] : memref<512x4xf32, #tpu.memory_space<vmem>>, vector<512x4xf32>
    %cst = arith.constant dense<0.000000e+00> : vector<256x4xf32>
    %8 = tpu.matmul %6, %7, %cst {dimension_numbers = #tpu.dot_dimension_numbers<[1], [0], [0], [1], [0, 0, 1, 1], [], []>} : vector<256x512xf32>, vector<512x4xf32>, vector<256x4xf32> -> vector<256x4xf32>
    %9 = tpu.iota {dimensions = array<i32: 1>} : vector<256x73xi32>
    %cst_5 = arith.constant 0.000000e+00 : f32
    %10 = vector.broadcast %cst_5 : f32 to vector<256x73xf32>
    %11 = vector.extract_strided_slice %0 {offsets = [0, 0], sizes = [256, 1], strides = [1, 1]} : vector<256x4xi32> to vector<256x1xi32>
    %12 = vector.broadcast %11 : vector<256x1xi32> to vector<256x73xi32>
    %13 = arith.cmpi eq, %9, %12 : vector<256x73xi32>
    %14 = arith.extui %13 : vector<256x73xi1> to vector<256x73xi32>
    %15 = arith.sitofp %14 : vector<256x73xi32> to vector<256x73xf32>
    %16 = vector.extract_strided_slice %8 {offsets = [0, 0], sizes = [256, 1], strides = [1, 1]} : vector<256x4xf32> to vector<256x1xf32>
    %17 = vector.broadcast %16 : vector<256x1xf32> to vector<256x73xf32>
    %18 = arith.mulf %15, %17 : vector<256x73xf32>
    %19 = arith.addf %10, %18 : vector<256x73xf32>
    %20 = vector.extract_strided_slice %0 {offsets = [0, 1], sizes = [256, 1], strides = [1, 1]} : vector<256x4xi32> to vector<256x1xi32>
    %21 = vector.broadcast %20 : vector<256x1xi32> to vector<256x73xi32>
    %22 = arith.cmpi eq, %9, %21 : vector<256x73xi32>
    %23 = arith.extui %22 : vector<256x73xi1> to vector<256x73xi32>
    %24 = arith.sitofp %23 : vector<256x73xi32> to vector<256x73xf32>
    %25 = vector.extract_strided_slice %8 {offsets = [0, 1], sizes = [256, 1], strides = [1, 1]} : vector<256x4xf32> to vector<256x1xf32>
    %26 = vector.broadcast %25 : vector<256x1xf32> to vector<256x73xf32>
    %27 = arith.mulf %24, %26 : vector<256x73xf32>
    %28 = arith.addf %19, %27 : vector<256x73xf32>
    %29 = vector.extract_strided_slice %0 {offsets = [0, 2], sizes = [256, 1], strides = [1, 1]} : vector<256x4xi32> to vector<256x1xi32>
    %30 = vector.broadcast %29 : vector<256x1xi32> to vector<256x73xi32>
    %31 = arith.cmpi eq, %9, %30 : vector<256x73xi32>
    %32 = arith.extui %31 : vector<256x73xi1> to vector<256x73xi32>
    %33 = arith.sitofp %32 : vector<256x73xi32> to vector<256x73xf32>
    %34 = vector.extract_strided_slice %8 {offsets = [0, 2], sizes = [256, 1], strides = [1, 1]} : vector<256x4xf32> to vector<256x1xf32>
    %35 = vector.broadcast %34 : vector<256x1xf32> to vector<256x73xf32>
    %36 = arith.mulf %33, %35 : vector<256x73xf32>
    %37 = arith.addf %28, %36 : vector<256x73xf32>
    %38 = vector.extract_strided_slice %0 {offsets = [0, 3], sizes = [256, 1], strides = [1, 1]} : vector<256x4xi32> to vector<256x1xi32>
    %39 = vector.broadcast %38 : vector<256x1xi32> to vector<256x73xi32>
    %40 = arith.cmpi eq, %9, %39 : vector<256x73xi32>
    %41 = arith.extui %40 : vector<256x73xi1> to vector<256x73xi32>
    %42 = arith.sitofp %41 : vector<256x73xi32> to vector<256x73xf32>
    %43 = vector.extract_strided_slice %8 {offsets = [0, 3], sizes = [256, 1], strides = [1, 1]} : vector<256x4xf32> to vector<256x1xf32>
    %44 = vector.broadcast %43 : vector<256x1xf32> to vector<256x73xf32>
    %45 = arith.mulf %42, %44 : vector<256x73xf32>
    %46 = arith.addf %37, %45 : vector<256x73xf32>
    %c0_6 = arith.constant 0 : index
    %c0_7 = arith.constant 0 : index
    %47 = vector.load %arg3[%c0_6, %c0_7] : memref<73x28xf32, #tpu.memory_space<vmem>>, vector<73x28xf32>
    %cst_8 = arith.constant dense<0.000000e+00> : vector<256x28xf32>
    %48 = tpu.matmul %46, %47, %cst_8 {dimension_numbers = #tpu.dot_dimension_numbers<[1], [0], [0], [1], [0, 0, 1, 1], [], []>} : vector<256x73xf32>, vector<73x28xf32>, vector<256x28xf32> -> vector<256x28xf32>
    %cst_9 = arith.constant 0.176776692 : f32
    %49 = vector.broadcast %cst_9 : f32 to vector<256x4xf32>
    %50 = arith.mulf %8, %49 : vector<256x4xf32>
    %51 = tpu.concatenate %48, %50 in 1 : vector<256x28xf32>, vector<256x4xf32> -> vector<256x32xf32>
    %c0_10 = arith.constant 0 : index
    %c0_11 = arith.constant 0 : index
    %52 = vector.load %arg5[%c0_10, %c0_11] : memref<256x32xf32, #tpu.memory_space<vmem>>, vector<256x32xf32>
    tpu.vector_store %arg5[%c0_10, %c0_11], %51 {strides = array<i32>} : memref<256x32xf32, #tpu.memory_space<vmem>>, vector<256x32xf32>,
    return
  }
  func.func @transform_0(%arg0: i32) -> (i32, i32) {
    %c0_i32 = arith.constant 0 : i32
    %c0_i32_0 = arith.constant 0 : i32
    return %arg0, %c0_i32 : i32, i32
  }
  func.func @transform_1(%arg0: i32) -> (i32, i32) {
    %c0_i32 = arith.constant 0 : i32
    %c0_i32_0 = arith.constant 0 : i32
    return %arg0, %c0_i32 : i32, i32
  }
  func.func @transform_2(%arg0: i32) -> (i32, i32) {
    %c0_i32 = arith.constant 0 : i32
    %c0_i32_0 = arith.constant 0 : i32
    %c0_i32_1 = arith.constant 0 : i32
    return %c0_i32, %c0_i32_0 : i32, i32
  }
  func.func @transform_3(%arg0: i32) -> (i32, i32) {
    %c0_i32 = arith.constant 0 : i32
    %c0_i32_0 = arith.constant 0 : i32
    %c0_i32_1 = arith.constant 0 : i32
    return %c0_i32, %c0_i32_0 : i32, i32
  }
  func.func @transform_4(%arg0: i32) -> (i32, i32) {
    %c0_i32 = arith.constant 0 : i32
    %c0_i32_0 = arith.constant 0 : i32
    return %arg0, %c0_i32 : i32, i32
  }
}

</mosaic_0001>

<bundles_post_ra>
// kernel: tpu_custom_call.1
= control target key start
LH: loop header
LB: loop body
LE: loop exit
PB: predicated region body
PF: predicated region fallthrough
CT: control target
= control target key end

     0   :  { %s4408_s15 = smov 0   ;;  %s7176_s0 = inlined_call_operand.vmem [shape: s32[512,4], index: 0, kind: input, shape index: {}]   ;;  %s7177_s1 = inlined_call_operand.vmem [shape: s32[512,1], index: 1, kind: input, shape index: {}]   ;;  %s7178_s2 = inlined_call_operand.vmem [shape: f32[73,28], index: 2, kind: input, shape index: {}]   ;;  %s7179_s3 = inlined_call_operand.vmem [shape: f32[512,4], index: 3, kind: input, shape index: {}]   ;;  %s7180_s4 = inlined_call_operand.vmem [shape: f32[512,32], index: 4, kind: output, shape index: {}]  }
   0x1 LB: > { %s3484_s16 = sadd.s32 4294967295, %s4372_s15   ;;  %p3488_p0 = scmp.ge.s32.totalorder %s4372_s15, 1  ;;  %s4372_s15 = sphi %s4408_s15, %s14_s15  }
   0x2   : > { %p174_p1 = scmp.lt.s32.totalorder %s4372_s15, 3 }
   0x4   : > { %p175_p2 = pnand %p3488_p0, %p174_p1 }
   0x6   : > { %178 = sbr.rel (%p175_p2) target bundleno = 1242 (0x4da), region = 36 }
   0xd   : > { %s3489_s17 = sshll.u32 %s3484_s16, 5  ;;  %v7181_v0 = vmov 1   ;;  %v7183_v1 = vmov 0   ;;  %v7187_v35 = vmov 2   ;;  %v772_v44 = vld [vmem:[%s7179_s3] sm:$0xff]  ;;  %v773_v45 = vld [vmem:[%s7179_s3 + $0x8] sm:$0xff] }
   0xe   : > { %4232 = vset.pattern.permute.xlu0 %v7181_v0  ;;  %p206_p3 = scmp.lt.s32.totalorder %s3489_s17, 63  ;;  %4231 = vset.pattern.permute.xlu1 %v7183_v1  ;;  %v4025_v46 = vpack.c.bf16 %v773_v45, %v772_v44  ;;  %v7191_v47 = vmov 0.0|0.0   ;;  %v774_v49 = vld [vmem:[%s7179_s3 + $0x10] sm:$0xff]  ;;  %v775_v50 = vld [vmem:[%s7179_s3 + $0x18] sm:$0xff]  ;;  %v776_v53 = vld [vmem:[%s7179_s3 + $0x20] sm:$0xff] }
   0xf   : > { %4024 = vmatprep.subr.bf16.mxu0 %v7191_v47  ;;  %4142 = vmatprep.subr.bf16.mxu1 %v7191_v47  ;;  %v4028_v51 = vpack.c.bf16 %v775_v50, %v774_v49  ;;  %v777_v54 = vld [vmem:[%s7179_s3 + $0x28] sm:$0xff]  ;;  %v778_v57 = vld [vmem:[%s7179_s3 + $0x30] sm:$0xff]  ;;  %v779_v58 = vld [vmem:[%s7179_s3 + $0x38] sm:$0xff] }
  0x10   : > { %s7659_s17 = smov (!%p206_p3, %s3489_s17), 63  ;;  %4026 = vmatpush1.bf16.msra.mxu0 %v4025_v46  ;;  %v4031_v55 = vpack.c.bf16 %v777_v54, %v776_v53  ;;  %v4034_v59 = vpack.c.bf16 %v779_v58, %v778_v57  ;;  %v780_v61 = vld [vmem:[%s7179_s3 + $0x40] sm:$0xff]  ;;  %v781_v62 = vld [vmem:[%s7179_s3 + $0x48] sm:$0xff]  ;;  %v786_v45 = vld [vmem:[%s7179_s3 + $0x70] sm:$0xff]  ;;  %v7185_v53 = vmov 3  }
  0x11   : > { %s4418_s18 = sshll.u32 %s7659_s17, 3  ;;  %4027 = vmatprep.subr.bf16.mxu0 %v7191_v47  ;;  %v804_v63 = vld [vmem:[%s7179_s3 + $0x100] sm:$0xff]  ;;  %v787_v46 = vld [vmem:[%s7179_s3 + $0x78] sm:$0xff]  ;;  %v810_v49 = vld [vmem:[%s7179_s3 + $0x130] sm:$0xff] }
  0x12   : > { %s4424_s21 = scalar_lea.vmem %s7176_s0, %s4418_s18  ;;  %s4433_s24 = scalar_lea.vmem %s7177_s1, %s4418_s18  ;;  %v4046_v50 = vpack.c.bf16 %v787_v46, %v786_v45  ;;  %v788_v57 = vld [vmem:[%s7179_s3 + $0x80] sm:$0xff]  ;;  %v789_v58 = vld [vmem:[%s7179_s3 + $0x88] sm:$0xff] }
  0x13   : > { %v4427_v2 = vld [vmem:[%s4424_s21] sm:$0xff]  ;;  %v4437_v3 = vld [vmem:[%s4424_s21 + $0x18] sm:$0xff]  ;;  %v257_v4 = vld [vmem:[%s4433_s24 + $0x10] sm:$0xff]  ;;  %s7075_s17 = scalar_lea.vmem %s7180_s4, %s4418_s18 }
  0x14   : > { %1703 = vperm.xlu0 %4232, %v4427_v2   ;;  %299 = vperm.xlu1 %4231, %v257_v4   ;;  %v258_v5 = vld [vmem:[%s4433_s24 + $0x18] sm:$0xff]  ;;  %v4443_v6 = vld [vmem:[%s4424_s21 + $0x28] sm:$0xff]  ;;  %v4518_v36 = vld [vmem:[%s4424_s21 + $0x20] sm:$0xff]  ;;  %v4037_v4 = vpack.c.bf16 %v781_v62, %v780_v61  ;;  %v4049_v61 = vpack.c.bf16 %v789_v58, %v788_v57 }
  0x15   : > { %v260_v7 = vld [vmem:[%s4433_s24 + $0x28] sm:$0xff]  ;;  %v4448_v8 = vld [vmem:[%s4424_s21 + $0x38] sm:$0xff]  ;;  %v4523_v37 = vld [vmem:[%s4424_s21 + $0x30] sm:$0xff]  ;;  %4029 = vmatpush1.bf16.msra.mxu0 %v4028_v51 }
  0x16   : > { %v262_v9 = vld [vmem:[%s4433_s24 + $0x38] sm:$0xff]  ;;  %v4453_v10 = vld [vmem:[%s4424_s21 + $0x48] sm:$0xff]  ;;  %v4528_v38 = vld [vmem:[%s4424_s21 + $0x40] sm:$0xff]  ;;  %4030 = vmatprep.subr.bf16.mxu0 %v7191_v47 }
  0x17   : > { %v264_v11 = vld [vmem:[%s4433_s24 + $0x48] sm:$0xff]  ;;  %v4458_v12 = vld [vmem:[%s4424_s21 + $0x58] sm:$0xff]  ;;  %v4533_v39 = vld [vmem:[%s4424_s21 + $0x50] sm:$0xff] }
  0x18   : > { %1712 = vperm.xlu0 %4232, %v4437_v3   ;;  %302 = vperm.xlu1 %4231, %v258_v5   ;;  %v266_v13 = vld [vmem:[%s4433_s24 + $0x58] sm:$0xff]  ;;  %v4463_v14 = vld [vmem:[%s4424_s21 + $0x68] sm:$0xff]  ;;  %v4538_v40 = vld [vmem:[%s4424_s21 + $0x60] sm:$0xff] }
  0x19   : > { %v268_v15 = vld [vmem:[%s4433_s24 + $0x68] sm:$0xff]  ;;  %v4468_v16 = vld [vmem:[%s4424_s21 + $0x78] sm:$0xff]  ;;  %v4543_v41 = vld [vmem:[%s4424_s21 + $0x70] sm:$0xff]  ;;  %4032 = vmatpush1.bf16.msra.mxu0 %v4031_v55 }
  0x1a   : > { %v270_v17 = vld [vmem:[%s4433_s24 + $0x78] sm:$0xff]  ;;  %v4473_v18 = vld [vmem:[%s4424_s21 + $0x88] sm:$0xff]  ;;  %v4548_v42 = vld [vmem:[%s4424_s21 + $0x80] sm:$0xff]  ;;  %4033 = vmatprep.subr.bf16.mxu0 %v7191_v47 }
  0x1b   : > { %v272_v19 = vld [vmem:[%s4433_s24 + $0x88] sm:$0xff]  ;;  %v4478_v20 = vld [vmem:[%s4424_s21 + $0x98] sm:$0xff]  ;;  %v4553_v43 = vld [vmem:[%s4424_s21 + $0x90] sm:$0xff] }
  0x1c   : > { %1718 = vperm.xlu0 %4232, %v4443_v6   ;;  %308 = vperm.xlu1 %4231, %v260_v7   ;;  %v274_v21 = vld [vmem:[%s4433_s24 + $0x98] sm:$0xff]  ;;  %v4483_v22 = vld [vmem:[%s4424_s21 + $0xa8] sm:$0xff]  ;;  %v4565_v48 = vld [vmem:[%s4424_s21 + $0xa0] sm:$0xff] }
  0x1d   : > { %v276_v23 = vld [vmem:[%s4433_s24 + $0xa8] sm:$0xff]  ;;  %v4488_v24 = vld [vmem:[%s4424_s21 + $0xb8] sm:$0xff]  ;;  %v4578_v52 = vld [vmem:[%s4424_s21 + $0xb0] sm:$0xff]  ;;  %4035 = vmatpush1.bf16.msra.mxu0 %v4034_v59 }
  0x1e   : > { %v278_v25 = vld [vmem:[%s4433_s24 + $0xb8] sm:$0xff]  ;;  %v4493_v26 = vld [vmem:[%s4424_s21 + $0xc8] sm:$0xff]  ;;  %v4590_v56 = vld [vmem:[%s4424_s21 + $0xc0] sm:$0xff]  ;;  %4036 = vmatprep.subr.bf16.mxu0 %v7191_v47 }
  0x1f   : > { %v280_v27 = vld [vmem:[%s4433_s24 + $0xc8] sm:$0xff]  ;;  %v4498_v28 = vld [vmem:[%s4424_s21 + $0xd8] sm:$0xff]  ;;  %v4602_v60 = vld [vmem:[%s4424_s21 + $0xd0] sm:$0xff] }
  0x20   : > { %1724 = vperm.xlu0 %4232, %v4448_v8   ;;  %314 = vperm.xlu1 %4231, %v262_v9   ;;  %v282_v29 = vld [vmem:[%s4433_s24 + $0xd8] sm:$0xff]  ;;  %v4503_v30 = vld [vmem:[%s4424_s21 + $0xe8] sm:$0xff]  ;;  %v4622_v9 = vld [vmem:[%s4424_s21 + $0xe0] sm:$0xff] }
  0x21   : > { %v284_v31 = vld [vmem:[%s4433_s24 + $0xe8] sm:$0xff]  ;;  %v4508_v32 = vld [vmem:[%s4424_s21 + $0xf8] sm:$0xff]  ;;  %4038 = vmatpush1.bf16.msra.mxu0 %v4037_v4  ;;  %v812_v59 = vld [vmem:[%s7179_s3 + $0x140] sm:$0xff] }
  0x22   : > { %v286_v33 = vld [vmem:[%s4433_s24 + $0xf8] sm:$0xff]  ;;  %v4513_v34 = vld [vmem:[%s4424_s21 + $0x8] sm:$0xff]  ;;  %4039 = vmatprep.subr.bf16.mxu0 %v7191_v47  ;;  %v818_v58 = vld [vmem:[%s7179_s3 + $0x170] sm:$0xff] }
  0x23   : > { %v805_v5 = vld [vmem:[%s7179_s3 + $0x108] sm:$0xff]  ;;  %v811_v51 = vld [vmem:[%s7179_s3 + $0x138] sm:$0xff] }
  0x24   : > { %1730 = vperm.xlu0 %4232, %v4453_v10   ;;  %320 = vperm.xlu1 %4231, %v264_v11   ;;  %v4619_v7 = vpack.c.bf16 %v805_v5, %v804_v63  ;;  %v782_v11 = vld [vmem:[%s7179_s3 + $0x50] sm:$0xff]  ;;  %v4682_v54 = vpack.c.bf16 %v811_v51, %v810_v49  ;;  %v813_v62 = vld [vmem:[%s7179_s3 + $0x148] sm:$0xff]  ;;  %v795_v57 = vld [vmem:[%s7179_s3 + $0xb8] sm:$0xff] }
  0x25   : > { %v4703_v63 = vpack.c.bf16 %v813_v62, %v812_v59  ;;  %v790_v5 = vld [vmem:[%s7179_s3 + $0x90] sm:$0xff]  ;;  %v817_v46 = vld [vmem:[%s7179_s3 + $0x168] sm:$0xff] }
  0x26   : > { %4158 = vmatpush1.bf16.msra.mxu1 %v4619_v7  ;;  %v794_v51 = vld [vmem:[%s7179_s3 + $0xb0] sm:$0xff] }
  0x27   : > { %4143 = vmatprep.subr.bf16.mxu1 %v7191_v47  ;;  %v4058_v59 = vpack.c.bf16 %v795_v57, %v794_v51  ;;  %v822_v51 = vld [vmem:[%s7179_s3 + $0x190] sm:$0xff] }
  0x28   : > { %1736 = vperm.xlu0 %4232, %v4458_v12   ;;  %326 = vperm.xlu1 %4231, %v266_v13   ;;  %v783_v13 = vld [vmem:[%s7179_s3 + $0x58] sm:$0xff] }
  0x2c   : > { %1742 = vperm.xlu0 %4232, %v4463_v14   ;;  %332 = vperm.xlu1 %4231, %v268_v15   ;;  %v806_v15 = vld [vmem:[%s7179_s3 + $0x110] sm:$0xff] }
  0x30   : > { %1748 = vperm.xlu0 %4232, %v4468_v16   ;;  %338 = vperm.xlu1 %4231, %v270_v17   ;;  %v4040_v17 = vpack.c.bf16 %v783_v13, %v782_v11  ;;  %v791_v11 = vld [vmem:[%s7179_s3 + $0x98] sm:$0xff]  ;;  %v814_v13 = vld [vmem:[%s7179_s3 + $0x150] sm:$0xff] }
  0x32   : > { %4041 = vmatpush1.bf16.msra.mxu0 %v4040_v17  ;;  %v815_v17 = vld [vmem:[%s7179_s3 + $0x158] sm:$0xff] }
  0x33   : > { %4042 = vmatprep.subr.bf16.mxu0 %v7191_v47 }
  0x34   : > { %1754 = vperm.xlu0 %4232, %v4473_v18   ;;  %344 = vperm.xlu1 %4231, %v272_v19   ;;  %v807_v19 = vld [vmem:[%s7179_s3 + $0x118] sm:$0xff] }
  0x38   : > { %1760 = vperm.xlu0 %4232, %v4478_v20   ;;  %350 = vperm.xlu1 %4231, %v274_v21   ;;  %v4641_v21 = vpack.c.bf16 %v807_v19, %v806_v15  ;;  %v4052_v15 = vpack.c.bf16 %v791_v11, %v790_v5  ;;  %v4724_v19 = vpack.c.bf16 %v815_v17, %v814_v13  ;;  %v796_v11 = vld [vmem:[%s7179_s3 + $0xc0] sm:$0xff]  ;;  %v797_v13 = vld [vmem:[%s7179_s3 + $0xc8] sm:$0xff] }
  0x39   : > { %v4061_v17 = vpack.c.bf16 %v797_v13, %v796_v11  ;;  %v800_v11 = vld [vmem:[%s7179_s3 + $0xe0] sm:$0xff]  ;;  %v801_v13 = vld [vmem:[%s7179_s3 + $0xe8] sm:$0xff] }
  0x3a   : > { %4159 = vmatpush1.bf16.msra.mxu1 %v4641_v21 }
  0x3b   : > { %4144 = vmatprep.subr.bf16.mxu1 %v7191_v47 }
  0x3c   : > { %1766 = vperm.xlu0 %4232, %v4483_v22   ;;  %356 = vperm.xlu1 %4231, %v276_v23   ;;  %v4644_v23 = vld [vmem:[%s4424_s21 + $0xf0] sm:$0xff] }
  0x40   : > { %1772 = vperm.xlu0 %4232, %v4488_v24   ;;  %362 = vperm.xlu1 %4231, %v278_v25   ;;  %v784_v25 = vld [vmem:[%s7179_s3 + $0x60] sm:$0xff] }
  0x44   : > { %1778 = vperm.xlu0 %4232, %v4493_v26   ;;  %368 = vperm.xlu1 %4231, %v280_v27   ;;  %v785_v27 = vld [vmem:[%s7179_s3 + $0x68] sm:$0xff] }
  0x48   : > { %1784 = vperm.xlu0 %4232, %v4498_v28   ;;  %374 = vperm.xlu1 %4231, %v282_v29   ;;  %v808_v29 = vld [vmem:[%s7179_s3 + $0x120] sm:$0xff] }
  0x4c   : > { %1790 = vperm.xlu0 %4232, %v4503_v30   ;;  %380 = vperm.xlu1 %4231, %v284_v31   ;;  %v4043_v31 = vpack.c.bf16 %v785_v27, %v784_v25  ;;  %v792_v27 = vld [vmem:[%s7179_s3 + $0xa0] sm:$0xff] }
  0x4e   : > { %4044 = vmatpush1.bf16.msra.mxu0 %v4043_v31  ;;  %v816_v31 = vld [vmem:[%s7179_s3 + $0x160] sm:$0xff] }
  0x4f   : > { %4045 = vmatprep.subr.bf16.mxu0 %v7191_v47  ;;  %v4748_v49 = vpack.c.bf16 %v817_v46, %v816_v31  ;;  %v799_v46 = vld [vmem:[%s7179_s3 + $0xd8] sm:$0xff] }
  0x50   : > { %1796 = vperm.xlu0 %4232, %v4508_v32   ;;  %386 = vperm.xlu1 %4231, %v286_v33   ;;  %v809_v33 = vld [vmem:[%s7179_s3 + $0x128] sm:$0xff] }
  0x51   : > { %v4663_v44 = vpack.c.bf16 %v809_v33, %v808_v29  ;;  %v793_v29 = vld [vmem:[%s7179_s3 + $0xa8] sm:$0xff]  ;;  %v4742_v33 = vld [vmem:[%s4424_s21 + $0x10] sm:$0xff] }
  0x52   : > { %4047 = vmatpush1.bf16.msra.mxu0 %v4046_v50  ;;  %v4055_v45 = vpack.c.bf16 %v793_v29, %v792_v27  ;;  %v821_v27 = vld [vmem:[%s7179_s3 + $0x188] sm:$0xff] }
  0x53   : > { %4160 = vmatpush1.bf16.msra.mxu1 %v4663_v44  ;;  %4048 = vmatprep.subr.bf16.mxu0 %v7191_v47 }
  0x54   : > { %4235 = vset.pattern.permute.xlu0 %v7187_v35  ;;  %1290 = vperm.xlu1 %4231, %v4513_v34   ;;  %v832_v35 = vld [vmem:[%s7179_s3 + $0x1e0] sm:$0xff] }
  0x55   : > { %2090 = vperm.xlu0 %4235, %v4513_v34   ;;  %4145 = vmatprep.subr.bf16.mxu1 %v7191_v47 }
  0x56   : > { %4050 = vmatpush1.bf16.msra.mxu0 %v4049_v61  ;;  %v819_v61 = vld [vmem:[%s7179_s3 + $0x178] sm:$0xff] }
  0x57   : > { %4161 = vmatpush1.bf16.msra.mxu1 %v4682_v54  ;;  %4051 = vmatprep.subr.bf16.mxu0 %v7191_v47  ;;  %v4769_v62 = vpack.c.bf16 %v819_v61, %v818_v58  ;;  %v823_v58 = vld [vmem:[%s7179_s3 + $0x198] sm:$0xff] }
  0x58   : > { %1296 = vperm.xlu1 %4231, %v4437_v3   ;;  %4146 = vmatprep.subr.bf16.mxu1 %v7191_v47 }
  0x59   : > { %2099 = vperm.xlu0 %4235, %v4518_v36  }
  0x5a   : > { %4053 = vmatpush1.bf16.msra.mxu0 %v4052_v15  ;;  %v820_v15 = vld [vmem:[%s7179_s3 + $0x180] sm:$0xff] }
  0x5b   : > { %4162 = vmatpush1.bf16.msra.mxu1 %v4703_v63  ;;  %4054 = vmatprep.subr.bf16.mxu0 %v7191_v47  ;;  %v4790_v29 = vpack.c.bf16 %v821_v27, %v820_v15  ;;  %v824_v15 = vld [vmem:[%s7179_s3 + $0x1a0] sm:$0xff]  ;;  %v825_v27 = vld [vmem:[%s7179_s3 + $0x1a8] sm:$0xff] }
  0x5c   : > { %1302 = vperm.xlu1 %4231, %v4443_v6   ;;  %4147 = vmatprep.subr.bf16.mxu1 %v7191_v47 }
  0x5d   : > { %2105 = vperm.xlu0 %4235, %v4523_v37  }
  0x5e   : > { %4056 = vmatpush1.bf16.msra.mxu0 %v4055_v45  ;;  %v798_v45 = vld [vmem:[%s7179_s3 + $0xd0] sm:$0xff] }
  0x5f   : > { %4163 = vmatpush1.bf16.msra.mxu1 %v4724_v19  ;;  %4057 = vmatprep.subr.bf16.mxu0 %v7191_v47  ;;  %v4064_v57 = vpack.c.bf16 %v799_v46, %v798_v45  ;;  %v4832_v45 = vpack.c.bf16 %v825_v27, %v824_v15 }
  0x60   : > { %1308 = vperm.xlu1 %4231, %v4448_v8   ;;  %4148 = vmatprep.subr.bf16.mxu1 %v7191_v47 }
  0x61   : > { %2111 = vperm.xlu0 %4235, %v4528_v38  }
  0x62   : > { %4059 = vmatpush1.bf16.msra.mxu0 %v4058_v59  ;;  %v4811_v59 = vpack.c.bf16 %v823_v58, %v822_v51  ;;  %v802_v51 = vld [vmem:[%s7179_s3 + $0xf0] sm:$0xff] }
  0x63   : > { %4164 = vmatpush1.bf16.msra.mxu1 %v4748_v49  ;;  %4060 = vmatprep.subr.bf16.mxu0 %v7191_v47  ;;  %v826_v58 = vld [vmem:[%s7179_s3 + $0x1b0] sm:$0xff] }
  0x64   : > { %1314 = vperm.xlu1 %4231, %v4453_v10   ;;  %4149 = vmatprep.subr.bf16.mxu1 %v7191_v47 }
  0x65   : > { %2117 = vperm.xlu0 %4235, %v4533_v39  }
  0x66   : > { %4062 = vmatpush1.bf16.msra.mxu0 %v4061_v17  ;;  %v4067_v17 = vpack.c.bf16 %v801_v13, %v800_v11  ;;  %v255_v11 = vld [vmem:[%s4433_s24] sm:$0xff] }
  0x67   : > { %4165 = vmatpush1.bf16.msra.mxu1 %v4769_v62  ;;  %4063 = vmatprep.subr.bf16.mxu0 %v7191_v47 }
  0x68   : > { %1320 = vperm.xlu1 %4231, %v4458_v12   ;;  %4150 = vmatprep.subr.bf16.mxu1 %v7191_v47 }
  0x69   : > { %2123 = vperm.xlu0 %4235, %v4538_v40  }
  0x6a   : > { %4065 = vmatpush1.bf16.msra.mxu0 %v4064_v57  ;;  %v803_v57 = vld [vmem:[%s7179_s3 + $0xf8] sm:$0xff] }
  0x6b   : > { %4166 = vmatpush1.bf16.msra.mxu1 %v4790_v29  ;;  %4066 = vmatprep.subr.bf16.mxu0 %v7191_v47  ;;  %v4070_v15 = vpack.c.bf16 %v803_v57, %v802_v51  ;;  %v828_v51 = vld [vmem:[%s7179_s3 + $0x1c0] sm:$0xff]  ;;  %v829_v57 = vld [vmem:[%s7179_s3 + $0x1c8] sm:$0xff] }
  0x6c   : > { %1326 = vperm.xlu1 %4231, %v4463_v14   ;;  %4151 = vmatprep.subr.bf16.mxu1 %v7191_v47 }
  0x6d   : > { %2129 = vperm.xlu0 %4235, %v4543_v41  }
  0x6e   : > { %4068 = vmatpush1.bf16.msra.mxu0 %v4067_v17  ;;  %v827_v17 = vld [vmem:[%s7179_s3 + $0x1b8] sm:$0xff] }
  0x6f   : > { %4167 = vmatpush1.bf16.msra.mxu1 %v4811_v59  ;;  %4069 = vmatprep.subr.bf16.mxu0 %v7191_v47  ;;  %v4856_v27 = vpack.c.bf16 %v827_v17, %v826_v58  ;;  %v256_v58 = vld [vmem:[%s4433_s24 + $0x8] sm:$0xff]  ;;  %v4871_v17 = vpack.c.bf16 %v829_v57, %v828_v51  ;;  %v831_v51 = vld [vmem:[%s7179_s3 + $0x1d8] sm:$0xff]  ;;  %v259_v57 = vld [vmem:[%s4433_s24 + $0x20] sm:$0xff] }
  0x70   : > { %1332 = vperm.xlu1 %4231, %v4468_v16   ;;  %4152 = vmatprep.subr.bf16.mxu1 %v7191_v47 }
  0x71   : > { %2135 = vperm.xlu0 %4235, %v4548_v42  }
  0x72   : > { %4071 = vmatpush1.bf16.msra.mxu0 %v4070_v15 }
  0x73   : > { %4168 = vmatpush1.bf16.msra.mxu1 %v4832_v45  ;;  %4072 = vmatprep.subr.bf16.mxu0 %v7191_v47 }
  0x74   : > { %1338 = vperm.xlu1 %4231, %v4473_v18   ;;  %4153 = vmatprep.subr.bf16.mxu1 %v7191_v47 }
  0x75   : > { %2141 = vperm.xlu0 %4235, %v4553_v43  }
  0x77   : > { %4169 = vmatpush1.bf16.msra.mxu1 %v4856_v27 }
  0x78   : > { %1344 = vperm.xlu1 %4231, %v4478_v20   ;;  %4154 = vmatprep.subr.bf16.mxu1 %v7191_v47 }
  0x79   : > { %2147 = vperm.xlu0 %4235, %v4565_v48  }
  0x7b   : > { %4170 = vmatpush1.bf16.msra.mxu1 %v4871_v17 }
  0x7c   : > { %1350 = vperm.xlu1 %4231, %v4483_v22   ;;  %4155 = vmatprep.subr.bf16.mxu1 %v7191_v47 }
  0x7d   : > { %2153 = vperm.xlu0 %4235, %v4578_v52  }
  0x80   : > { %1356 = vperm.xlu1 %4231, %v4488_v24  }
  0x81   : > { %2159 = vperm.xlu0 %4235, %v4590_v56  }
  0x84   : > { %1362 = vperm.xlu1 %4231, %v4493_v26  }
  0x85   : > { %2165 = vperm.xlu0 %4235, %v4602_v60  }
  0x88   : > { %1368 = vperm.xlu1 %4231, %v4498_v28  }
  0x89   : > { %2171 = vperm.xlu0 %4235, %v4622_v9  }
  0x8c   : > { %1374 = vperm.xlu1 %4231, %v4503_v30  }
  0x8d   : > { %2177 = vperm.xlu0 %4235, %v4644_v23  }
  0x90   : > { %1380 = vperm.xlu1 %4231, %v4508_v32  }
  0x91   : > { %4236 = vset.pattern.permute.xlu0 %v7185_v53 }
  0x92   : > { %2471 = vperm.xlu0 %4236, %v4427_v2  }
  0x93   : > { %v4685_v55 = vpop.permute.xlu0 %1703  ;;  %v4850_v13 = vpop.permute.xlu1 %299 }
  0x94   : > { %7265 = vst [vmem:[#allocation2_spill] sm:$0xff] %v4685_v55  ;;  %4233 = vset.pattern.permute.xlu1 %v7181_v0 }
  0x95   : > { %1706 = vperm.xlu1 %4233, %v4513_v34  }
  0x96   : > { %2480 = vperm.xlu0 %4236, %v4437_v3  }
  0x97   : > { %v4706_v4 = vpop.permute.xlu0 %1712 }
  0x98   : > { %7266 = vst [vmem:[#allocation3_spill] sm:$0xff] %v4706_v4  ;;  %v7286_v4 = vmov 2  }
  0x99   : > { %1709 = vperm.xlu1 %4233, %v4742_v33  }
  0x9a   : > { %2486 = vperm.xlu0 %4236, %v4443_v6  }
  0x9b   : > { %v4728_v25 = vpop.permute.xlu0 %1718 }
  0x9c   : > { %7267 = vst [vmem:[#allocation4_spill] sm:$0xff] %v4728_v25 }
  0x9d   : > { %1715 = vperm.xlu1 %4233, %v4518_v36  }
  0x9e   : > { %2492 = vperm.xlu0 %4236, %v4448_v8  }
  0x9f   : > { %v4752_v50 = vpop.permute.xlu0 %1724 }
  0xa0   : > { %7268 = vst [vmem:[#allocation5_spill] sm:$0xff] %v4752_v50 }
  0xa1   : > { %1721 = vperm.xlu1 %4233, %v4523_v37  }
  0xa2   : > { %2498 = vperm.xlu0 %4236, %v4453_v10  }
  0xa3   : > { %v4773_v5 = vpop.permute.xlu0 %1730 }
  0xa4   : > { %7269 = vst [vmem:[#allocation6_spill] sm:$0xff] %v4773_v5  ;;  %v267_v5 = vld [vmem:[%s4433_s24 + $0x60] sm:$0xff] }
  0xa5   : > { %1727 = vperm.xlu1 %4233, %v4528_v38  }
  0xa6   : > { %2504 = vperm.xlu0 %4236, %v4458_v12  }
  0xa7   : > { %v4794_v31 = vpop.permute.xlu0 %1736 }
  0xa8   : > { %7270 = vst [vmem:[#allocation7_spill] sm:$0xff] %v4794_v31 }
  0xa9   : > { %1733 = vperm.xlu1 %4233, %v4533_v39  }
  0xaa   : > { %2510 = vperm.xlu0 %4236, %v4463_v14  }
  0xab   : > { %v4815_v61 = vpop.permute.xlu0 %1742 }
  0xac   : > { %7271 = vst [vmem:[#allocation8_spill] sm:$0xff] %v4815_v61  ;;  %v263_v61 = vld [vmem:[%s4433_s24 + $0x40] sm:$0xff] }
  0xad   : > { %1739 = vperm.xlu1 %4233, %v4538_v40  }
  0xae   : > { %2516 = vperm.xlu0 %4236, %v4468_v16  }
  0xaf   : > { %v4836_v46 = vpop.permute.xlu0 %1748 }
  0xb0   : > { %7272 = vst [vmem:[#allocation9_spill] sm:$0xff] %v4836_v46  ;;  %v835_v46 = vld [vmem:[%s7179_s3 + $0x1f8] sm:$0xff] }
  0xb1   : > { %1745 = vperm.xlu1 %4233, %v4543_v41  }
  0xb2   : > { %4238 = vset.pattern.permute.xlu0 %v7183_v1  ;;  %v830_v1 = vld [vmem:[%s7179_s3 + $0x1d0] sm:$0xff] }
  0xb3   : > { %293 = vperm.xlu0 %4238, %v255_v11   ;;  %v4860_v0 = vpop.permute.xlu0 %1754  ;;  %v4875_v11 = vpop.permute.xlu1 %302  ;;  %v4888_v53 = vpack.c.bf16 %v831_v51, %v830_v1  ;;  %v7276_v1 = vmov 0.0|0.0  }
  0xb4   : > { %7273 = vst [vmem:[#allocation10_spill] sm:$0xff] %v4860_v0  ;;  %v261_v0 = vld [vmem:[%s4433_s24 + $0x30] sm:$0xff] }
  0xb5   : > { %1751 = vperm.xlu1 %4233, %v4548_v42   ;;  %4171 = vmatpush1.bf16.msra.mxu1 %v4888_v53 }
  0xb6   : > { %4156 = vmatprep.subr.bf16.mxu1 %v7276_v1 }
  0xb7   : > { %296 = vperm.xlu0 %4238, %v256_v58   ;;  %v4877_v15 = vpop.permute.xlu0 %1760  ;;  %v4901_v47 = vpop.permute.xlu1 %308 }
  0xb8   : > { %7274 = vst [vmem:[#allocation11_spill] sm:$0xff] %v4877_v15  ;;  %v833_v15 = vld [vmem:[%s7179_s3 + $0x1e8] sm:$0xff] }
  0xb9   : > { %v4904_v51 = vpack.c.bf16 %v833_v15, %v832_v35  ;;  %1757 = vperm.xlu1 %4233, %v4553_v43  }
  0xbb   : > { %305 = vperm.xlu0 %4238, %v259_v57   ;;  %v4891_v58 = vpop.permute.xlu0 %1766  ;;  %7277 = vst [vmem:[#allocation13_spill] sm:$0xff] %v4904_v51  ;;  %4172 = vmatpush1.bf16.msra.mxu1 %v4904_v51 }
  0xbc   : > { %7275 = vst [vmem:[#allocation12_spill] sm:$0xff] %v4891_v58  ;;  %v834_v58 = vld [vmem:[%s7179_s3 + $0x1f0] sm:$0xff]  ;;  %4157 = vmatprep.subr.bf16.mxu1 %v7276_v1 }
  0xbd   : > { %v4918_v35 = vpack.c.bf16 %v835_v46, %v834_v58  ;;  %1763 = vperm.xlu1 %4233, %v4565_v48   ;;  %v269_v58 = vld [vmem:[%s4433_s24 + $0x70] sm:$0xff] }
  0xbf   : > { %311 = vperm.xlu0 %4238, %v261_v0   ;;  %v4907_v57 = vpop.permute.xlu0 %1772  ;;  %7279 = vst [vmem:[#allocation15_spill] sm:$0xff] %v4918_v35  ;;  %v4921_v0 = vpop.permute.xlu1 %314  ;;  %4173 = vmatpush1.bf16.msra.mxu1 %v4918_v35  ;;  %v281_v35 = vld [vmem:[%s4433_s24 + $0xd0] sm:$0xff] }
  0xc0   : > { %7278 = vst [vmem:[#allocation14_spill] sm:$0xff] %v4907_v57  ;;  %v265_v57 = vld [vmem:[%s4433_s24 + $0x50] sm:$0xff] }
  0xc1   : > { %1769 = vperm.xlu1 %4233, %v4578_v52  }
  0xc3   : > { %317 = vperm.xlu0 %4238, %v263_v61   ;;  %v4923_v15 = vpop.permute.xlu0 %1778  ;;  %v4931_v46 = vpop.permute.xlu1 %320 }
  0xc4   : > { %7280 = vst [vmem:[#allocation16_spill] sm:$0xff] %v4923_v15 }
  0xc5   : > { %1775 = vperm.xlu1 %4233, %v4590_v56  }
  0xc7   : > { %323 = vperm.xlu0 %4238, %v265_v57   ;;  %v4928_v31 = vpop.permute.xlu0 %1784  ;;  %v4938_v15 = vpop.permute.xlu1 %326  ;;  %v271_v57 = vld [vmem:[%s4433_s24 + $0x80] sm:$0xff] }
  0xc8   : > { %7281 = vst [vmem:[#allocation17_spill] sm:$0xff] %v4928_v31 }
  0xc9   : > { %1781 = vperm.xlu1 %4233, %v4602_v60  }
  0xcb   : > { %329 = vperm.xlu0 %4238, %v267_v5   ;;  %v4934_v61 = vpop.permute.xlu0 %1790  ;;  %v4946_v25 = vpop.permute.xlu1 %332  ;;  %v273_v5 = vld [vmem:[%s4433_s24 + $0x90] sm:$0xff] }
  0xcc   : > { %7282 = vst [vmem:[#allocation18_spill] sm:$0xff] %v4934_v61 }
  0xcd   : > { %1787 = vperm.xlu1 %4233, %v4622_v9  }
  0xcf   : > { %335 = vperm.xlu0 %4238, %v269_v58   ;;  %v4940_v50 = vpop.permute.xlu0 %1796  ;;  %v275_v58 = vld [vmem:[%s4433_s24 + $0xa0] sm:$0xff] }
  0xd0   : > { %7283 = vst [vmem:[#allocation19_spill] sm:$0xff] %v4940_v50  ;;  %v4954_v50 = vpop.permute.xlu1 %338 }
  0xd1   : > { %1793 = vperm.xlu1 %4233, %v4644_v23  }
  0xd3   : > { %341 = vperm.xlu0 %4238, %v271_v57  }
  0xd4   : > { %v4944_v31 = vpop.permute.xlu0 %2090  ;;  %v4961_v55 = vpop.permute.xlu1 %344 }
  0xd5   : > { %7284 = vst [vmem:[#allocation20_spill] sm:$0xff] %v4944_v31  ;;  %4234 = vset.pattern.permute.xlu1 %v7286_v4  ;;  %v277_v31 = vld [vmem:[%s4433_s24 + $0xb0] sm:$0xff] }
  0xd6   : > { %2087 = vperm.xlu1 %4234, %v4427_v2  }
  0xd7   : > { %347 = vperm.xlu0 %4238, %v273_v5  }
  0xd8   : > { %v4950_v61 = vpop.permute.xlu0 %2099 }
  0xd9   : > { %7285 = vst [vmem:[#allocation21_spill] sm:$0xff] %v4950_v61  ;;  %v279_v61 = vld [vmem:[%s4433_s24 + $0xc0] sm:$0xff] }
  0xda   : > { %2093 = vperm.xlu1 %4234, %v4742_v33  }
  0xdb   : > { %353 = vperm.xlu0 %4238, %v275_v58   ;;  %v4970_v58 = vpop.permute.xlu1 %350 }
  0xdc   : > { %v4957_v57 = vpop.permute.xlu0 %2105 }
  0xdd   : > { %7287 = vst [vmem:[#allocation22_spill] sm:$0xff] %v4957_v57 }
  0xde   : > { %2096 = vperm.xlu1 %4234, %v4437_v3   ;;  %v285_v3 = vld [vmem:[%s4433_s24 + $0xf0] sm:$0xff] }
  0xdf   : > { %359 = vperm.xlu0 %4238, %v277_v31   ;;  %v283_v31 = vld [vmem:[%s4433_s24 + $0xe0] sm:$0xff]  ;;  %v4977_v51 = vpop.permute.xlu1 %356 }
  0xe0   : > { %v4963_v5 = vpop.permute.xlu0 %2111 }
  0xe1   : > { %7288 = vst [vmem:[#allocation23_spill] sm:$0xff] %v4963_v5 }
  0xe2   : > { %2102 = vperm.xlu1 %4234, %v4443_v6  }
  0xe3   : > { %365 = vperm.xlu0 %4238, %v279_v61  }
  0xe4   : > { %v4967_v4 = vpop.permute.xlu0 %2117 }
  0xe5   : > { %7289 = vst [vmem:[#allocation24_spill] sm:$0xff] %v4967_v4  ;;  %v4985_v4 = vpop.permute.xlu1 %362 }
  0xe6   : > { %2108 = vperm.xlu1 %4234, %v4448_v8  }
  0xe7   : > { %371 = vperm.xlu0 %4238, %v281_v35  }
  0xe8   : > { %v4973_v57 = vpop.permute.xlu0 %2123 }
  0xe9   : > { %v4993_v8 = vpop.permute.xlu1 %368 }
  0xea   : > { %2114 = vperm.xlu1 %4234, %v4453_v10  }
  0xeb   : > { %377 = vperm.xlu0 %4238, %v283_v31  }
  0xec   : > { %v4979_v5 = vpop.permute.xlu0 %2129 }
  0xed   : > { %v5001_v31 = vpop.permute.xlu1 %374 }
  0xee   : > { %2120 = vperm.xlu1 %4234, %v4458_v12  }
  0xef   : > { %383 = vperm.xlu0 %4238, %v285_v3  }
  0xf0   : > { %v4983_v61 = vpop.permute.xlu0 %2135 }
  0xf1   : > { %v5009_v12 = vpop.permute.xlu1 %380 }
  0xf2   : > { %2126 = vperm.xlu1 %4234, %v4463_v14  }
  0xf3   : > { %1287 = vperm.xlu0 %4238, %v4427_v2  }
  0xf4   : > { %v4989_v6 = vpop.permute.xlu0 %2141 }
  0xf5   : > { %v5017_v3 = vpop.permute.xlu1 %386 }
  0xf6   : > { %2132 = vperm.xlu1 %4234, %v4468_v16  }
  0xf7   : > { %1293 = vperm.xlu0 %4238, %v4742_v33  }
  0xf8   : > { %v4995_v35 = vpop.permute.xlu0 %2147 }
  0xf9   : > { %7290 = vst [vmem:[#allocation25_spill] sm:$0xff] %v4995_v35 }
  0xfa   : > { %2138 = vperm.xlu1 %4234, %v4473_v18  }
  0xfb   : > { %1299 = vperm.xlu0 %4238, %v4518_v36  }
  0xfc   : > { %v4999_v10 = vpop.permute.xlu0 %2153 }
  0xfd   : > { %7291 = vst [vmem:[#allocation26_spill] sm:$0xff] %v4999_v10  ;;  %v2859_v10 = vld [vmem:[%s7178_s2 + $0x28] sm:$0xff] }
  0xfe   : > { %2144 = vperm.xlu1 %4234, %v4478_v20   ;;  %v5025_v20 = vpop.permute.xlu1 %1290 }
  0xff   : > { %1305 = vperm.xlu0 %4238, %v4523_v37  }
 0x100   : > { %v5005_v2 = vpop.permute.xlu0 %2159 }
 0x101   : > { %7292 = vst [vmem:[#allocation27_spill] sm:$0xff] %v5005_v2 }
 0x102   : > { %2150 = vperm.xlu1 %4234, %v4483_v22  }
 0x103   : > { %1311 = vperm.xlu0 %4238, %v4528_v38  }
 0x104   : > { %v5011_v14 = vpop.permute.xlu0 %2165 }
 0x105   : > { %7293 = vst [vmem:[#allocation28_spill] sm:$0xff] %v5011_v14 }
 0x106   : > { %2156 = vperm.xlu1 %4234, %v4488_v24  }
 0x107   : > { %1317 = vperm.xlu0 %4238, %v4533_v39  }
 0x108   : > { %v5015_v16 = vpop.permute.xlu0 %2171 }
 0x109   : > { %7294 = vst [vmem:[#allocation29_spill] sm:$0xff] %v5015_v16  ;;  %v5033_v16 = vpop.permute.xlu1 %1296 }
 0x10a   : > { %2162 = vperm.xlu1 %4234, %v4493_v26  }
 0x10b   : > { %1323 = vperm.xlu0 %4238, %v4538_v40  }
 0x10c   : > { %v5021_v18 = vpop.permute.xlu0 %2177 }
 0x10d   : > { %7295 = vst [vmem:[#allocation30_spill] sm:$0xff] %v5021_v18  ;;  %v5041_v26 = vpop.permute.xlu1 %1302 }
 0x10e   : > { %2168 = vperm.xlu1 %4234, %v4498_v28   ;;  %v7298_v28 = vmov 3  }
 0x10f   : > { %1329 = vperm.xlu0 %4238, %v4543_v41  }
 0x111   : > { %v5027_v14 = vpop.permute.xlu0 %2471 }
 0x112   : > { %2174 = vperm.xlu1 %4234, %v4503_v30   ;;  %v5050_v30 = vpop.permute.xlu1 %1308 }
 0x113   : > { %1335 = vperm.xlu0 %4238, %v4548_v42  }
 0x115   : > { %v5031_v22 = vpop.permute.xlu0 %2480 }
 0x116   : > { %2180 = vperm.xlu1 %4234, %v4508_v32  }
 0x117   : > { %1341 = vperm.xlu0 %4238, %v4553_v43   ;;  %v5058_v43 = vpop.permute.xlu1 %1314 }
 0x119   : > { %v5037_v24 = vpop.permute.xlu0 %2486 }
 0x11a   : > { %7296 = vst [vmem:[#allocation31_spill] sm:$0xff] %v5037_v24  ;;  %4237 = vset.pattern.permute.xlu1 %v7298_v28 }
 0x11b   : > { %1347 = vperm.xlu0 %4238, %v4565_v48   ;;  %2474 = vperm.xlu1 %4237, %v4513_v34   ;;  %v287_v48 = vlaneseq }
 0x11d   : > { %v5043_v18 = vpop.permute.xlu0 %2492  ;;  %v5064_v34 = vand.u32 127, %v287_v48 }
 0x11e   : > { %7297 = vst [vmem:[#allocation32_spill] sm:$0xff] %v5043_v18 }
 0x11f   : > { %1353 = vperm.xlu0 %4238, %v4578_v52   ;;  %2477 = vperm.xlu1 %4237, %v4742_v33   ;;  %v5068_v33 = vpop.permute.xlu1 %1320  ;;  %vm396_vm5 = vcmp.eq.s32.totalorder %v5064_v34, %v4850_v13  ;;  %vm400_vm7 = vcmp.eq.s32.totalorder %v5064_v34, %v4875_v11  ;;  %vm408_vm14 = vcmp.eq.s32.totalorder %v5064_v34, %v4901_v47 }
 0x121   : > { %v5048_v2 = vpop.permute.xlu0 %2498 }
 0x122   : > { %7299 = vst [vmem:[#allocation33_spill] sm:$0xff] %v5048_v2 }
 0x123   : > { %1359 = vperm.xlu0 %4238, %v4590_v56   ;;  %2483 = vperm.xlu1 %4237, %v4518_v36  }
 0x125   : > { %v5054_v32 = vpop.permute.xlu0 %2504 }
 0x126   : > { %7300 = vst [vmem:[#allocation34_spill] sm:$0xff] %v5054_v32 }
 0x127   : > { %1365 = vperm.xlu0 %4238, %v4602_v60   ;;  %2489 = vperm.xlu1 %4237, %v4523_v37   ;;  %v5072_v60 = vadd.s32 128, %v5064_v34  ;;  %v5082_v37 = vpop.permute.xlu1 %1326 }
 0x129   : > { %v5060_v52 = vpop.permute.xlu0 %2510  ;;  %vm397_vm4 = vcmp.eq.s32.totalorder %v5072_v60, %v4850_v13  ;;  %vm401_vm6 = vcmp.eq.s32.totalorder %v5072_v60, %v4875_v11  ;;  %vm409_vm12 = vcmp.eq.s32.totalorder %v5072_v60, %v4901_v47 }
 0x12a   : > { %7301 = vst [vmem:[#allocation35_spill] sm:$0xff] %v5060_v52 }
 0x12b   : > { %1371 = vperm.xlu0 %4238, %v4622_v9   ;;  %2495 = vperm.xlu1 %4237, %v4528_v38   ;;  %v4379_v9 = vmov 1.0   ;;  %v5099_v38 = vpop.permute.xlu1 %1332 }
 0x12d   : > { %v5066_v56 = vpop.permute.xlu0 %2516 }
 0x12e   : > { %7302 = vst [vmem:[#allocation36_spill] sm:$0xff] %v5066_v56 }
 0x12f   : > { %1377 = vperm.xlu0 %4238, %v4644_v23   ;;  %2501 = vperm.xlu1 %4237, %v4533_v39  }
 0x132   : > { %v5075_v36 = vpop.permute.xlu0 %293 }
 0x133   : > { %vm389_vm0 = vcmp.eq.s32.totalorder %v5072_v60, %v5075_v36  ;;  %vm388_vm1 = vcmp.eq.s32.totalorder %v5064_v34, %v5075_v36  ;;  %2507 = vperm.xlu1 %4237, %v4538_v40  }
 0x134   : > { %3623 = vmatprep.mubr.msk.f32.mxu0 %vm389_vm0, %v4379_v9 }
 0x135   : > { %3624 = vmatmul.mubr.msk.f32.vlgmr.msra.gmra.mrb[0].mxu0 %vm388_vm1, %v4379_v9 }
 0x136   : > { %v5086_v23 = vpop.permute.xlu0 %296  ;;  %4074 = vmatpush1.bf16.msra.mxu0 %v4619_v7  ;;  %v5117_v7 = vpop.permute.xlu1 %1338 }
 0x137   : > { %vm393_vm2 = vcmp.eq.s32.totalorder %v5072_v60, %v5086_v23  ;;  %vm392_vm3 = vcmp.eq.s32.totalorder %v5064_v34, %v5086_v23  ;;  %4075 = vmatprep.subr.bf16.mxu0 %v7276_v1  ;;  %2513 = vperm.xlu1 %4237, %v4543_v41   ;;  %v5126_v41 = vadd.s32 384, %v5064_v34 }
 0x138   : > { %3625 = vmatprep.mubr.msk.f32.mxu0 %vm393_vm2, %v4379_v9 }
 0x139   : > { %3626 = vmatmul.mubr.msk.f32.gmra.mrb[2].mxu0 %vm392_vm3, %v4379_v9  ;;  %vm427_vm13 = vcmp.eq.s32.totalorder %v5126_v41, %v4931_v46 }
 0x13a   : > { %v5101_v39 = vpop.permute.xlu0 %305  ;;  %3627 = vmatprep.mubr.msk.f32.mxu0 %vm397_vm4, %v4379_v9  ;;  %4077 = vmatpush1.bf16.msra.mxu0 %v4641_v21  ;;  %v5129_v21 = vadd.s32 256, %v5064_v34  ;;  %vm417_vm4 = vcmp.eq.s32.totalorder %v5072_v60, %v4921_v0 }
 0x13b   : > { %4078 = vmatprep.subr.bf16.mxu0 %v7276_v1  ;;  %2519 = vperm.xlu1 %4237, %v4548_v42   ;;  %vm405_vm8 = vcmp.eq.s32.totalorder %v5072_v60, %v5101_v39  ;;  %vm404_vm11 = vcmp.eq.s32.totalorder %v5064_v34, %v5101_v39  ;;  %v7303_v42 = vmov 1  }
 0x13c   : > { %vm426_vm15 = vcmp.eq.s32.totalorder %v5129_v21, %v4931_v46 }
 0x13d   : > { %3628 = vmatmul.mubr.msk.f32.gmra.mrb[4].mxu0 %vm396_vm5, %v4379_v9  ;;  %vm435_vm5 = vcmp.eq.s32.totalorder %v5126_v41, %v4938_v15 }
 0x13e   : > { %3629 = vmatprep.mubr.msk.f32.mxu0 %vm401_vm6, %v4379_v9  ;;  %v5113_v40 = vpop.permute.xlu0 %311  ;;  %4080 = vmatpush1.bf16.msra.mxu0 %v4663_v44  ;;  %vm416_vm6 = vcmp.eq.s32.totalorder %v5064_v34, %v4921_v0 }
 0x13f   : > { %4081 = vmatprep.subr.bf16.mxu0 %v7276_v1  ;;  %4239 = vset.pattern.permute.xlu1 %v7303_v42  ;;  %vm413_vm0 = vcmp.eq.s32.totalorder %v5072_v60, %v5113_v40  ;;  %vm412_vm2 = vcmp.eq.s32.totalorder %v5064_v34, %v5113_v40 }
 0x141   : > { %3630 = vmatmul.mubr.msk.f32.gmra.mrb[6].mxu0 %vm400_vm7, %v4379_v9  ;;  %vm434_vm7 = vcmp.eq.s32.totalorder %v5129_v21, %v4938_v15 }
 0x142   : > { %3631 = vmatprep.mubr.msk.f32.mxu0 %vm405_vm8, %v4379_v9  ;;  %v318_v44 = vpop.permute.xlu0 %317  ;;  %4083 = vmatpush1.bf16.msra.mxu0 %v4682_v54 }
 0x143   : > { %vm423_vm9 = vcmp.eq.s32.totalorder %v5126_v41, %v318_v44  ;;  %vm422_vm10 = vcmp.eq.s32.totalorder %v5129_v21, %v318_v44  ;;  %4084 = vmatprep.subr.bf16.mxu0 %v7276_v1  ;;  %vm421_vm8 = vcmp.eq.s32.totalorder %v5072_v60, %v318_v44 }
 0x144   : > { %3703 = vmatprep.mubr.msk.f32.mxu1 %vm423_vm9, %v4379_v9 }
 0x145   : > { %3632 = vmatmul.mubr.msk.f32.gmra.mrb[8].mxu0 %vm404_vm11, %v4379_v9  ;;  %3704 = vmatmul.mubr.msk.f32.vlgmr.msra.gmra.mrb[0].mxu1 %vm422_vm10, %v4379_v9  ;;  %vm420_vm10 = vcmp.eq.s32.totalorder %v5064_v34, %v318_v44 }
 0x146   : > { %3633 = vmatprep.mubr.msk.f32.mxu0 %vm409_vm12, %v4379_v9  ;;  %3705 = vmatprep.mubr.msk.f32.mxu1 %vm427_vm13, %v4379_v9  ;;  %v324_v54 = vpop.permute.xlu0 %323  ;;  %vm425_vm12 = vcmp.eq.s32.totalorder %v5072_v60, %v4931_v46  ;;  %vm443_vm13 = vcmp.eq.s32.totalorder %v5126_v41, %v4946_v25 }
 0x147   : > { %4086 = vmatpush1.bf16.msra.mxu0 %v4703_v63  ;;  %vm431_vm1 = vcmp.eq.s32.totalorder %v5126_v41, %v324_v54  ;;  %vm430_vm3 = vcmp.eq.s32.totalorder %v5129_v21, %v324_v54 }
 0x148   : > { %4087 = vmatprep.subr.bf16.mxu0 %v7276_v1 }
 0x149   : > { %3634 = vmatmul.mubr.msk.f32.gmra.mrb[10].mxu0 %vm408_vm14, %v4379_v9  ;;  %3706 = vmatmul.mubr.msk.f32.gmra.mrb[2].mxu1 %vm426_vm15, %v4379_v9  ;;  %vm424_vm14 = vcmp.eq.s32.totalorder %v5064_v34, %v4931_v46  ;;  %vm442_vm15 = vcmp.eq.s32.totalorder %v5129_v21, %v4946_v25 }
 0x14a   : > { %3635 = vmatprep.mubr.msk.f32.mxu0 %vm413_vm0, %v4379_v9  ;;  %3707 = vmatprep.mubr.msk.f32.mxu1 %vm431_vm1, %v4379_v9  ;;  %v330_v63 = vpop.permute.xlu0 %329  ;;  %vm429_vm0 = vcmp.eq.s32.totalorder %v5072_v60, %v324_v54 }
 0x14b   : > { %4089 = vmatpush1.bf16.msra.mxu0 %v4724_v19  ;;  %vm439_vm9 = vcmp.eq.s32.totalorder %v5126_v41, %v330_v63  ;;  %vm438_vm11 = vcmp.eq.s32.totalorder %v5129_v21, %v330_v63 }
 0x14c   : > { %4090 = vmatprep.subr.bf16.mxu0 %v7276_v1 }
 0x14d   : > { %3636 = vmatmul.mubr.msk.f32.gmra.mrb[12].mxu0 %vm412_vm2, %v4379_v9  ;;  %3708 = vmatmul.mubr.msk.f32.gmra.mrb[4].mxu1 %vm430_vm3, %v4379_v9  ;;  %vm428_vm2 = vcmp.eq.s32.totalorder %v5064_v34, %v324_v54 }
 0x14e   : > { %3637 = vmatprep.mubr.msk.f32.mxu0 %vm417_vm4, %v4379_v9  ;;  %3709 = vmatprep.mubr.msk.f32.mxu1 %vm435_vm5, %v4379_v9  ;;  %v336_v19 = vpop.permute.xlu0 %335  ;;  %vm433_vm4 = vcmp.eq.s32.totalorder %v5072_v60, %v4938_v15  ;;  %vm451_vm5 = vcmp.eq.s32.totalorder %v5126_v41, %v4954_v50 }
 0x14f   : > { %4092 = vmatpush1.bf16.msra.mxu0 %v4748_v49  ;;  %vm447_vm1 = vcmp.eq.s32.totalorder %v5126_v41, %v336_v19  ;;  %vm446_vm3 = vcmp.eq.s32.totalorder %v5129_v21, %v336_v19 }
 0x150   : > { %4093 = vmatprep.subr.bf16.mxu0 %v7276_v1 }
 0x151   : > { %3638 = vmatmul.mubr.msk.f32.gmra.mrb[14].mxu0 %vm416_vm6, %v4379_v9  ;;  %3710 = vmatmul.mubr.msk.f32.gmra.mrb[6].mxu1 %vm434_vm7, %v4379_v9  ;;  %vm432_vm6 = vcmp.eq.s32.totalorder %v5064_v34, %v4938_v15  ;;  %vm450_vm7 = vcmp.eq.s32.totalorder %v5129_v21, %v4954_v50 }
 0x152   : > { %3639 = vmatprep.mubr.msk.f32.mxu0 %vm421_vm8, %v4379_v9  ;;  %3711 = vmatprep.mubr.msk.f32.mxu1 %vm439_vm9, %v4379_v9  ;;  %v342_v49 = vpop.permute.xlu0 %341  ;;  %vm437_vm8 = vcmp.eq.s32.totalorder %v5072_v60, %v330_v63 }
 0x153   : > { %4095 = vmatpush1.bf16.msra.mxu0 %v4769_v62  ;;  %vm455_vm9 = vcmp.eq.s32.totalorder %v5126_v41, %v342_v49 }
 0x154   : > { %4096 = vmatprep.subr.bf16.mxu0 %v7276_v1 }
 0x155   : > { %3640 = vmatmul.mubr.msk.f32.gmra.mrb[16].mxu0 %vm420_vm10, %v4379_v9  ;;  %3712 = vmatmul.mubr.msk.f32.gmra.mrb[8].mxu1 %vm438_vm11, %v4379_v9  ;;  %vm436_vm10 = vcmp.eq.s32.totalorder %v5064_v34, %v330_v63  ;;  %vm454_vm11 = vcmp.eq.s32.totalorder %v5129_v21, %v342_v49 }
 0x156   : > { %3641 = vmatprep.mubr.msk.f32.mxu0 %vm425_vm12, %v4379_v9  ;;  %3713 = vmatprep.mubr.msk.f32.mxu1 %vm443_vm13, %v4379_v9  ;;  %vm441_vm12 = vcmp.eq.s32.totalorder %v5072_v60, %v4946_v25  ;;  %vm459_vm13 = vcmp.eq.s32.totalorder %v5126_v41, %v4961_v55  ;;  %v348_v62 = vpop.permute.xlu0 %347 }
 0x157   : > { %4098 = vmatpush1.bf16.msra.mxu0 %v4790_v29  ;;  %v7305_v29 = vld [vmem:[#allocation15_spill] sm:$0xff] }
 0x158   : > { %4099 = vmatprep.subr.bf16.mxu0 %v7276_v1 }
 0x159   : > { %3642 = vmatmul.mubr.msk.f32.gmra.mrb[18].mxu0 %vm424_vm14, %v4379_v9  ;;  %3714 = vmatmul.mubr.msk.f32.gmra.mrb[10].mxu1 %vm442_vm15, %v4379_v9  ;;  %vm440_vm14 = vcmp.eq.s32.totalorder %v5064_v34, %v4946_v25  ;;  %vm458_vm15 = vcmp.eq.s32.totalorder %v5129_v21, %v4961_v55 }
 0x15a   : > { %3643 = vmatprep.mubr.msk.f32.mxu0 %vm429_vm0, %v4379_v9  ;;  %3715 = vmatprep.mubr.msk.f32.mxu1 %vm447_vm1, %v4379_v9  ;;  %vm445_vm0 = vcmp.eq.s32.totalorder %v5072_v60, %v336_v19  ;;  %vm463_vm1 = vcmp.eq.s32.totalorder %v5126_v41, %v348_v62  ;;  %v354_v25 = vpop.permute.xlu0 %353 }
 0x15b   : > { %4101 = vmatpush1.bf16.msra.mxu0 %v4811_v59  ;;  %v5297_v59 = vpop.permute.xlu1 %1344 }
 0x15c   : > { %4102 = vmatprep.subr.bf16.mxu0 %v7276_v1 }
 0x15d   : > { %3644 = vmatmul.mubr.msk.f32.gmra.mrb[20].mxu0 %vm428_vm2, %v4379_v9  ;;  %3716 = vmatmul.mubr.msk.f32.gmra.mrb[12].mxu1 %vm446_vm3, %v4379_v9  ;;  %vm444_vm2 = vcmp.eq.s32.totalorder %v5064_v34, %v336_v19  ;;  %vm462_vm3 = vcmp.eq.s32.totalorder %v5129_v21, %v348_v62 }
 0x15e   : > { %3645 = vmatprep.mubr.msk.f32.mxu0 %vm433_vm4, %v4379_v9  ;;  %3717 = vmatprep.mubr.msk.f32.mxu1 %vm451_vm5, %v4379_v9  ;;  %vm449_vm4 = vcmp.eq.s32.totalorder %v5072_v60, %v4954_v50  ;;  %vm467_vm5 = vcmp.eq.s32.totalorder %v5126_v41, %v4970_v58 }
 0x15f   : > { %4104 = vmatpush1.bf16.msra.mxu0 %v4832_v45  ;;  %v5315_v45 = vpop.permute.xlu1 %1350 }
 0x160   : > { %4105 = vmatprep.subr.bf16.mxu0 %v7276_v1  ;;  %7307 = vst [vmem:[#allocation15_spill] sm:$0xff] %v5315_v45 }
 0x161   : > { %3646 = vmatmul.mubr.msk.f32.gmra.mrb[22].mxu0 %vm432_vm6, %v4379_v9  ;;  %3718 = vmatmul.mubr.msk.f32.gmra.mrb[14].mxu1 %vm450_vm7, %v4379_v9  ;;  %vm448_vm6 = vcmp.eq.s32.totalorder %v5064_v34, %v4954_v50  ;;  %vm466_vm7 = vcmp.eq.s32.totalorder %v5129_v21, %v4970_v58  ;;  %v360_v50 = vpop.permute.xlu0 %359 }
 0x162   : > { %3647 = vmatprep.mubr.msk.f32.mxu0 %vm437_vm8, %v4379_v9  ;;  %3719 = vmatprep.mubr.msk.f32.mxu1 %vm455_vm9, %v4379_v9  ;;  %vm453_vm8 = vcmp.eq.s32.totalorder %v5072_v60, %v342_v49  ;;  %vm471_vm9 = vcmp.eq.s32.totalorder %v5126_v41, %v354_v25 }
 0x163   : > { %4107 = vmatpush1.bf16.msra.mxu0 %v4856_v27  ;;  %v5329_v27 = vpop.permute.xlu1 %1356 }
 0x164   : > { %4108 = vmatprep.subr.bf16.mxu0 %v7276_v1  ;;  %7308 = vst [vmem:[#allocation37_spill] sm:$0xff] %v5329_v27 }
 0x165   : > { %3648 = vmatmul.mubr.msk.f32.gmra.mrb[24].mxu0 %vm436_vm10, %v4379_v9  ;;  %3720 = vmatmul.mubr.msk.f32.gmra.mrb[16].mxu1 %vm454_vm11, %v4379_v9  ;;  %vm452_vm10 = vcmp.eq.s32.totalorder %v5064_v34, %v342_v49  ;;  %vm470_vm11 = vcmp.eq.s32.totalorder %v5129_v21, %v354_v25 }
 0x166   : > { %3649 = vmatprep.mubr.msk.f32.mxu0 %vm441_vm12, %v4379_v9  ;;  %3721 = vmatprep.mubr.msk.f32.mxu1 %vm459_vm13, %v4379_v9  ;;  %vm457_vm12 = vcmp.eq.s32.totalorder %v5072_v60, %v4961_v55  ;;  %vm475_vm13 = vcmp.eq.s32.totalorder %v5126_v41, %v4977_v51 }
 0x167   : > { %4110 = vmatpush1.bf16.msra.mxu0 %v4871_v17 }
 0x168   : > { %4111 = vmatprep.subr.bf16.mxu0 %v7276_v1 }
 0x169   : > { %3650 = vmatmul.mubr.msk.f32.gmra.mrb[26].mxu0 %vm440_vm14, %v4379_v9  ;;  %3722 = vmatmul.mubr.msk.f32.gmra.mrb[18].mxu1 %vm458_vm15, %v4379_v9  ;;  %vm456_vm14 = vcmp.eq.s32.totalorder %v5064_v34, %v4961_v55  ;;  %vm474_vm15 = vcmp.eq.s32.totalorder %v5129_v21, %v4977_v51  ;;  %v366_v55 = vpop.permute.xlu0 %365 }
 0x16a   : > { %3651 = vmatprep.mubr.msk.f32.mxu0 %vm445_vm0, %v4379_v9  ;;  %3723 = vmatprep.mubr.msk.f32.mxu1 %vm463_vm1, %v4379_v9  ;;  %vm461_vm0 = vcmp.eq.s32.totalorder %v5072_v60, %v348_v62  ;;  %vm479_vm1 = vcmp.eq.s32.totalorder %v5126_v41, %v360_v50 }
 0x16b   : > { %4113 = vmatpush1.bf16.msra.mxu0 %v4888_v53  ;;  %v7304_v53 = vld [vmem:[#allocation13_spill] sm:$0xff] }
 0x16c   : > { %4114 = vmatprep.subr.bf16.mxu0 %v7276_v1  ;;  %7306 = vst [vmem:[#allocation13_spill] sm:$0xff] %v5297_v59  ;;  %v2858_v59 = vld [vmem:[%s7178_s2 + $0x20] sm:$0xff] }
 0x16d   : > { %3652 = vmatmul.mubr.msk.f32.gmra.mrb[28].mxu0 %vm444_vm2, %v4379_v9  ;;  %3724 = vmatmul.mubr.msk.f32.gmra.mrb[20].mxu1 %vm462_vm3, %v4379_v9  ;;  %vm460_vm2 = vcmp.eq.s32.totalorder %v5064_v34, %v348_v62  ;;  %vm478_vm3 = vcmp.eq.s32.totalorder %v5129_v21, %v360_v50  ;;  %v372_v17 = vpop.permute.xlu0 %371 }
 0x16e   : > { %3653 = vmatprep.mubr.msk.f32.mxu0 %vm449_vm4, %v4379_v9  ;;  %3725 = vmatprep.mubr.msk.f32.mxu1 %vm467_vm5, %v4379_v9  ;;  %vm465_vm4 = vcmp.eq.s32.totalorder %v5072_v60, %v4970_v58  ;;  %vm483_vm5 = vcmp.eq.s32.totalorder %v5126_v41, %v4985_v4 }
 0x16f   : > { %4116 = vmatpush1.bf16.msra.mxu0 %v7304_v53 }
 0x170   : > { %4117 = vmatprep.subr.bf16.mxu0 %v7276_v1  ;;  %v5349_v1 = vpop.permute.xlu1 %1362 }
 0x171   : > { %3654 = vmatmul.mubr.msk.f32.gmra.mrb[30].mxu0 %vm448_vm6, %v4379_v9  ;;  %3726 = vmatmul.mubr.msk.f32.gmra.mrb[22].mxu1 %vm466_vm7, %v4379_v9  ;;  %vm464_vm6 = vcmp.eq.s32.totalorder %v5064_v34, %v4970_v58  ;;  %vm482_vm7 = vcmp.eq.s32.totalorder %v5129_v21, %v4985_v4  ;;  %7309 = vst [vmem:[#allocation38_spill] sm:$0xff] %v5349_v1 }
 0x172   : > { %3655 = vmatprep.mubr.msk.f32.mxu0 %vm453_vm8, %v4379_v9  ;;  %3727 = vmatprep.mubr.msk.f32.mxu1 %vm471_vm9, %v4379_v9  ;;  %vm469_vm8 = vcmp.eq.s32.totalorder %v5072_v60, %v354_v25  ;;  %vm487_vm9 = vcmp.eq.s32.totalorder %v5126_v41, %v366_v55 }
 0x173   : > { %4119 = vmatpush1.bf16.msra.mxu0 %v7305_v29 }
 0x174   : > { %v5365_v15 = vpop.permute.xlu1 %1368 }
 0x175   : > { %3656 = vmatmul.mubr.msk.f32.gmra.mrb[32].mxu0 %vm452_vm10, %v4379_v9  ;;  %3728 = vmatmul.mubr.msk.f32.gmra.mrb[24].mxu1 %vm470_vm11, %v4379_v9  ;;  %vm468_vm10 = vcmp.eq.s32.totalorder %v5064_v34, %v354_v25  ;;  %vm486_vm11 = vcmp.eq.s32.totalorder %v5129_v21, %v366_v55  ;;  %7310 = vst [vmem:[#allocation39_spill] sm:$0xff] %v5365_v15 }
 0x176   : > { %3657 = vmatprep.mubr.msk.f32.mxu0 %vm457_vm12, %v4379_v9  ;;  %3729 = vmatprep.mubr.msk.f32.mxu1 %vm475_vm13, %v4379_v9  ;;  %vm473_vm12 = vcmp.eq.s32.totalorder %v5072_v60, %v4977_v51  ;;  %vm491_vm13 = vcmp.eq.s32.totalorder %v5126_v41, %v4993_v8 }
 0x178   : > { %v5383_v46 = vpop.permute.xlu1 %1374 }
 0x179   : > { %3658 = vmatmul.mubr.msk.f32.gmra.mrb[34].mxu0 %vm456_vm14, %v4379_v9  ;;  %3730 = vmatmul.mubr.msk.f32.gmra.mrb[26].mxu1 %vm474_vm15, %v4379_v9  ;;  %vm472_vm14 = vcmp.eq.s32.totalorder %v5064_v34, %v4977_v51  ;;  %vm490_vm15 = vcmp.eq.s32.totalorder %v5129_v21, %v4993_v8  ;;  %v378_v51 = vpop.permute.xlu0 %377  ;;  %7311 = vst [vmem:[#allocation40_spill] sm:$0xff] %v5383_v46 }
 0x17a   : > { %3659 = vmatprep.mubr.msk.f32.mxu0 %vm461_vm0, %v4379_v9  ;;  %3731 = vmatprep.mubr.msk.f32.mxu1 %vm479_vm1, %v4379_v9  ;;  %vm477_vm0 = vcmp.eq.s32.totalorder %v5072_v60, %v360_v50  ;;  %vm495_vm1 = vcmp.eq.s32.totalorder %v5126_v41, %v372_v17 }
 0x17c   : > { %v5397_v58 = vpop.permute.xlu1 %1380 }
 0x17d   : > { %3660 = vmatmul.mubr.msk.f32.gmra.mrb[36].mxu0 %vm460_vm2, %v4379_v9  ;;  %3732 = vmatmul.mubr.msk.f32.gmra.mrb[28].mxu1 %vm478_vm3, %v4379_v9  ;;  %vm476_vm2 = vcmp.eq.s32.totalorder %v5064_v34, %v360_v50  ;;  %vm494_vm3 = vcmp.eq.s32.totalorder %v5129_v21, %v372_v17  ;;  %7312 = vst [vmem:[#allocation41_spill] sm:$0xff] %v5397_v58 }
 0x17e   : > { %3661 = vmatprep.mubr.msk.f32.mxu0 %vm465_vm4, %v4379_v9  ;;  %3733 = vmatprep.mubr.msk.f32.mxu1 %vm483_vm5, %v4379_v9  ;;  %vm481_vm4 = vcmp.eq.s32.totalorder %v5072_v60, %v4985_v4  ;;  %vm499_vm5 = vcmp.eq.s32.totalorder %v5126_v41, %v5001_v31 }
 0x181   : > { %3662 = vmatmul.mubr.msk.f32.gmra.mrb[38].mxu0 %vm464_vm6, %v4379_v9  ;;  %3734 = vmatmul.mubr.msk.f32.gmra.mrb[30].mxu1 %vm482_vm7, %v4379_v9  ;;  %vm480_vm6 = vcmp.eq.s32.totalorder %v5064_v34, %v4985_v4  ;;  %vm498_vm7 = vcmp.eq.s32.totalorder %v5129_v21, %v5001_v31  ;;  %v384_v4 = vpop.permute.xlu0 %383 }
 0x182   : > { %3663 = vmatprep.mubr.msk.f32.mxu0 %vm469_vm8, %v4379_v9  ;;  %3735 = vmatprep.mubr.msk.f32.mxu1 %vm487_vm9, %v4379_v9  ;;  %vm485_vm8 = vcmp.eq.s32.totalorder %v5072_v60, %v366_v55  ;;  %vm503_vm9 = vcmp.eq.s32.totalorder %v5126_v41, %v378_v51 }
 0x185   : > { %3664 = vmatmul.mubr.msk.f32.gmra.mrb[40].mxu0 %vm468_vm10, %v4379_v9  ;;  %3736 = vmatmul.mubr.msk.f32.gmra.mrb[32].mxu1 %vm486_vm11, %v4379_v9  ;;  %vm484_vm10 = vcmp.eq.s32.totalorder %v5064_v34, %v366_v55  ;;  %vm502_vm11 = vcmp.eq.s32.totalorder %v5129_v21, %v378_v51 }
 0x186   : > { %3665 = vmatprep.mubr.msk.f32.mxu0 %vm473_vm12, %v4379_v9  ;;  %3737 = vmatprep.mubr.msk.f32.mxu1 %vm491_vm13, %v4379_v9  ;;  %vm489_vm12 = vcmp.eq.s32.totalorder %v5072_v60, %v4993_v8  ;;  %vm507_vm13 = vcmp.eq.s32.totalorder %v5126_v41, %v5009_v12 }
 0x189   : > { %3666 = vmatmul.mubr.msk.f32.gmra.mrb[42].mxu0 %vm472_vm14, %v4379_v9  ;;  %3738 = vmatmul.mubr.msk.f32.gmra.mrb[34].mxu1 %vm490_vm15, %v4379_v9  ;;  %vm488_vm14 = vcmp.eq.s32.totalorder %v5064_v34, %v4993_v8  ;;  %vm506_vm15 = vcmp.eq.s32.totalorder %v5129_v21, %v5009_v12  ;;  %v5414_v8 = vpop.permute.xlu1 %1706 }
 0x18a   : > { %3667 = vmatprep.mubr.msk.f32.mxu0 %vm477_vm0, %v4379_v9  ;;  %3739 = vmatprep.mubr.msk.f32.mxu1 %vm495_vm1, %v4379_v9  ;;  %vm493_vm0 = vcmp.eq.s32.totalorder %v5072_v60, %v372_v17  ;;  %vm511_vm1 = vcmp.eq.s32.totalorder %v5126_v41, %v384_v4 }
 0x18d   : > { %3668 = vmatmul.mubr.msk.f32.gmra.mrb[44].mxu0 %vm476_vm2, %v4379_v9  ;;  %3740 = vmatmul.mubr.msk.f32.gmra.mrb[36].mxu1 %vm494_vm3, %v4379_v9  ;;  %vm492_vm2 = vcmp.eq.s32.totalorder %v5064_v34, %v372_v17  ;;  %vm510_vm3 = vcmp.eq.s32.totalorder %v5129_v21, %v384_v4 }
 0x18e   : > { %3669 = vmatprep.mubr.msk.f32.mxu0 %vm481_vm4, %v4379_v9  ;;  %3741 = vmatprep.mubr.msk.f32.mxu1 %vm499_vm5, %v4379_v9  ;;  %vm497_vm4 = vcmp.eq.s32.totalorder %v5072_v60, %v5001_v31  ;;  %vm515_vm5 = vcmp.eq.s32.totalorder %v5126_v41, %v5017_v3 }
 0x191   : > { %3670 = vmatmul.mubr.msk.f32.gmra.mrb[46].mxu0 %vm480_vm6, %v4379_v9  ;;  %3742 = vmatmul.mubr.msk.f32.gmra.mrb[38].mxu1 %vm498_vm7, %v4379_v9  ;;  %vm496_vm6 = vcmp.eq.s32.totalorder %v5064_v34, %v5001_v31  ;;  %vm514_vm7 = vcmp.eq.s32.totalorder %v5129_v21, %v5017_v3  ;;  %v5422_v31 = vpop.permute.xlu1 %1709 }
 0x192   : > { %3671 = vmatprep.mubr.msk.f32.mxu0 %vm485_vm8, %v4379_v9  ;;  %3743 = vmatprep.mubr.msk.f32.mxu1 %vm503_vm9, %v4379_v9  ;;  %vm501_vm8 = vcmp.eq.s32.totalorder %v5072_v60, %v378_v51  ;;  %vm500_vm9 = vcmp.eq.s32.totalorder %v5064_v34, %v378_v51 }
 0x195   : > { %3672 = vmatmul.mubr.msk.f32.gmra.mrb[48].mxu0 %vm484_vm10, %v4379_v9  ;;  %3744 = vmatmul.mubr.msk.f32.gmra.mrb[40].mxu1 %vm502_vm11, %v4379_v9  ;;  %vm505_vm10 = vcmp.eq.s32.totalorder %v5072_v60, %v5009_v12  ;;  %vm504_vm11 = vcmp.eq.s32.totalorder %v5064_v34, %v5009_v12  ;;  %v5433_v48 = vpop.permute.xlu1 %1715 }
 0x196   : > { %3673 = vmatprep.mubr.msk.f32.mxu0 %vm489_vm12, %v4379_v9  ;;  %3745 = vmatprep.mubr.msk.f32.mxu1 %vm507_vm13, %v4379_v9  ;;  %vm509_vm12 = vcmp.eq.s32.totalorder %v5072_v60, %v384_v4  ;;  %vm508_vm13 = vcmp.eq.s32.totalorder %v5064_v34, %v384_v4 }
 0x199   : > { %3674 = vmatmul.mubr.msk.f32.gmra.mrb[50].mxu0 %vm488_vm14, %v4379_v9  ;;  %3746 = vmatmul.mubr.msk.f32.gmra.mrb[42].mxu1 %vm506_vm15, %v4379_v9  ;;  %vm513_vm14 = vcmp.eq.s32.totalorder %v5072_v60, %v5017_v3  ;;  %vm512_vm15 = vcmp.eq.s32.totalorder %v5064_v34, %v5017_v3  ;;  %v5442_v12 = vpop.permute.xlu1 %1721 }
 0x19a   : > { %3675 = vmatprep.mubr.msk.f32.mxu0 %vm493_vm0, %v4379_v9  ;;  %3747 = vmatprep.mubr.msk.f32.mxu1 %vm511_vm1, %v4379_v9  ;;  %vm391_vm0 = vcmp.eq.s32.totalorder %v5126_v41, %v5075_v36  ;;  %7313 = vst [vmem:[#allocation42_spill] sm:$0xff] %v5442_v12  ;;  %vm390_vm1 = vcmp.eq.s32.totalorder %v5129_v21, %v5075_v36 }
 0x19d   : > { %3676 = vmatmul.mubr.msk.f32.gmra.mrb[52].mxu0 %vm492_vm2, %v4379_v9  ;;  %3748 = vmatmul.mubr.msk.f32.gmra.mrb[44].mxu1 %vm510_vm3, %v4379_v9  ;;  %vm395_vm2 = vcmp.eq.s32.totalorder %v5126_v41, %v5086_v23  ;;  %vm394_vm3 = vcmp.eq.s32.totalorder %v5129_v21, %v5086_v23  ;;  %v5455_v3 = vpop.permute.xlu1 %1727 }
 0x19e   : > { %3677 = vmatprep.mubr.msk.f32.mxu0 %vm497_vm4, %v4379_v9  ;;  %3749 = vmatprep.mubr.msk.f32.mxu1 %vm515_vm5, %v4379_v9  ;;  %vm399_vm4 = vcmp.eq.s32.totalorder %v5126_v41, %v4850_v13  ;;  %7314 = vst [vmem:[#allocation43_spill] sm:$0xff] %v5455_v3  ;;  %vm398_vm5 = vcmp.eq.s32.totalorder %v5129_v21, %v4850_v13 }
 0x1a1   : > { %3678 = vmatmul.mubr.msk.f32.gmra.mrb[54].mxu0 %vm496_vm6, %v4379_v9  ;;  %3750 = vmatmul.mubr.msk.f32.gmra.mrb[46].mxu1 %vm514_vm7, %v4379_v9  ;;  %vm403_vm6 = vcmp.eq.s32.totalorder %v5126_v41, %v4875_v11  ;;  %v5464_v60 = vpop.permute.xlu1 %1733  ;;  %vm402_vm7 = vcmp.eq.s32.totalorder %v5129_v21, %v4875_v11 }
 0x1a2   : > { %3679 = vmatprep.mubr.msk.f32.mxu0 %vm501_vm8, %v4379_v9  ;;  %7315 = vst [vmem:[#allocation44_spill] sm:$0xff] %v5464_v60  ;;  %vm407_vm8 = vcmp.eq.s32.totalorder %v5126_v41, %v5101_v39 }
 0x1a5   : > { %3680 = vmatmul.mubr.msk.f32.gmra.mrb[56].mxu0 %vm500_vm9, %v4379_v9  ;;  %vm406_vm9 = vcmp.eq.s32.totalorder %v5129_v21, %v5101_v39  ;;  %v5477_v13 = vpop.permute.xlu1 %1739 }
 0x1a6   : > { %3681 = vmatprep.mubr.msk.f32.mxu0 %vm505_vm10, %v4379_v9  ;;  %vm411_vm10 = vcmp.eq.s32.totalorder %v5126_v41, %v4901_v47  ;;  %7316 = vst [vmem:[#allocation45_spill] sm:$0xff] %v5477_v13 }
 0x1a9   : > { %3682 = vmatmul.mubr.msk.f32.gmra.mrb[58].mxu0 %vm504_vm11, %v4379_v9  ;;  %vm410_vm11 = vcmp.eq.s32.totalorder %v5129_v21, %v4901_v47  ;;  %v5486_v11 = vpop.permute.xlu1 %1745 }
 0x1aa   : > { %3683 = vmatprep.mubr.msk.f32.mxu0 %vm509_vm12, %v4379_v9  ;;  %vm415_vm12 = vcmp.eq.s32.totalorder %v5126_v41, %v5113_v40  ;;  %7317 = vst [vmem:[#allocation46_spill] sm:$0xff] %v5486_v11 }
 0x1ad   : > { %3684 = vmatmul.mubr.msk.f32.gmra.mrb[60].mxu0 %vm508_vm13, %v4379_v9  ;;  %vm414_vm13 = vcmp.eq.s32.totalorder %v5129_v21, %v5113_v40  ;;  %v5497_v47 = vpop.permute.xlu1 %1751 }
 0x1ae   : > { %3685 = vmatprep.mubr.msk.f32.mxu0 %vm513_vm14, %v4379_v9  ;;  %vm419_vm14 = vcmp.eq.s32.totalorder %v5126_v41, %v4921_v0  ;;  %7318 = vst [vmem:[#allocation47_spill] sm:$0xff] %v5497_v47 }
 0x1b1   : > { %3686 = vmatmul.mubr.msk.f32.gmra.mrb[62].mxu0 %vm512_vm15, %v4379_v9  ;;  %vm418_vm15 = vcmp.eq.s32.totalorder %v5129_v21, %v4921_v0  ;;  %v5499_v36 = vpop.permute.xlu1 %1757 }
 0x1b2   : > { %3687 = vmatprep.mubr.msk.f32.mxu0 %vm391_vm0, %v4379_v9  ;;  %7319 = vst [vmem:[#allocation48_spill] sm:$0xff] %v5499_v36  ;;  %vm2961_vm0 = vcmask 1040384  }
 0x1b5   : > { %3688 = vmatmul.mubr.msk.f32.vlgmr.msra.gmra.mrb[0].mxu0 %vm390_vm1, %v4379_v9  ;;  %v5501_v23 = vpop.permute.xlu1 %1763  ;;  %vm4380_vm1 = vmmov 1  }
 0x1b6   : > { %3689 = vmatprep.mubr.msk.f32.mxu0 %vm395_vm2, %v4379_v9  ;;  %7320 = vst [vmem:[#allocation49_spill] sm:$0xff] %v5501_v23  ;;  %vm4137_vm2 = vmpackc.low %vm2961_vm0, %vm4380_vm1  ;;  %vm1800_vm0 = vcmp.eq.s32.totalorder %v5064_v34, %v5422_v31 }
 0x1b9   : > { %3690 = vmatmul.mubr.msk.f32.gmra.mrb[2].mxu0 %vm394_vm3, %v4379_v9  ;;  %v5503_v39 = vpop.permute.xlu1 %1769 }
 0x1ba   : > { %3691 = vmatprep.mubr.msk.f32.mxu0 %vm399_vm4, %v4379_v9  ;;  %7321 = vst [vmem:[#allocation50_spill] sm:$0xff] %v5503_v39 }
 0x1bd   : > { %3692 = vmatmul.mubr.msk.f32.gmra.mrb[4].mxu0 %vm398_vm5, %v4379_v9  ;;  %v5505_v40 = vpop.permute.xlu1 %1775 }
 0x1be   : > { %3693 = vmatprep.mubr.msk.f32.mxu0 %vm403_vm6, %v4379_v9  ;;  %7322 = vst [vmem:[#allocation51_spill] sm:$0xff] %v5505_v40  ;;  %vm2566_vm6 = vcmp.eq.s32.totalorder %v5064_v34, %v5027_v14 }
 0x1c1   : > { %3694 = vmatmul.mubr.msk.f32.gmra.mrb[6].mxu0 %vm402_vm7, %v4379_v9  ;;  %v5507_v44 = vpop.permute.xlu1 %1781  ;;  %vm1383_vm7 = vcmp.eq.s32.totalorder %v5064_v34, %v5025_v20  ;;  %v7447_v20 = vld [vmem:[#allocation20_spill] sm:$0xff] }
 0x1c2   : > { %3695 = vmatprep.mubr.msk.f32.mxu0 %vm407_vm8, %v4379_v9  ;;  %7323 = vst [vmem:[#allocation52_spill] sm:$0xff] %v5507_v44  ;;  %vm1799_vm8 = vcmp.eq.s32.totalorder %v5064_v34, %v5414_v8 }
 0x1c5   : > { %3696 = vmatmul.mubr.msk.f32.gmra.mrb[8].mxu0 %vm406_vm9, %v4379_v9  ;;  %v5509_v41 = vpop.permute.xlu1 %1787  ;;  %vm2864_vm9 = vcmask 596992  }
 0x1c6   : > { %3697 = vmatprep.mubr.msk.f32.mxu0 %vm411_vm10, %v4379_v9  ;;  %7324 = vst [vmem:[#allocation53_spill] sm:$0xff] %v5509_v41  ;;  %vm2183_vm10 = vcmp.eq.s32.totalorder %v5064_v34, %v7447_v20 }
 0x1c9   : > { %3698 = vmatmul.mubr.msk.f32.gmra.mrb[10].mxu0 %vm410_vm11, %v4379_v9  ;;  %v5511_v54 = vpop.permute.xlu1 %1793 }
 0x1ca   : > { %3699 = vmatprep.mubr.msk.f32.mxu0 %vm415_vm12, %v4379_v9  ;;  %7325 = vst [vmem:[#allocation54_spill] sm:$0xff] %v5511_v54 }
 0x1cd   : > { %3700 = vmatmul.mubr.msk.f32.gmra.mrb[12].mxu0 %vm414_vm13, %v4379_v9  ;;  %v5513_v63 = vpop.permute.xlu1 %2087 }
 0x1ce   : > { %3701 = vmatprep.mubr.msk.f32.mxu0 %vm419_vm14, %v4379_v9  ;;  %vm2182_vm5 = vcmp.eq.s32.totalorder %v5064_v34, %v5513_v63 }
 0x1d1   : > { %3702 = vmatmul.mubr.msk.f32.gmra.mrb[14].mxu0 %vm418_vm15, %v4379_v9  ;;  %v5515_v0 = vpop.permute.xlu1 %2093 }
 0x1d5   : > { %v5517_v9 = vpop.permute.xlu1 %2096 }
 0x1d9   : > { %v5519_v21 = vpop.permute.xlu1 %2102 }
 0x1da   : > { %7326 = vst [vmem:[#allocation55_spill] sm:$0xff] %v5519_v21 }
 0x1dd   : > { %v5521_v49 = vpop.permute.xlu1 %2108 }
 0x1de   : > { %7327 = vst [vmem:[#allocation56_spill] sm:$0xff] %v5521_v49 }
 0x1e1   : > { %v5523_v29 = vpop.permute.xlu1 %2114 }
 0x1e2   : > { %7328 = vst [vmem:[#allocation57_spill] sm:$0xff] %v5523_v29 }
 0x1e5   : > { %v5525_v51 = vpop.permute.xlu1 %2120 }
 0x1e6   : > { %7329 = vst [vmem:[#allocation58_spill] sm:$0xff] %v5525_v51 }
 0x1e9   : > { %v5529_v44 = vpop.permute.xlu1 %2126 }
 0x1ea   : > { %7331 = vst [vmem:[#allocation60_spill] sm:$0xff] %v5529_v44 }
 0x1ed   : > { %v5541_v51 = vpop.permute.xlu1 %2132 }
 0x1ee   : > { %7335 = vst [vmem:[#allocation63_spill] sm:$0xff] %v5541_v51 }
 0x218   : > { %v1167_v19 = vpop.f32.mrb[0].mxu1 }
 0x219   : > { %v1169_v62 = vpop.f32.mrb[1].mxu1 }
 0x21c   : > { %v1172_v25 = vpop.f32.mrb[2].mxu1 }
 0x21d   : > { %v1174_v53 = vpop.f32.mrb[3].mxu1 }
 0x220   : > { %v1177_v50 = vpop.f32.mrb[4].mxu1 }
 0x221   : > { %v1179_v55 = vpop.f32.mrb[5].mxu1 }
 0x224   : > { %v1182_v17 = vpop.f32.mrb[6].mxu1 }
 0x225   : > { %v1184_v4 = vpop.f32.mrb[7].mxu1 }
 0x226   : > { %v7333_v4 = vmov 2  }
 0x228   : > { %v942_v54 = vpop.f32.mrb[16].mxu0  ;;  %v1187_v58 = vpop.f32.mrb[8].mxu1 }
 0x229   : > { %v5527_v46 = vadd.f32 %v1167_v19, %v942_v54  ;;  %v944_v41 = vpop.f32.mrb[17].mxu0  ;;  %v1189_v15 = vpop.f32.mrb[9].mxu1 }
 0x22b   : > { %7330 = vst [vmem:[#allocation59_spill] sm:$0xff] %v5527_v46  ;;  %1927 = vperm.xlu1 %4239, %v5527_v46   ;;  %1520 = vperm.xlu0 %4238, %v5527_v46  }
 0x22c   : > { %v947_v62 = vpop.f32.mrb[18].mxu0  ;;  %v1192_v53 = vpop.f32.mrb[10].mxu1 }
 0x22d   : > { %v5533_v1 = vadd.f32 %v1172_v25, %v947_v62  ;;  %v949_v55 = vpop.f32.mrb[19].mxu0  ;;  %v1194_v40 = vpop.f32.mrb[11].mxu1  ;;  %v7336_v25 = vmov 0  }
 0x22f   : > { %7332 = vst [vmem:[#allocation61_spill] sm:$0xff] %v5533_v1  ;;  %4241 = vset.pattern.permute.xlu1 %v7298_v28  ;;  %4240 = vset.pattern.permute.xlu0 %v7333_v4 }
 0x230   : > { %2695 = vperm.xlu1 %4241, %v5527_v46   ;;  %2311 = vperm.xlu0 %4240, %v5527_v46   ;;  %v952_v15 = vpop.f32.mrb[20].mxu0  ;;  %v1197_v41 = vpop.f32.mrb[12].mxu1 }
 0x231   : > { %v5539_v54 = vadd.f32 %v1177_v50, %v952_v15  ;;  %v954_v19 = vpop.f32.mrb[21].mxu0  ;;  %v1199_v44 = vpop.f32.mrb[13].mxu1 }
 0x233   : > { %7334 = vst [vmem:[#allocation62_spill] sm:$0xff] %v5539_v54 }
 0x234   : > { %4242 = vset.pattern.permute.xlu1 %v7336_v25  ;;  %4243 = vset.pattern.permute.xlu0 %v7303_v42  ;;  %v957_v40 = vpop.f32.mrb[22].mxu0  ;;  %v1202_v62 = vpop.f32.mrb[14].mxu1 }
 0x235   : > { %v5545_v55 = vadd.f32 %v1182_v17, %v957_v40  ;;  %1931 = vperm.xlu0 %4243, %v5533_v1   ;;  %1525 = vperm.xlu1 %4242, %v5533_v1   ;;  %v959_v29 = vpop.f32.mrb[23].mxu0  ;;  %v1204_v49 = vpop.f32.mrb[15].mxu1 }
 0x236   : > { %v5555_v17 = vpop.permute.xlu0 %1287  ;;  %v5557_v40 = vpop.permute.xlu1 %2138 }
 0x237   : > { %7337 = vst [vmem:[#allocation64_spill] sm:$0xff] %v5545_v55  ;;  %7339 = vst [vmem:[#allocation66_spill] sm:$0xff] %v5557_v40  ;;  %vm1382_vm4 = vcmp.eq.s32.totalorder %v5064_v34, %v5555_v17  ;;  %v4362_v17 = vld [vmem:[%s4424_s21 + $0xe0] sm:$0xff] }
 0x238   : > { %v962_v50 = vpop.f32.mrb[24].mxu0  ;;  %v1207_v15 = vpop.f32.mrb[16].mxu1 }
 0x239   : > { %v5549_v19 = vadd.f32 %v1187_v58, %v962_v50  ;;  %4245 = vset.pattern.permute.xlu0 %v7298_v28  ;;  %4244 = vset.pattern.permute.xlu1 %v7333_v4  ;;  %v964_v44 = vpop.f32.mrb[25].mxu0  ;;  %v1209_v51 = vpop.f32.mrb[17].mxu1 }
 0x23a   : > { %2699 = vperm.xlu0 %4245, %v5533_v1   ;;  %2315 = vperm.xlu1 %4244, %v5533_v1   ;;  %v5567_v47 = vpop.permute.xlu0 %1293 }
 0x23b   : > { %7338 = vst [vmem:[#allocation65_spill] sm:$0xff] %v5549_v19  ;;  %vm1384_vm15 = vcmp.eq.s32.totalorder %v5064_v34, %v5567_v47 }
 0x23c   : > { %v967_v29 = vpop.f32.mrb[26].mxu0  ;;  %v1212_v49 = vpop.f32.mrb[18].mxu1 }
 0x23d   : > { %v5559_v39 = vadd.f32 %v1192_v53, %v967_v29  ;;  %v969_v58 = vpop.f32.mrb[27].mxu0  ;;  %v1214_v50 = vpop.f32.mrb[19].mxu1 }
 0x23e   : > { %4246 = vset.pattern.permute.xlu0 %v7336_v25  ;;  %4247 = vset.pattern.permute.xlu1 %v7303_v42  ;;  %v5569_v53 = vpop.permute.xlu1 %2144  ;;  %v5583_v13 = vpop.permute.xlu0 %1299 }
 0x23f   : > { %7340 = vst [vmem:[#allocation67_spill] sm:$0xff] %v5559_v39  ;;  %1935 = vperm.xlu1 %4247, %v5539_v54   ;;  %1530 = vperm.xlu0 %4246, %v5539_v54   ;;  %7342 = vst [vmem:[#allocation69_spill] sm:$0xff] %v5569_v53 }
 0x240   : > { %v972_v51 = vpop.f32.mrb[28].mxu0  ;;  %v1217_v44 = vpop.f32.mrb[20].mxu1 }
 0x241   : > { %v5565_v23 = vadd.f32 %v1197_v41, %v972_v51  ;;  %v974_v36 = vpop.f32.mrb[29].mxu0  ;;  %v1219_v40 = vpop.f32.mrb[21].mxu1 }
 0x243   : > { %7341 = vst [vmem:[#allocation68_spill] sm:$0xff] %v5565_v23  ;;  %4249 = vset.pattern.permute.xlu1 %v7298_v28  ;;  %4248 = vset.pattern.permute.xlu0 %v7333_v4 }
 0x244   : > { %2703 = vperm.xlu1 %4249, %v5539_v54   ;;  %2319 = vperm.xlu0 %4248, %v5539_v54   ;;  %v977_v29 = vpop.f32.mrb[30].mxu0  ;;  %v1222_v58 = vpop.f32.mrb[22].mxu1 }
 0x245   : > { %v5575_v50 = vadd.f32 %v1202_v62, %v977_v29  ;;  %v979_v41 = vpop.f32.mrb[31].mxu0  ;;  %v1224_v51 = vpop.f32.mrb[23].mxu1 }
 0x246   : > { %v5585_v62 = vpop.permute.xlu1 %2150 }
 0x247   : > { %7343 = vst [vmem:[#allocation70_spill] sm:$0xff] %v5575_v50  ;;  %7344 = vst [vmem:[#allocation71_spill] sm:$0xff] %v5585_v62 }
 0x248   : > { %4250 = vset.pattern.permute.xlu1 %v7336_v25  ;;  %4251 = vset.pattern.permute.xlu0 %v7303_v42  ;;  %v982_v36 = vpop.f32.mrb[32].mxu0  ;;  %v1227_v40 = vpop.f32.mrb[24].mxu1 }
 0x249   : > { %v5579_v53 = vadd.f32 %v1207_v15, %v982_v36  ;;  %1939 = vperm.xlu0 %4251, %v5545_v55   ;;  %1535 = vperm.xlu1 %4250, %v5545_v55   ;;  %v984_v11 = vpop.f32.mrb[33].mxu0  ;;  %v1229_v21 = vpop.f32.mrb[25].mxu1 }
 0x24c   : > { %v987_v29 = vpop.f32.mrb[34].mxu0  ;;  %v1232_v41 = vpop.f32.mrb[26].mxu1 }
 0x24d   : > { %v5587_v51 = vadd.f32 %v1212_v49, %v987_v29  ;;  %4253 = vset.pattern.permute.xlu0 %v7298_v28  ;;  %4252 = vset.pattern.permute.xlu1 %v7333_v4  ;;  %v989_v15 = vpop.f32.mrb[35].mxu0  ;;  %v1234_v36 = vpop.f32.mrb[27].mxu1 }
 0x24e   : > { %2707 = vperm.xlu0 %4253, %v5545_v55   ;;  %2323 = vperm.xlu1 %4252, %v5545_v55   ;;  %v5597_v49 = vpop.permute.xlu0 %1305  ;;  %v5599_v29 = vpop.permute.xlu1 %2156 }
 0x24f   : > { %7345 = vst [vmem:[#allocation72_spill] sm:$0xff] %v5597_v49  ;;  %7346 = vst [vmem:[#allocation73_spill] sm:$0xff] %v5599_v29 }
 0x250   : > { %v992_v11 = vpop.f32.mrb[36].mxu0  ;;  %v1237_v21 = vpop.f32.mrb[28].mxu1 }
 0x251   : > { %v5593_v60 = vadd.f32 %v1217_v44, %v992_v11  ;;  %v994_v3 = vpop.f32.mrb[37].mxu0  ;;  %v1239_v62 = vpop.f32.mrb[29].mxu1 }
 0x252   : > { %4254 = vset.pattern.permute.xlu0 %v7336_v25  ;;  %4255 = vset.pattern.permute.xlu1 %v7303_v42  ;;  %v5611_v56 = vpop.permute.xlu0 %1311 }
 0x253   : > { %1943 = vperm.xlu1 %4255, %v5549_v19   ;;  %1540 = vperm.xlu0 %4254, %v5549_v19   ;;  %7347 = vst [vmem:[#allocation74_spill] sm:$0xff] %v5611_v56 }
 0x254   : > { %v997_v15 = vpop.f32.mrb[38].mxu0  ;;  %v1242_v36 = vpop.f32.mrb[30].mxu1 }
 0x255   : > { %v5603_v12 = vadd.f32 %v1222_v58, %v997_v15  ;;  %v999_v44 = vpop.f32.mrb[39].mxu0  ;;  %v1244_v11 = vpop.f32.mrb[31].mxu1 }
 0x256   : > { %v5613_v58 = vpop.permute.xlu1 %2162 }
 0x257   : > { %4257 = vset.pattern.permute.xlu1 %v7298_v28  ;;  %4256 = vset.pattern.permute.xlu0 %v7333_v4  ;;  %7348 = vst [vmem:[#allocation75_spill] sm:$0xff] %v5613_v58 }
 0x258   : > { %2711 = vperm.xlu1 %4257, %v5549_v19   ;;  %2327 = vperm.xlu0 %4256, %v5549_v19   ;;  %v1002_v3 = vpop.f32.mrb[40].mxu0  ;;  %v1247_v62 = vpop.f32.mrb[32].mxu1 }
 0x259   : > { %v5609_v29 = vadd.f32 %v1227_v40, %v1002_v3  ;;  %v1004_v49 = vpop.f32.mrb[41].mxu0  ;;  %v1249_v54 = vpop.f32.mrb[33].mxu1 }
 0x25c   : > { %4258 = vset.pattern.permute.xlu1 %v7336_v25  ;;  %4259 = vset.pattern.permute.xlu0 %v7303_v42  ;;  %v1007_v15 = vpop.f32.mrb[42].mxu0  ;;  %v1252_v44 = vpop.f32.mrb[34].mxu1 }
 0x25d   : > { %v5617_v11 = vadd.f32 %v1232_v41, %v1007_v15  ;;  %1947 = vperm.xlu0 %4259, %v5559_v39   ;;  %1545 = vperm.xlu1 %4258, %v5559_v39   ;;  %v1009_v40 = vpop.f32.mrb[43].mxu0  ;;  %v1254_v3 = vpop.f32.mrb[35].mxu1 }
 0x25e   : > { %v5627_v41 = vpop.permute.xlu0 %1317  ;;  %v5629_v15 = vpop.permute.xlu1 %2168 }
 0x25f   : > { %7349 = vst [vmem:[#allocation76_spill] sm:$0xff] %v5627_v41  ;;  %7350 = vst [vmem:[#allocation77_spill] sm:$0xff] %v5629_v15 }
 0x260   : > { %v1012_v49 = vpop.f32.mrb[44].mxu0  ;;  %v1257_v54 = vpop.f32.mrb[36].mxu1 }
 0x261   : > { %v5621_v19 = vadd.f32 %v1237_v21, %v1012_v49  ;;  %4261 = vset.pattern.permute.xlu0 %v7298_v28  ;;  %4260 = vset.pattern.permute.xlu1 %v7333_v4  ;;  %v1014_v58 = vpop.f32.mrb[45].mxu0  ;;  %v1259_v56 = vpop.f32.mrb[37].mxu1 }
 0x262   : > { %2715 = vperm.xlu0 %4261, %v5559_v39   ;;  %2331 = vperm.xlu1 %4260, %v5559_v39   ;;  %v5639_v55 = vpop.permute.xlu0 %1323 }
 0x263   : > { %7351 = vst [vmem:[#allocation78_spill] sm:$0xff] %v5639_v55 }
 0x264   : > { %v1017_v40 = vpop.f32.mrb[46].mxu0  ;;  %v1262_v3 = vpop.f32.mrb[38].mxu1 }
 0x265   : > { %v5631_v52 = vadd.f32 %v1242_v36, %v1017_v40  ;;  %v1019_v21 = vpop.f32.mrb[47].mxu0  ;;  %v1264_v49 = vpop.f32.mrb[39].mxu1 }
 0x266   : > { %4262 = vset.pattern.permute.xlu0 %v7336_v25  ;;  %4263 = vset.pattern.permute.xlu1 %v7303_v42  ;;  %v5641_v36 = vpop.permute.xlu1 %2174 }
 0x267   : > { %1951 = vperm.xlu1 %4263, %v5565_v23   ;;  %1550 = vperm.xlu0 %4262, %v5565_v23   ;;  %7352 = vst [vmem:[#allocation79_spill] sm:$0xff] %v5641_v36 }
 0x268   : > { %v1022_v56 = vpop.f32.mrb[48].mxu0  ;;  %v1267_v58 = vpop.f32.mrb[40].mxu1 }
 0x269   : > { %v5637_v39 = vadd.f32 %v1247_v62, %v1022_v56  ;;  %v1024_v41 = vpop.f32.mrb[49].mxu0  ;;  %v1269_v15 = vpop.f32.mrb[41].mxu1 }
 0x26a   : > { %v5655_v32 = vpop.permute.xlu1 %2180 }
 0x26b   : > { %4265 = vset.pattern.permute.xlu1 %v7298_v28  ;;  %4264 = vset.pattern.permute.xlu0 %v7333_v4  ;;  %7353 = vst [vmem:[#allocation80_spill] sm:$0xff] %v5655_v32 }
 0x26c   : > { %2719 = vperm.xlu1 %4265, %v5565_v23   ;;  %2335 = vperm.xlu0 %4264, %v5565_v23   ;;  %v1027_v40 = vpop.f32.mrb[50].mxu0  ;;  %v1272_v21 = vpop.f32.mrb[42].mxu1 }
 0x26d   : > { %v5647_v49 = vadd.f32 %v1252_v44, %v1027_v40  ;;  %v1029_v62 = vpop.f32.mrb[51].mxu0  ;;  %v1274_v56 = vpop.f32.mrb[43].mxu1 }
 0x26e   : > { %v5657_v44 = vpop.permute.xlu0 %1329  ;;  %v5663_v46 = vpop.permute.xlu1 %2474 }
 0x26f   : > { %7354 = vst [vmem:[#allocation81_spill] sm:$0xff] %v5657_v44  ;;  %vm2567_vm11 = vcmp.eq.s32.totalorder %v5064_v34, %v5663_v46 }
 0x270   : > { %4266 = vset.pattern.permute.xlu1 %v7336_v25  ;;  %4267 = vset.pattern.permute.xlu0 %v7303_v42  ;;  %v1032_v41 = vpop.f32.mrb[52].mxu0  ;;  %v1277_v15 = vpop.f32.mrb[44].mxu1 }
 0x271   : > { %v5651_v36 = vadd.f32 %v1257_v54, %v1032_v41  ;;  %1955 = vperm.xlu0 %4267, %v5575_v50   ;;  %1555 = vperm.xlu1 %4266, %v5575_v50   ;;  %v1034_v55 = vpop.f32.mrb[53].mxu0  ;;  %v1279_v23 = vpop.f32.mrb[45].mxu1 }
 0x274   : > { %v1037_v40 = vpop.f32.mrb[54].mxu0  ;;  %v1282_v62 = vpop.f32.mrb[46].mxu1 }
 0x275   : > { %v5659_v56 = vadd.f32 %v1262_v3, %v1037_v40  ;;  %4269 = vset.pattern.permute.xlu0 %v7298_v28  ;;  %4268 = vset.pattern.permute.xlu1 %v7333_v4  ;;  %v1039_v54 = vpop.f32.mrb[55].mxu0  ;;  %v1284_v41 = vpop.f32.mrb[47].mxu1 }
 0x276   : > { %2723 = vperm.xlu0 %4269, %v5575_v50   ;;  %2339 = vperm.xlu1 %4268, %v5575_v50   ;;  %v5671_v3 = vpop.permute.xlu0 %1335  ;;  %v5675_v40 = vpop.permute.xlu1 %2477 }
 0x277   : > { %7355 = vst [vmem:[#allocation82_spill] sm:$0xff] %v5659_v56  ;;  %7356 = vst [vmem:[#allocation83_spill] sm:$0xff] %v5671_v3 }
 0x278   : > { %v1042_v23 = vpop.f32.mrb[56].mxu0 }
 0x279   : > { %v5667_v55 = vadd.f32 %v1267_v58, %v1042_v23  ;;  %v1044_v32 = vpop.f32.mrb[57].mxu0 }
 0x27a   : > { %4270 = vset.pattern.permute.xlu0 %v7336_v25  ;;  %4271 = vset.pattern.permute.xlu1 %v7303_v42  ;;  %v5683_v58 = vpop.permute.xlu0 %1341  ;;  %v5687_v50 = vpop.permute.xlu1 %2483 }
 0x27b   : > { %1959 = vperm.xlu1 %4271, %v5579_v53   ;;  %1560 = vperm.xlu0 %4270, %v5579_v53   ;;  %7357 = vst [vmem:[#allocation84_spill] sm:$0xff] %v5683_v58  ;;  %7358 = vst [vmem:[#allocation85_spill] sm:$0xff] %v5687_v50 }
 0x27c   : > { %v1047_v54 = vpop.f32.mrb[58].mxu0 }
 0x27d   : > { %v5677_v41 = vadd.f32 %v1272_v21, %v1047_v54  ;;  %v1049_v44 = vpop.f32.mrb[59].mxu0 }
 0x27e   : > { %v5695_v2 = vpop.permute.xlu0 %1347  ;;  %v5697_v58 = vpop.permute.xlu1 %2489 }
 0x27f   : > { %4273 = vset.pattern.permute.xlu1 %v7336_v25  ;;  %4272 = vset.pattern.permute.xlu0 %v7333_v4  ;;  %7360 = vst [vmem:[#allocation87_spill] sm:$0xff] %v5695_v2  ;;  %7361 = vst [vmem:[#allocation88_spill] sm:$0xff] %v5697_v58 }
 0x280   : > { %2343 = vperm.xlu0 %4272, %v5579_v53   ;;  %1565 = vperm.xlu1 %4273, %v5587_v51   ;;  %v1052_v32 = vpop.f32.mrb[60].mxu0 }
 0x281   : > { %v5685_v23 = vadd.f32 %v1277_v15, %v1052_v32  ;;  %v1054_v3 = vpop.f32.mrb[61].mxu0 }
 0x282   : > { %v5707_v32 = vpop.permute.xlu0 %1353 }
 0x283   : > { %7362 = vst [vmem:[#allocation89_spill] sm:$0xff] %v5707_v32 }
 0x284   : > { %4274 = vset.pattern.permute.xlu0 %v7303_v42  ;;  %4275 = vset.pattern.permute.xlu1 %v7333_v4  ;;  %v1057_v21 = vpop.f32.mrb[62].mxu0 }
 0x285   : > { %v5691_v44 = vadd.f32 %v1282_v62, %v1057_v21  ;;  %1963 = vperm.xlu0 %4274, %v5587_v51   ;;  %2347 = vperm.xlu1 %4275, %v5587_v51   ;;  %v1059_v54 = vpop.f32.mrb[63].mxu0 }
 0x286   : > { %v5709_v54 = vpop.permute.xlu1 %2495  ;;  %v5717_v2 = vpop.permute.xlu0 %1359 }
 0x287   : > { %7359 = vst [vmem:[#allocation86_spill] sm:$0xff] %v5691_v44  ;;  %7363 = vst [vmem:[#allocation90_spill] sm:$0xff] %v5709_v54 }
 0x288   : > { %v5699_v15 = vpop.f32.mrb[0].mxu0  ;;  %7364 = vst [vmem:[#allocation91_spill] sm:$0xff] %v5717_v2 }
 0x289   : > { %4276 = vset.pattern.permute.xlu0 %v7336_v25  ;;  %4277 = vset.pattern.permute.xlu1 %v7303_v42  ;;  %v1129_v3 = vpop.f32.mrb[1].mxu0 }
 0x28a   : > { %1967 = vperm.xlu1 %4277, %v5593_v60   ;;  %1570 = vperm.xlu0 %4276, %v5593_v60   ;;  %v5731_v2 = vpop.permute.xlu0 %1365 }
 0x28b   : > { %7366 = vst [vmem:[#allocation93_spill] sm:$0xff] %v5731_v2 }
 0x28c   : > { %v5705_v62 = vpop.f32.mrb[2].mxu0 }
 0x28d   : > { %v1134_v21 = vpop.f32.mrb[3].mxu0 }
 0x28e   : > { %4279 = vset.pattern.permute.xlu1 %v7336_v25  ;;  %4278 = vset.pattern.permute.xlu0 %v7333_v4  ;;  %v5721_v21 = vpop.permute.xlu1 %2501  ;;  %v5743_v50 = vpop.permute.xlu0 %1371 }
 0x28f   : > { %2351 = vperm.xlu0 %4278, %v5593_v60   ;;  %1575 = vperm.xlu1 %4279, %v5603_v12   ;;  %7365 = vst [vmem:[#allocation92_spill] sm:$0xff] %v5721_v21  ;;  %7368 = vst [vmem:[#allocation95_spill] sm:$0xff] %v5743_v50 }
 0x290   : > { %v5715_v3 = vpop.f32.mrb[4].mxu0 }
 0x291   : > { %v1139_v58 = vpop.f32.mrb[5].mxu0 }
 0x292   : > { %v5735_v18 = vpop.permute.xlu1 %2507  ;;  %v5755_v1 = vpop.permute.xlu0 %1377 }
 0x293   : > { %4280 = vset.pattern.permute.xlu0 %v7303_v42  ;;  %4281 = vset.pattern.permute.xlu1 %v7333_v4  ;;  %7367 = vst [vmem:[#allocation94_spill] sm:$0xff] %v5735_v18  ;;  %7370 = vst [vmem:[#allocation97_spill] sm:$0xff] %v5755_v1 }
 0x294   : > { %1971 = vperm.xlu0 %4280, %v5603_v12   ;;  %2355 = vperm.xlu1 %4281, %v5603_v12   ;;  %v5725_v54 = vpop.f32.mrb[6].mxu0 }
 0x295   : > { %v1144_v32 = vpop.f32.mrb[7].mxu0 }
 0x296   : > { %v5745_v2 = vpop.permute.xlu1 %2513 }
 0x297   : > { %7369 = vst [vmem:[#allocation96_spill] sm:$0xff] %v5745_v2 }
 0x298   : > { %4282 = vset.pattern.permute.xlu0 %v7336_v25  ;;  %4283 = vset.pattern.permute.xlu1 %v7303_v42  ;;  %v5729_v58 = vpop.f32.mrb[8].mxu0 }
 0x299   : > { %1975 = vperm.xlu1 %4283, %v5609_v29   ;;  %1580 = vperm.xlu0 %4282, %v5609_v29   ;;  %v1149_v21 = vpop.f32.mrb[9].mxu0 }
 0x29a   : > { %v5757_v45 = vpop.permute.xlu1 %2519 }
 0x29b   : > { %7371 = vst [vmem:[#allocation98_spill] sm:$0xff] %v5757_v45 }
 0x29c   : > { %v5737_v24 = vpop.f32.mrb[10].mxu0 }
 0x29d   : > { %4285 = vset.pattern.permute.xlu1 %v7336_v25  ;;  %4284 = vset.pattern.permute.xlu0 %v7333_v4  ;;  %v1154_v32 = vpop.f32.mrb[11].mxu0 }
 0x29e   : > { %2359 = vperm.xlu0 %4284, %v5609_v29   ;;  %1585 = vperm.xlu1 %4285, %v5617_v11  }
 0x2a0   : > { %v5747_v27 = vpop.f32.mrb[12].mxu0 }
 0x2a1   : > { %v1159_v21 = vpop.f32.mrb[13].mxu0 }
 0x2a2   : > { %4286 = vset.pattern.permute.xlu0 %v7303_v42  ;;  %4287 = vset.pattern.permute.xlu1 %v7333_v4 }
 0x2a3   : > { %1979 = vperm.xlu0 %4286, %v5617_v11   ;;  %2363 = vperm.xlu1 %4287, %v5617_v11  }
 0x2a4   : > { %v5753_v32 = vpop.f32.mrb[14].mxu0 }
 0x2a5   : > { %v1164_v18 = vpop.f32.mrb[15].mxu0 }
 0x2a7   : > { %4288 = vset.pattern.permute.xlu0 %v7336_v25  ;;  %4289 = vset.pattern.permute.xlu1 %v7303_v42 }
 0x2a8   : > { %1983 = vperm.xlu1 %4289, %v5621_v19   ;;  %1590 = vperm.xlu0 %4288, %v5621_v19  }
 0x2aa   : > { %v5763_v21 = vpop.permute.xlu1 %1927  ;;  %v5765_v50 = vpop.permute.xlu0 %1520 }
 0x2ab   : > { %7372 = vst [vmem:[#allocation99_spill] sm:$0xff] %v5763_v21  ;;  %7373 = vst [vmem:[#allocation100_spill] sm:$0xff] %v5765_v50  ;;  %v2854_v50 = vld [vmem:[%s7178_s2] sm:$0xff] }
 0x2ac   : > { %4291 = vset.pattern.permute.xlu1 %v7336_v25  ;;  %4290 = vset.pattern.permute.xlu0 %v7333_v4 }
 0x2ad   : > { %2367 = vperm.xlu0 %4290, %v5621_v19   ;;  %1595 = vperm.xlu1 %4291, %v5631_v52  }
 0x2af   : > { %v5771_v18 = vpop.permute.xlu1 %2695  ;;  %v5773_v1 = vpop.permute.xlu0 %2311 }
 0x2b0   : > { %7374 = vst [vmem:[#allocation101_spill] sm:$0xff] %v5771_v18  ;;  %7375 = vst [vmem:[#allocation102_spill] sm:$0xff] %v5773_v1 }
 0x2b1   : > { %4292 = vset.pattern.permute.xlu0 %v7303_v42  ;;  %4293 = vset.pattern.permute.xlu1 %v7333_v4 }
 0x2b2   : > { %1987 = vperm.xlu0 %4292, %v5631_v52   ;;  %2371 = vperm.xlu1 %4293, %v5631_v52  }
 0x2b4   : > { %v5779_v45 = vpop.permute.xlu1 %1525  ;;  %v5781_v2 = vpop.permute.xlu0 %1931 }
 0x2b5   : > { %7376 = vst [vmem:[#allocation103_spill] sm:$0xff] %v5779_v45  ;;  %7377 = vst [vmem:[#allocation104_spill] sm:$0xff] %v5781_v2 }
 0x2b6   : > { %4294 = vset.pattern.permute.xlu0 %v7336_v25  ;;  %4295 = vset.pattern.permute.xlu1 %v7303_v42 }
 0x2b7   : > { %1991 = vperm.xlu1 %4295, %v5637_v39   ;;  %1600 = vperm.xlu0 %4294, %v5637_v39  }
 0x2b9   : > { %v5787_v18 = vpop.permute.xlu1 %2315  ;;  %v5789_v1 = vpop.permute.xlu0 %2699 }
 0x2ba   : > { %7378 = vst [vmem:[#allocation105_spill] sm:$0xff] %v5787_v18  ;;  %7379 = vst [vmem:[#allocation106_spill] sm:$0xff] %v5789_v1 }
 0x2bb   : > { %4297 = vset.pattern.permute.xlu1 %v7336_v25  ;;  %4296 = vset.pattern.permute.xlu0 %v7333_v4 }
 0x2bc   : > { %2375 = vperm.xlu0 %4296, %v5637_v39   ;;  %1605 = vperm.xlu1 %4297, %v5647_v49  }
 0x2be   : > { %v5795_v2 = vpop.permute.xlu1 %1935  ;;  %v5797_v45 = vpop.permute.xlu0 %1530 }
 0x2bf   : > { %7380 = vst [vmem:[#allocation107_spill] sm:$0xff] %v5795_v2  ;;  %7381 = vst [vmem:[#allocation108_spill] sm:$0xff] %v5797_v45 }
 0x2c0   : > { %4298 = vset.pattern.permute.xlu0 %v7303_v42  ;;  %4299 = vset.pattern.permute.xlu1 %v7333_v4 }
 0x2c1   : > { %2379 = vperm.xlu1 %4299, %v5647_v49   ;;  %1995 = vperm.xlu0 %4298, %v5647_v49  }
 0x2c3   : > { %v5803_v1 = vpop.permute.xlu1 %2703  ;;  %v5805_v18 = vpop.permute.xlu0 %2319 }
 0x2c4   : > { %7382 = vst [vmem:[#allocation109_spill] sm:$0xff] %v5803_v1  ;;  %7383 = vst [vmem:[#allocation110_spill] sm:$0xff] %v5805_v18 }
 0x2c5   : > { %4301 = vset.pattern.permute.xlu1 %v7303_v42  ;;  %4300 = vset.pattern.permute.xlu0 %v7336_v25 }
 0x2c6   : > { %1999 = vperm.xlu1 %4301, %v5651_v36   ;;  %1610 = vperm.xlu0 %4300, %v5651_v36  }
 0x2c8   : > { %v5811_v45 = vpop.permute.xlu1 %1535  ;;  %v5813_v2 = vpop.permute.xlu0 %1939 }
 0x2c9   : > { %7384 = vst [vmem:[#allocation111_spill] sm:$0xff] %v5811_v45  ;;  %7385 = vst [vmem:[#allocation112_spill] sm:$0xff] %v5813_v2 }
 0x2ca   : > { %4302 = vset.pattern.permute.xlu1 %v7336_v25  ;;  %4303 = vset.pattern.permute.xlu0 %v7303_v42 }
 0x2cb   : > { %1615 = vperm.xlu1 %4302, %v5659_v56   ;;  %2003 = vperm.xlu0 %4303, %v5659_v56  }
 0x2cd   : > { %v5819_v1 = vpop.permute.xlu1 %2323  ;;  %v5821_v18 = vpop.permute.xlu0 %2707 }
 0x2ce   : > { %7386 = vst [vmem:[#allocation113_spill] sm:$0xff] %v5819_v1  ;;  %7387 = vst [vmem:[#allocation114_spill] sm:$0xff] %v5821_v18 }
 0x2cf   : > { %4305 = vset.pattern.permute.xlu1 %v7303_v42  ;;  %4304 = vset.pattern.permute.xlu0 %v7336_v25 }
 0x2d0   : > { %2007 = vperm.xlu1 %4305, %v5667_v55   ;;  %1620 = vperm.xlu0 %4304, %v5667_v55  }
 0x2d2   : > { %v5827_v2 = vpop.permute.xlu1 %1943  ;;  %v5829_v45 = vpop.permute.xlu0 %1540 }
 0x2d3   : > { %7388 = vst [vmem:[#allocation115_spill] sm:$0xff] %v5827_v2  ;;  %7389 = vst [vmem:[#allocation116_spill] sm:$0xff] %v5829_v45 }
 0x2d4   : > { %4306 = vset.pattern.permute.xlu1 %v7336_v25  ;;  %4307 = vset.pattern.permute.xlu0 %v7303_v42 }
 0x2d5   : > { %1625 = vperm.xlu1 %4306, %v5677_v41   ;;  %2011 = vperm.xlu0 %4307, %v5677_v41  }
 0x2d7   : > { %v5835_v18 = vpop.permute.xlu1 %2711  ;;  %v5837_v1 = vpop.permute.xlu0 %2327 }
 0x2d8   : > { %7390 = vst [vmem:[#allocation117_spill] sm:$0xff] %v5835_v18  ;;  %7391 = vst [vmem:[#allocation118_spill] sm:$0xff] %v5837_v1 }
 0x2d9   : > { %4309 = vset.pattern.permute.xlu1 %v7303_v42  ;;  %4308 = vset.pattern.permute.xlu0 %v7336_v25 }
 0x2da   : > { %2015 = vperm.xlu1 %4309, %v5685_v23   ;;  %1630 = vperm.xlu0 %4308, %v5685_v23  }
 0x2dc   : > { %v5843_v45 = vpop.permute.xlu1 %1545  ;;  %v5845_v2 = vpop.permute.xlu0 %1947 }
 0x2dd   : > { %7392 = vst [vmem:[#allocation119_spill] sm:$0xff] %v5843_v45  ;;  %7393 = vst [vmem:[#allocation120_spill] sm:$0xff] %v5845_v2 }
 0x2de   : > { %4310 = vset.pattern.permute.xlu1 %v7336_v25  ;;  %4311 = vset.pattern.permute.xlu0 %v7303_v42 }
 0x2df   : > { %1635 = vperm.xlu1 %4310, %v5691_v44   ;;  %2019 = vperm.xlu0 %4311, %v5691_v44  }
 0x2e1   : > { %v5851_v18 = vpop.permute.xlu1 %2331  ;;  %v5853_v1 = vpop.permute.xlu0 %2715 }
 0x2e2   : > { %7394 = vst [vmem:[#allocation121_spill] sm:$0xff] %v5851_v18  ;;  %7395 = vst [vmem:[#allocation122_spill] sm:$0xff] %v5853_v1  ;;  %v2855_v1 = vld [vmem:[%s7178_s2 + $0x8] sm:$0xff] }
 0x2e3   : > { %4313 = vset.pattern.permute.xlu1 %v7303_v42  ;;  %4312 = vset.pattern.permute.xlu0 %v7336_v25  ;;  %v4120_v18 = vpack.c.bf16 %v2855_v1, %v2854_v50 }
 0x2e4   : > { %1895 = vperm.xlu1 %4313, %v5699_v15   ;;  %1480 = vperm.xlu0 %4312, %v5699_v15  }
 0x2e5   : > { %4121 = vmatprep.subr.bf16.mxu1 %v4120_v18 }
 0x2e6   : > { %v5859_v2 = vpop.permute.xlu1 %1951  ;;  %v5861_v45 = vpop.permute.xlu0 %1550  ;;  %4123 = vmatpush3.bf16.msra.mxu1 %v4120_v18 }
 0x2e7   : > { %7396 = vst [vmem:[#allocation123_spill] sm:$0xff] %v5859_v2  ;;  %7397 = vst [vmem:[#allocation124_spill] sm:$0xff] %v5861_v45  ;;  %v2856_v45 = vld [vmem:[%s7178_s2 + $0x10] sm:$0xff]  ;;  %v2857_v2 = vld [vmem:[%s7178_s2 + $0x18] sm:$0xff] }
 0x2e8   : > { %4315 = vset.pattern.permute.xlu1 %v7298_v28  ;;  %4314 = vset.pattern.permute.xlu0 %v7333_v4  ;;  %v4124_v50 = vpack.c.bf16 %v2857_v2, %v2856_v45  ;;  %v2860_v45 = vld [vmem:[%s7178_s2 + $0x30] sm:$0xff] }
 0x2e9   : > { %2663 = vperm.xlu1 %4315, %v5699_v15   ;;  %2279 = vperm.xlu0 %4314, %v5699_v15  }
 0x2ea   : > { %4125 = vmatprep.subr.bf16.mxu1 %v4124_v50 }
 0x2eb   : > { %v5879_v21 = vpop.permute.xlu1 %2719  ;;  %v5881_v1 = vpop.permute.xlu0 %2335  ;;  %4127 = vmatpush3.bf16.msra.mxu1 %v4124_v50  ;;  %v2862_v50 = vld [vmem:[%s7178_s2 + $0x40] sm:$0xff] }
 0x2ec   : > { %7398 = vst [vmem:[#allocation125_spill] sm:$0xff] %v5879_v21  ;;  %7399 = vst [vmem:[#allocation126_spill] sm:$0xff] %v5881_v1  ;;  %v4128_v21 = vpack.c.bf16 %v2859_v10, %v2858_v59  ;;  %v2861_v1 = vld [vmem:[%s7178_s2 + $0x38] sm:$0xff] }
 0x2ed   : > { %4316 = vset.pattern.permute.xlu1 %v7336_v25  ;;  %4317 = vset.pattern.permute.xlu0 %v7303_v42  ;;  %v4132_v35 = vpack.c.bf16 %v2861_v1, %v2860_v45  ;;  %v2863_v1 = vld [vmem:[%s7178_s2 + $0x48] sm:$0x1] }
 0x2ee   : > { %1485 = vperm.xlu1 %4316, %v5705_v62   ;;  %1899 = vperm.xlu0 %4317, %v5705_v62   ;;  %v4136_v45 = vpack.c.bf16 %v2863_v1, %v2862_v50 }
 0x2ef   : > { %4129 = vmatprep.subr.bf16.mxu1 %v4128_v21 }
 0x2f0   : > { %v5893_v18 = vpop.permute.xlu1 %1555  ;;  %v5895_v2 = vpop.permute.xlu0 %1955  ;;  %4131 = vmatpush3.bf16.msra.mxu1 %v4128_v21 }
 0x2f1   : > { %7400 = vst [vmem:[#allocation127_spill] sm:$0xff] %v5893_v18  ;;  %7401 = vst [vmem:[#allocation128_spill] sm:$0xff] %v5895_v2  ;;  %4133 = vmatprep.subr.bf16.mxu1 %v4132_v35 }
 0x2f2   : > { %4318 = vset.pattern.permute.xlu1 %v7333_v4  ;;  %4319 = vset.pattern.permute.xlu0 %v7298_v28 }
 0x2f3   : > { %2283 = vperm.xlu1 %4318, %v5705_v62   ;;  %2667 = vperm.xlu0 %4319, %v5705_v62  }
 0x2f4   : > { %4135 = vmatpush3.bf16.msra.mxu1 %v4132_v35 }
 0x2f5   : > { %v5907_v10 = vpop.permute.xlu1 %2339  ;;  %v5909_v59 = vpop.permute.xlu0 %2723  ;;  %4138 = vmatprep.subr.msk.bf16.mxu1 %vm4137_vm2, %v4136_v45 }
 0x2f6   : > { %7402 = vst [vmem:[#allocation129_spill] sm:$0xff] %v5907_v10  ;;  %7403 = vst [vmem:[#allocation130_spill] sm:$0xff] %v5909_v59 }
 0x2f7   : > { %4321 = vset.pattern.permute.xlu1 %v7303_v42  ;;  %4320 = vset.pattern.permute.xlu0 %v7336_v25 }
 0x2f8   : > { %1903 = vperm.xlu1 %4321, %v5715_v3   ;;  %1490 = vperm.xlu0 %4320, %v5715_v3  }
 0x2f9   : > { %4141 = vmatpush3.bf16.msk.msra.mxu1 %vm4137_vm2, %v4136_v45 }
 0x2fa   : > { %v5921_v21 = vpop.permute.xlu1 %1959  ;;  %v5923_v59 = vpop.permute.xlu0 %1560 }
 0x2fb   : > { %7404 = vst [vmem:[#allocation131_spill] sm:$0xff] %v5921_v21  ;;  %7405 = vst [vmem:[#allocation132_spill] sm:$0xff] %v5923_v59 }
 0x2fc   : > { %4323 = vset.pattern.permute.xlu1 %v7298_v28  ;;  %4322 = vset.pattern.permute.xlu0 %v7333_v4 }
 0x2fd   : > { %2671 = vperm.xlu1 %4323, %v5715_v3   ;;  %2287 = vperm.xlu0 %4322, %v5715_v3  }
 0x2ff   : > { %v5929_v50 = vpop.permute.xlu1 %1565  ;;  %v5931_v1 = vpop.permute.xlu0 %2343 }
 0x300   : > { %7406 = vst [vmem:[#allocation133_spill] sm:$0xff] %v5929_v50  ;;  %7407 = vst [vmem:[#allocation134_spill] sm:$0xff] %v5931_v1 }
 0x301   : > { %4324 = vset.pattern.permute.xlu1 %v7336_v25  ;;  %4325 = vset.pattern.permute.xlu0 %v7303_v42 }
 0x302   : > { %1495 = vperm.xlu1 %4324, %v5725_v54   ;;  %1907 = vperm.xlu0 %4325, %v5725_v54  }
 0x304   : > { %v5937_v35 = vpop.permute.xlu1 %2347  ;;  %v5939_v59 = vpop.permute.xlu0 %1963 }
 0x305   : > { %7408 = vst [vmem:[#allocation135_spill] sm:$0xff] %v5937_v35  ;;  %7409 = vst [vmem:[#allocation136_spill] sm:$0xff] %v5939_v59  ;;  %v4355_v59 = vld [vmem:[%s4424_s21 + $0xa8] sm:$0xff] }
 0x306   : > { %4326 = vset.pattern.permute.xlu1 %v7333_v4  ;;  %4327 = vset.pattern.permute.xlu0 %v7298_v28 }
 0x307   : > { %2291 = vperm.xlu1 %4326, %v5725_v54   ;;  %2675 = vperm.xlu0 %4327, %v5725_v54  }
 0x309   : > { %v5945_v45 = vpop.permute.xlu1 %1967  ;;  %v5947_v1 = vpop.permute.xlu0 %1570 }
 0x30a   : > { %7410 = vst [vmem:[#allocation137_spill] sm:$0xff] %v5945_v45  ;;  %7411 = vst [vmem:[#allocation138_spill] sm:$0xff] %v5947_v1 }
 0x30b   : > { %4329 = vset.pattern.permute.xlu1 %v7303_v42  ;;  %4328 = vset.pattern.permute.xlu0 %v7336_v25 }
 0x30c   : > { %1911 = vperm.xlu1 %4329, %v5729_v58   ;;  %1500 = vperm.xlu0 %4328, %v5729_v58  }
 0x30e   : > { %v5953_v35 = vpop.permute.xlu1 %1575  ;;  %v5955_v50 = vpop.permute.xlu0 %2351 }
 0x30f   : > { %7412 = vst [vmem:[#allocation139_spill] sm:$0xff] %v5953_v35  ;;  %7413 = vst [vmem:[#allocation140_spill] sm:$0xff] %v5955_v50 }
 0x310   : > { %4331 = vset.pattern.permute.xlu1 %v7298_v28  ;;  %4330 = vset.pattern.permute.xlu0 %v7333_v4 }
 0x311   : > { %2679 = vperm.xlu1 %4331, %v5729_v58   ;;  %2295 = vperm.xlu0 %4330, %v5729_v58  }
 0x313   : > { %v5961_v1 = vpop.permute.xlu1 %2355  ;;  %v5963_v45 = vpop.permute.xlu0 %1971 }
 0x314   : > { %7414 = vst [vmem:[#allocation141_spill] sm:$0xff] %v5961_v1  ;;  %7415 = vst [vmem:[#allocation142_spill] sm:$0xff] %v5963_v45 }
 0x315   : > { %4332 = vset.pattern.permute.xlu1 %v7336_v25  ;;  %4333 = vset.pattern.permute.xlu0 %v7303_v42 }
 0x316   : > { %1505 = vperm.xlu1 %4332, %v5737_v24   ;;  %1915 = vperm.xlu0 %4333, %v5737_v24  }
 0x318   : > { %v5969_v35 = vpop.permute.xlu1 %1975  ;;  %v5971_v50 = vpop.permute.xlu0 %1580 }
 0x319   : > { %7416 = vst [vmem:[#allocation143_spill] sm:$0xff] %v5969_v35  ;;  %7417 = vst [vmem:[#allocation144_spill] sm:$0xff] %v5971_v50 }
 0x31a   : > { %4334 = vset.pattern.permute.xlu1 %v7333_v4  ;;  %4335 = vset.pattern.permute.xlu0 %v7298_v28 }
 0x31b   : > { %2299 = vperm.xlu1 %4334, %v5737_v24   ;;  %2683 = vperm.xlu0 %4335, %v5737_v24  }
 0x31d   : > { %v5977_v1 = vpop.permute.xlu1 %1585  ;;  %v5979_v45 = vpop.permute.xlu0 %2359 }
 0x31e   : > { %7418 = vst [vmem:[#allocation145_spill] sm:$0xff] %v5977_v1  ;;  %7419 = vst [vmem:[#allocation146_spill] sm:$0xff] %v5979_v45 }
 0x31f   : > { %4337 = vset.pattern.permute.xlu1 %v7303_v42  ;;  %4336 = vset.pattern.permute.xlu0 %v7336_v25 }
 0x320   : > { %1919 = vperm.xlu1 %4337, %v5747_v27   ;;  %1510 = vperm.xlu0 %4336, %v5747_v27  }
 0x322   : > { %v5985_v50 = vpop.permute.xlu1 %2363  ;;  %v5987_v35 = vpop.permute.xlu0 %1979 }
 0x323   : > { %7420 = vst [vmem:[#allocation147_spill] sm:$0xff] %v5985_v50  ;;  %7421 = vst [vmem:[#allocation148_spill] sm:$0xff] %v5987_v35 }
 0x324   : > { %4339 = vset.pattern.permute.xlu1 %v7298_v28  ;;  %4338 = vset.pattern.permute.xlu0 %v7333_v4 }
 0x325   : > { %2687 = vperm.xlu1 %4339, %v5747_v27   ;;  %2303 = vperm.xlu0 %4338, %v5747_v27  }
 0x327   : > { %v5993_v1 = vpop.permute.xlu1 %1983  ;;  %v5995_v45 = vpop.permute.xlu0 %1590 }
 0x328   : > { %7422 = vst [vmem:[#allocation149_spill] sm:$0xff] %v5993_v1  ;;  %7423 = vst [vmem:[#allocation150_spill] sm:$0xff] %v5995_v45  ;;  %v4351_v45 = vld [vmem:[%s4424_s21 + $0x88] sm:$0xff]  ;;  %v4352_v1 = vld [vmem:[%s4424_s21 + $0x90] sm:$0xff] }
 0x329   : > { %4340 = vset.pattern.permute.xlu1 %v7336_v25  ;;  %4341 = vset.pattern.permute.xlu0 %v7303_v42 }
 0x32a   : > { %1515 = vperm.xlu1 %4340, %v5753_v32   ;;  %1923 = vperm.xlu0 %4341, %v5753_v32  }
 0x32c   : > { %v6001_v50 = vpop.permute.xlu1 %1595  ;;  %v6003_v35 = vpop.permute.xlu0 %2367 }
 0x32d   : > { %7424 = vst [vmem:[#allocation151_spill] sm:$0xff] %v6001_v50  ;;  %7425 = vst [vmem:[#allocation152_spill] sm:$0xff] %v6003_v35 }
 0x32e   : > { %4342 = vset.pattern.permute.xlu1 %v7333_v4  ;;  %4343 = vset.pattern.permute.xlu0 %v7298_v28 }
 0x32f   : > { %2307 = vperm.xlu1 %4342, %v5753_v32   ;;  %2691 = vperm.xlu0 %4343, %v5753_v32  }
 0x331   : > { %v6009_v25 = vpop.permute.xlu1 %2371  ;;  %v6011_v42 = vpop.permute.xlu0 %1987 }
 0x332   : > { %7426 = vst [vmem:[#allocation153_spill] sm:$0xff] %v6009_v25  ;;  %7427 = vst [vmem:[#allocation154_spill] sm:$0xff] %v6011_v42  ;;  %v4353_v25 = vld [vmem:[%s4424_s21 + $0x98] sm:$0xff] }
 0x333   : > { %4344 = vset.pattern.permute.xlu1 %v7298_v28  ;;  %2522 = vperm.xlu0 %4343, %v4351_v45  }
 0x334   : > { %2727 = vperm.xlu1 %4344, %v5579_v53  }
 0x336   : > { %v6016_v35 = vpop.permute.xlu1 %1991  ;;  %v6018_v50 = vpop.permute.xlu0 %1600 }
 0x337   : > { %7428 = vst [vmem:[#allocation155_spill] sm:$0xff] %v6016_v35  ;;  %7429 = vst [vmem:[#allocation156_spill] sm:$0xff] %v6018_v50  ;;  %2731 = vperm.xlu0 %4343, %v5587_v51   ;;  %v4354_v35 = vld [vmem:[%s4424_s21 + $0xa0] sm:$0xff] }
 0x338   : > { %2525 = vperm.xlu1 %4344, %v4352_v1  }
 0x33b   : > { %v6022_v21 = vpop.permute.xlu1 %1605  ;;  %2528 = vperm.xlu0 %4343, %v4353_v25   ;;  %v6025_v42 = vpop.permute.xlu0 %2375 }
 0x33c   : > { %7430 = vst [vmem:[#allocation157_spill] sm:$0xff] %v6022_v21  ;;  %7431 = vst [vmem:[#allocation158_spill] sm:$0xff] %v6025_v42  ;;  %2735 = vperm.xlu1 %4344, %v5593_v60   ;;  %v4356_v21 = vld [vmem:[%s4424_s21 + $0xb0] sm:$0xff] }
 0x33f   : > { %2739 = vperm.xlu0 %4343, %v5603_v12  }
 0x340   : > { %v6029_v45 = vpop.permute.xlu1 %2379  ;;  %2531 = vperm.xlu1 %4344, %v4354_v35   ;;  %v6032_v50 = vpop.permute.xlu0 %1995  ;;  %v4357_v35 = vld [vmem:[%s4424_s21 + $0xb8] sm:$0xff] }
 0x341   : > { %7432 = vst [vmem:[#allocation159_spill] sm:$0xff] %v6029_v45  ;;  %7433 = vst [vmem:[#allocation160_spill] sm:$0xff] %v6032_v50  ;;  %v4359_v50 = vld [vmem:[%s4424_s21 + $0xc8] sm:$0xff] }
 0x343   : > { %2534 = vperm.xlu0 %4343, %v4355_v59  }
 0x344   : > { %2743 = vperm.xlu1 %4344, %v5609_v29  }
 0x345   : > { %v6036_v1 = vpop.permute.xlu1 %1999  ;;  %v6038_v25 = vpop.permute.xlu0 %1610 }
 0x346   : > { %7434 = vst [vmem:[#allocation161_spill] sm:$0xff] %v6036_v1  ;;  %7435 = vst [vmem:[#allocation162_spill] sm:$0xff] %v6038_v25  ;;  %v4358_v25 = vld [vmem:[%s4424_s21 + $0xc0] sm:$0xff] }
 0x347   : > { %2747 = vperm.xlu0 %4343, %v5617_v11  }
 0x348   : > { %2537 = vperm.xlu1 %4344, %v4356_v21  }
 0x34a   : > { %v6042_v42 = vpop.permute.xlu1 %1615  ;;  %v6044_v45 = vpop.permute.xlu0 %2003 }
 0x34b   : > { %7436 = vst [vmem:[#allocation163_spill] sm:$0xff] %v6042_v42  ;;  %7437 = vst [vmem:[#allocation164_spill] sm:$0xff] %v6044_v45  ;;  %2540 = vperm.xlu0 %4343, %v4357_v35  }
 0x34c   : > { %2751 = vperm.xlu1 %4344, %v5621_v19  }
 0x34f   : > { %v6048_v59 = vpop.permute.xlu1 %2007  ;;  %2755 = vperm.xlu0 %4343, %v5631_v52   ;;  %v6051_v1 = vpop.permute.xlu0 %1620 }
 0x350   : > { %7438 = vst [vmem:[#allocation165_spill] sm:$0xff] %v6048_v59  ;;  %7439 = vst [vmem:[#allocation166_spill] sm:$0xff] %v6051_v1  ;;  %2543 = vperm.xlu1 %4344, %v4358_v25   ;;  %v4360_v25 = vld [vmem:[%s4424_s21 + $0xd0] sm:$0xff]  ;;  %v4361_v59 = vld [vmem:[%s4424_s21 + $0xd8] sm:$0xff] }
 0x353   : > { %2546 = vperm.xlu0 %4343, %v4359_v50  }
 0x354   : > { %v6055_v21 = vpop.permute.xlu1 %1625  ;;  %2759 = vperm.xlu1 %4344, %v5637_v39   ;;  %v6058_v45 = vpop.permute.xlu0 %2011 }
 0x355   : > { %7440 = vst [vmem:[#allocation167_spill] sm:$0xff] %v6055_v21  ;;  %7441 = vst [vmem:[#allocation168_spill] sm:$0xff] %v6058_v45  ;;  %v7446_v45 = vld [vmem:[#allocation2_spill] sm:$0xff] }
 0x356   : > { %vm1798_vm3 = vcmp.eq.s32.totalorder %v5064_v34, %v7446_v45 }
 0x357   : > { %2763 = vperm.xlu0 %4343, %v5647_v49  }
 0x358   : > { %4345 = vset.pattern.permute.xlu1 %v7333_v4 }
 0x359   : > { %v6062_v35 = vpop.permute.xlu1 %2015  ;;  %2383 = vperm.xlu1 %4345, %v5651_v36   ;;  %v6065_v1 = vpop.permute.xlu0 %1630 }
 0x35a   : > { %7442 = vst [vmem:[#allocation169_spill] sm:$0xff] %v6062_v35  ;;  %7443 = vst [vmem:[#allocation170_spill] sm:$0xff] %v6065_v1  ;;  %v7263_v35 = vmov 0.0  }
 0x35b   : > { %2549 = vperm.xlu0 %4343, %v4360_v25   ;;  %v3815_v10 = vsel %vm2182_vm5, 1.0, %v7263_v35  ;;  %v3847_v63 = vsel %vm2566_vm6, 1.0, %v7263_v35 }
 0x35d   : > { %2387 = vperm.xlu1 %4345, %v5659_v56  }
 0x35e   : > { %v6069_v50 = vpop.permute.xlu1 %1635  ;;  %v6071_v21 = vpop.permute.xlu0 %2019 }
 0x35f   : > { %7444 = vst [vmem:[#allocation171_spill] sm:$0xff] %v6069_v50  ;;  %7445 = vst [vmem:[#allocation172_spill] sm:$0xff] %v6071_v21  ;;  %2552 = vperm.xlu0 %4343, %v4361_v59   ;;  %v3783_v21 = vsel %vm1798_vm3, 1.0, %v7263_v35  ;;  %v3751_v59 = vsel %vm1382_vm4, 1.0, %v7263_v35 }
 0x361   : > { %4346 = vset.pattern.permute.xlu1 %v7298_v28 }
 0x362   : > { %2767 = vperm.xlu1 %4346, %v5651_v36  }
 0x363   : > { %v1896_v25 = vpop.permute.xlu1 %1895  ;;  %2771 = vperm.xlu0 %4343, %v5659_v56   ;;  %v1481_v1 = vpop.permute.xlu0 %1480 }
 0x364   : > { %v2022_v45 = vmul.f32 %v3783_v21, %v1896_v25  ;;  %v1638_v50 = vmul.f32 %v3751_v59, %v1481_v1  ;;  %v4363_v21 = vld [vmem:[%s4424_s21 + $0xe8] sm:$0xff] }
 0x366   : > { %4347 = vset.pattern.permute.xlu1 %v7333_v4  ;;  %v2054_v18 = vadd.f32 %v2022_v45, %v1638_v50  ;;  %v7448_v45 = vld [vmem:[#allocation3_spill] sm:$0xff] }
 0x367   : > { %2391 = vperm.xlu1 %4347, %v5667_v55   ;;  %2555 = vperm.xlu0 %4343, %v4362_v17   ;;  %vm1801_vm12 = vcmp.eq.s32.totalorder %v5064_v34, %v7448_v45  ;;  %v4365_v45 = vld [vmem:[%s4424_s21 + $0xf8] sm:$0xff] }
 0x368   : > { %v2664_v42 = vpop.permute.xlu1 %2663  ;;  %v2280_v2 = vpop.permute.xlu0 %2279 }
 0x369   : > { %v2406_v56 = vmul.f32 %v3815_v10, %v2280_v2  ;;  %v2790_v1 = vmul.f32 %v3847_v63, %v2664_v42  ;;  %v3752_v2 = vsel %vm1383_vm7, 1.0, %v7263_v35  ;;  %v3784_v10 = vsel %vm1799_vm8, 1.0, %v7263_v35  ;;  %v7449_v63 = vld [vmem:[#allocation4_spill] sm:$0xff] }
 0x36a   : > { %vm1803_vm13 = vcmp.eq.s32.totalorder %v5064_v34, %v7449_v63  ;;  %v3785_v63 = vsel %vm1800_vm0, 1.0, %v7263_v35  ;;  %vm2184_vm7 = vcmp.eq.s32.totalorder %v5064_v34, %v5515_v0 }
 0x36b   : > { %v2438_v14 = vadd.f32 %v2406_v56, %v2054_v18  ;;  %2395 = vperm.xlu1 %4347, %v5677_v41   ;;  %2558 = vperm.xlu0 %4343, %v4363_v21   ;;  %v3816_v56 = vsel %vm2183_vm10, 1.0, %v7263_v35  ;;  %v4364_v21 = vld [vmem:[%s4424_s21 + $0xf0] sm:$0xff]  ;;  %v6137_v20 = vsel %vm1803_vm13, 1.0, %v7263_v35  ;;  %s4382_s21 = smov 28  }
 0x36d   : > { %v2822_v25 = vadd.f32 %v2790_v1, %v2438_v14  ;;  %v1486_v59 = vpop.permute.xlu1 %1485  ;;  %v1900_v17 = vpop.permute.xlu0 %1899 }
 0x36e   : > { %v1639_v50 = vmul.f32 %v3752_v2, %v1486_v59  ;;  %v2023_v8 = vmul.f32 %v3784_v10, %v1900_v17  ;;  %v3848_v59 = vsel %vm2567_vm11, 1.0, %v7263_v35  ;;  %v7451_v2 = vld [vmem:[#allocation6_spill] sm:$0xff]  ;;  %v7452_v10 = vld [vmem:[#allocation7_spill] sm:$0xff] }
 0x36f   : > { %4348 = vset.pattern.permute.xlu1 %v7298_v28  ;;  %2779 = vperm.xlu0 %4343, %v5677_v41   ;;  %vm1807_vm1 = vcmp.eq.s32.totalorder %v5064_v34, %v7451_v2  ;;  %vm1809_vm2 = vcmp.eq.s32.totalorder %v5064_v34, %v7452_v10  ;;  %v7459_v10 = vld [vmem:[#allocation12_spill] sm:$0xff] }
 0x370   : > { %3976 = vmatprep.mubr.msk.f32.mxu1 %vm2864_vm9, %v2822_v25  ;;  %2775 = vperm.xlu1 %4348, %v5667_v55   ;;  %v2055_v1 = vadd.f32 %v2023_v8, %v1639_v50  ;;  %v7450_v25 = vld [vmem:[#allocation5_spill] sm:$0xff]  ;;  %v7453_v50 = vld [vmem:[#allocation8_spill] sm:$0xff]  ;;  %v6168_v31 = vsel %vm1807_vm1, 1.0, %v7263_v35  ;;  %v6176_v47 = vsel %vm1809_vm2, 1.0, %v7263_v35  ;;  %vm1819_vm8 = vcmp.eq.s32.totalorder %v5064_v34, %v7459_v10 }
 0x371   : > { %vm1805_vm14 = vcmp.eq.s32.totalorder %v5064_v34, %v7450_v25  ;;  %vm1811_vm3 = vcmp.eq.s32.totalorder %v5064_v34, %v7453_v50  ;;  %v7454_v8 = vld [vmem:[#allocation9_spill] sm:$0xff]  ;;  %v7461_v50 = vld [vmem:[#allocation16_spill] sm:$0xff]  ;;  %vm1387_vm1 = vcmp.eq.s32.totalorder %v5064_v34, %v5041_v26 }
 0x372   : > { %v2284_v18 = vpop.permute.xlu1 %2283  ;;  %v2668_v42 = vpop.permute.xlu0 %2667  ;;  %vm1813_vm4 = vcmp.eq.s32.totalorder %v5064_v34, %v7454_v8  ;;  %v6182_v25 = vsel %vm1811_vm3, 1.0, %v7263_v35  ;;  %vm1823_vm11 = vcmp.eq.s32.totalorder %v5064_v34, %v7461_v50  ;;  %v7462_v8 = vld [vmem:[#allocation21_spill] sm:$0xff]  ;;  %vm1389_vm3 = vcmp.eq.s32.totalorder %v5064_v34, %v5050_v30 }
 0x373   : > { %v2407_v14 = vmul.f32 %v3816_v56, %v2284_v18  ;;  %2561 = vperm.xlu0 %4343, %v4364_v21   ;;  %v2791_v17 = vmul.f32 %v3848_v59, %v2668_v42  ;;  %v7455_v56 = vld [vmem:[#allocation10_spill] sm:$0xff]  ;;  %v3753_v21 = vsel %vm1384_vm15, 1.0, %v7263_v35  ;;  %v6160_v59 = vsel %vm1805_vm14, 1.0, %v7263_v35 }
 0x374   : > { %4349 = vset.pattern.permute.xlu1 %v7333_v4  ;;  %v6131_v4 = vsel %vm1801_vm12, 1.0, %v7263_v35  ;;  %vm1815_vm5 = vcmp.eq.s32.totalorder %v5064_v34, %v7455_v56  ;;  %v6188_v2 = vsel %vm1813_vm4, 1.0, %v7263_v35  ;;  %vm2568_vm12 = vcmp.eq.s32.totalorder %v5064_v34, %v5675_v40  ;;  %v7468_v40 = vld [vmem:[#allocation23_spill] sm:$0xff] }
 0x375   : > { %v2439_v46 = vadd.f32 %v2407_v14, %v2055_v1  ;;  %2399 = vperm.xlu1 %4349, %v5685_v23   ;;  %v7456_v14 = vld [vmem:[#allocation11_spill] sm:$0xff]  ;;  %7457 = vst [vmem:[#allocation2_spill] sm:$0xff] %v6188_v2  ;;  %vm2186_vm13 = vcmp.eq.s32.totalorder %v5064_v34, %v7462_v8  ;;  %vm1385_vm14 = vcmp.eq.s32.totalorder %v5064_v34, %v5033_v16  ;;  %v3191_v2 = vmul.f32 0.17677669, %v5705_v62 }
 0x376   : > { %vm1817_vm6 = vcmp.eq.s32.totalorder %v5064_v34, %v7456_v14  ;;  %v6227_v14 = vsel %vm1819_vm8, 1.0, %v7263_v35  ;;  %v3754_v10 = vsel %vm1385_vm14, 1.0, %v7263_v35  ;;  %vm2190_vm0 = vcmp.eq.s32.totalorder %v5064_v34, %v7468_v40 }
 0x377   : > { %v2823_v18 = vadd.f32 %v2791_v17, %v2439_v46  ;;  %v1904_v42 = vpop.permute.xlu1 %1903  ;;  %2564 = vperm.xlu0 %4343, %v4365_v45   ;;  %v1491_v1 = vpop.permute.xlu0 %1490  ;;  %v6213_v56 = vsel %vm1817_vm6, 1.0, %v7263_v35  ;;  %7465 = vst [vmem:[#allocation4_spill] sm:$0xff] %v6227_v14  ;;  %vm2194_vm4 = vcmp.eq.s32.totalorder %v5064_v34, %v4973_v57  ;;  %vm1391_vm6 = vcmp.eq.s32.totalorder %v5064_v34, %v5058_v43 }
 0x378   : > { %v2024_v46 = vmul.f32 %v3785_v63, %v1904_v42  ;;  %v1640_v17 = vmul.f32 %v3753_v21, %v1491_v1  ;;  %v7460_v42 = vld [vmem:[#allocation14_spill] sm:$0xff]  ;;  %7463 = vst [vmem:[#allocation3_spill] sm:$0xff] %v6213_v56  ;;  %v3817_v1 = vsel %vm2184_vm7, 1.0, %v7263_v35  ;;  %vm1393_vm7 = vcmp.eq.s32.totalorder %v5064_v34, %v5068_v33  ;;  %v7530_v56 = vld [vmem:[#allocation69_spill] sm:$0xff] }
 0x379   : > { %2403 = vperm.xlu1 %4349, %v5691_v44   ;;  %3977 = vmatmul.mubr.msk.f32.vlgmr.msra.gmra.mrb[48].mxu1 %vm2864_vm9, %v2823_v18  ;;  %v6194_v18 = vsel %vm1815_vm5, 1.0, %v7263_v35  ;;  %vm1821_vm10 = vcmp.eq.s32.totalorder %v5064_v34, %v7460_v42  ;;  %v7464_v21 = vld [vmem:[#allocation22_spill] sm:$0xff]  ;;  %v6255_v42 = vsel %vm2186_vm13, 1.0, %v7263_v35  ;;  %vm2196_vm5 = vcmp.eq.s32.totalorder %v5064_v34, %v4979_v5 }
 0x37a   : > { %7458 = vst [vmem:[#allocation20_spill] sm:$0xff] %v6194_v18  ;;  %vm2188_vm15 = vcmp.eq.s32.totalorder %v5064_v34, %v7464_v21  ;;  %v2056_v18 = vadd.f32 %v2024_v46, %v1640_v17  ;;  %v6233_v0 = vsel %vm1821_vm10, 1.0, %v7263_v35  ;;  %v6239_v46 = vsel %vm1823_vm11, 1.0, %v7263_v35 }
 0x37b   : > { %2787 = vperm.xlu0 %4343, %v5691_v44   ;;  %7466 = vst [vmem:[#allocation5_spill] sm:$0xff] %v6233_v0  ;;  %7467 = vst [vmem:[#allocation6_spill] sm:$0xff] %v6239_v46  ;;  %v6266_v16 = vsel %vm2188_vm15, 1.0, %v7263_v35  ;;  %vm2185_vm8 = vcmp.eq.s32.totalorder %v5064_v34, %v5517_v9  ;;  %v6291_v43 = vsel %vm1387_vm1, 1.0, %v7263_v35  ;;  %v6310_v26 = vsel %vm1389_vm3, 1.0, %v7263_v35  ;;  %v7503_v46 = vld [vmem:[#allocation46_spill] sm:$0xff] }
 0x37c   : > { %v2672_v45 = vpop.permute.xlu1 %2671  ;;  %v2288_v63 = vpop.permute.xlu0 %2287  ;;  %vm2569_vm10 = vcmp.eq.s32.totalorder %v5064_v34, %v5031_v22  ;;  %vm1395_vm11 = vcmp.eq.s32.totalorder %v5064_v34, %v5082_v37  ;;  %v6317_v21 = vsel %vm1391_vm6, 1.0, %v7263_v35  ;;  %v6330_v30 = vsel %vm2194_vm4, 1.0, %v7263_v35  ;;  %v7507_v0 = vld [vmem:[#allocation49_spill] sm:$0xff] }
 0x37d   : > { %v2408_v44 = vmul.f32 %v3817_v1, %v2288_v63  ;;  %4350 = vset.pattern.permute.xlu1 %v7298_v28  ;;  %v3849_v28 = vsel %vm2568_vm12, 1.0, %v7263_v35  ;;  %v6297_v1 = vsel %vm2190_vm0, 1.0, %v7263_v35  ;;  %v3192_v63 = vmul.f32 0.17677669, %v5715_v3 }
 0x37e   : > { %2783 = vperm.xlu1 %4350, %v5685_v23   ;;  %v2792_v62 = vmul.f32 %v3849_v28, %v2672_v45  ;;  %v3193_v45 = vmul.f32 0.17677669, %v5725_v54  ;;  %v3195_v28 = vmul.f32 0.17677669, %v5737_v24  ;;  %v6324_v3 = vsel %vm1393_vm7, 1.0, %v7263_v35 }
 0x37f   : > { %v2440_v17 = vadd.f32 %v2408_v44, %v2056_v18  ;;  %3256 = vrot.lane.b32.xlu0 %v3191_v2, %s4382_s21  ;;  %v3190_v44 = vmul.f32 0.17677669, %v5699_v15  ;;  %v7469_v2 = vld [vmem:[#allocation24_spill] sm:$0xff]  ;;  %v3818_v24 = vsel %vm2185_vm8, 1.0, %v7263_v35  ;;  %vm2198_vm12 = vcmp.eq.s32.totalorder %v5064_v34, %v4983_v61 }
 0x380   : > { %vm2192_vm2 = vcmp.eq.s32.totalorder %v5064_v34, %v7469_v2  ;;  %vm1397_vm13 = vcmp.eq.s32.totalorder %v5064_v34, %v5099_v38  ;;  %vm1802_vm14 = vcmp.eq.s32.totalorder %v5064_v34, %v5433_v48  ;;  %v6354_v5 = vsel %vm1395_vm11, 1.0, %v7263_v35 }
 0x381   : > { %v2824_v18 = vadd.f32 %v2792_v62, %v2440_v17  ;;  %v1496_v50 = vpop.permute.xlu1 %1495  ;;  %v1908_v8 = vpop.permute.xlu0 %1907  ;;  %v6336_v62 = vsel %vm2196_vm5, 1.0, %v7263_v35  ;;  %v3850_v9 = vsel %vm2569_vm10, 1.0, %v7263_v35  ;;  %v3194_v38 = vmul.f32 0.17677669, %v5729_v58  ;;  %v7470_v58 = vld [vmem:[#allocation25_spill] sm:$0xff] }
 0x382   : > { %3254 = vrot.lane.b32.xlu1 %v3190_v44, %s4382_s21  ;;  %v1641_v15 = vmul.f32 %v3754_v10, %v1496_v50  ;;  %v2025_v54 = vmul.f32 %v6131_v4, %v1908_v8  ;;  %v6303_v4 = vsel %vm2192_vm2, 1.0, %v7263_v35  ;;  %vm1386_vm15 = vcmp.eq.s32.totalorder %v5064_v34, %v5583_v13 }
 0x383   : > { %3260 = vrot.lane.b32.xlu0 %v3193_v45, %s4382_s21  ;;  %3979 = vmatprep.mubr.msk.f32.mxu1 %vm2864_vm9, %v2824_v18  ;;  %v3197_v2 = vmul.f32 0.17677669, %v5753_v32  ;;  %vm2200_vm0 = vcmp.eq.s32.totalorder %v5064_v34, %v4989_v6  ;;  %vm1399_vm1 = vcmp.eq.s32.totalorder %v5064_v34, %v5117_v7  ;;  %v6369_v37 = vsel %vm1397_vm13, 1.0, %v7263_v35  ;;  %v7471_v32 = vld [vmem:[#allocation26_spill] sm:$0xff]  ;;  %v7472_v18 = vld [vmem:[#allocation13_spill] sm:$0xff]  ;;  %v7479_v7 = vld [vmem:[#allocation27_spill] sm:$0xff] }
 0x384   : > { %v2057_v57 = vadd.f32 %v2025_v54, %v1641_v15  ;;  %v6375_v22 = vsel %vm2198_vm12, 1.0, %v7263_v35  ;;  %vm2202_vm2 = vcmp.eq.s32.totalorder %v5064_v34, %v7470_v58  ;;  %vm2204_vm3 = vcmp.eq.s32.totalorder %v5064_v34, %v7471_v32  ;;  %v7473_v15 = vld [vmem:[#allocation15_spill] sm:$0xff] }
 0x385   : > { %vm1401_vm4 = vcmp.eq.s32.totalorder %v5064_v34, %v7472_v18  ;;  %vm1403_vm5 = vcmp.eq.s32.totalorder %v5064_v34, %v7473_v15  ;;  %v3787_v61 = vsel %vm1802_vm14, 1.0, %v7263_v35  ;;  %v3755_v54 = vsel %vm1386_vm15, 1.0, %v7263_v35  ;;  %v7486_v18 = vld [vmem:[#allocation59_spill] sm:$0xff] }
 0x386   : > { %v2292_v33 = vpop.permute.xlu1 %2291  ;;  %3258 = vrot.lane.b32.xlu1 %v3192_v63, %s4382_s21  ;;  %v2676_v17 = vpop.permute.xlu0 %2675  ;;  %v3196_v63 = vmul.f32 0.17677669, %v5747_v27  ;;  %v6408_v13 = vsel %vm1399_vm1, 1.0, %v7263_v35  ;;  %v6411_v27 = vsel %vm1401_vm4, 1.0, %v7263_v35  ;;  %v6417_v6 = vsel %vm2202_vm2, 1.0, %v7263_v35 }
 0x387   : > { %v2409_v10 = vmul.f32 %v3818_v24, %v2292_v33  ;;  %3264 = vrot.lane.b32.xlu0 %v3195_v28, %s4382_s21  ;;  %v2793_v44 = vmul.f32 %v3850_v9, %v2676_v17  ;;  %v6400_v28 = vsel %vm2200_vm0, 1.0, %v7263_v35  ;;  %v7475_v17 = vld [vmem:[#allocation61_spill] sm:$0xff]  ;;  %7476 = vst [vmem:[#allocation8_spill] sm:$0xff] %v6411_v27  ;;  %7477 = vst [vmem:[#allocation9_spill] sm:$0xff] %v6417_v6  ;;  %v7511_v6 = vld [vmem:[#allocation76_spill] sm:$0xff] }
 0x388   : > { %7474 = vst [vmem:[#allocation7_spill] sm:$0xff] %v6400_v28  ;;  %v3199_v48 = vmul.f32 0.17677669, %v7475_v17  ;;  %vm2206_vm6 = vcmp.eq.s32.totalorder %v5064_v34, %v7479_v7  ;;  %v7481_v9 = vld [vmem:[#allocation85_spill] sm:$0xff] }
 0x389   : > { %v2441_v40 = vadd.f32 %v2409_v10, %v2057_v57  ;;  %v6423_v57 = vsel %vm2204_vm3, 1.0, %v7263_v35  ;;  %v7480_v10 = vld [vmem:[#allocation37_spill] sm:$0xff]  ;;  %vm2570_vm8 = vcmp.eq.s32.totalorder %v5064_v34, %v7481_v9 }
 0x38a   : > { %3262 = vrot.lane.b32.xlu1 %v3194_v38, %s4382_s21  ;;  %7478 = vst [vmem:[#allocation10_spill] sm:$0xff] %v6423_v57  ;;  %vm1405_vm7 = vcmp.eq.s32.totalorder %v5064_v34, %v7480_v10  ;;  %v6436_v38 = vsel %vm1403_vm5, 1.0, %v7263_v35  ;;  %v7505_v57 = vld [vmem:[#allocation48_spill] sm:$0xff]  ;;  %v7521_v27 = vld [vmem:[#allocation57_spill] sm:$0xff] }
 0x38b   : > { %v2825_v50 = vadd.f32 %v2793_v44, %v2441_v40  ;;  %v1912_v8 = vpop.permute.xlu1 %1911  ;;  %3268 = vrot.lane.b32.xlu0 %v3197_v2, %s4382_s21  ;;  %v1501_v45 = vpop.permute.xlu0 %1500  ;;  %7482 = vst [vmem:[#allocation11_spill] sm:$0xff] %v6436_v38  ;;  %v7483_v40 = vld [vmem:[#allocation31_spill] sm:$0xff]  ;;  %v7484_v44 = vld [vmem:[#allocation32_spill] sm:$0xff]  ;;  %v7485_v2 = vld [vmem:[#allocation33_spill] sm:$0xff]  ;;  %v6453_v17 = vsel %vm1405_vm7, 1.0, %v7263_v35 }
 0x38c   : > { %v2026_v24 = vmul.f32 %v3787_v61, %v1912_v8  ;;  %v1642_v33 = vmul.f32 %v3755_v54, %v1501_v45  ;;  %vm2571_vm10 = vcmp.eq.s32.totalorder %v5064_v34, %v7483_v40  ;;  %vm2573_vm11 = vcmp.eq.s32.totalorder %v5064_v34, %v7484_v44  ;;  %v7487_v8 = vld [vmem:[#allocation34_spill] sm:$0xff]  ;;  %v7488_v61 = vld [vmem:[#allocation64_spill] sm:$0xff]  ;;  %7490 = vst [vmem:[#allocation12_spill] sm:$0xff] %v6453_v17 }
 0x38d   : > { %3980 = vmatmul.mubr.msk.f32.gmra.mrb[50].mxu1 %vm2864_vm9, %v2825_v50  ;;  %vm2575_vm12 = vcmp.eq.s32.totalorder %v5064_v34, %v7485_v2  ;;  %v3198_v50 = vmul.f32 0.17677669, %v7486_v18  ;;  %vm2577_vm13 = vcmp.eq.s32.totalorder %v5064_v34, %v7487_v8  ;;  %v3201_v54 = vmul.f32 0.17677669, %v7488_v61  ;;  %v7494_v44 = vld [vmem:[#allocation42_spill] sm:$0xff]  ;;  %v7495_v2 = vld [vmem:[#allocation67_spill] sm:$0xff] }
 0x38e   : > { %3266 = vrot.lane.b32.xlu1 %v3196_v63, %s4382_s21  ;;  %v2058_v45 = vadd.f32 %v2026_v24, %v1642_v33  ;;  %v7489_v63 = vld [vmem:[#allocation35_spill] sm:$0xff]  ;;  %v3851_v24 = vsel %vm2570_vm8, 1.0, %v7263_v35  ;;  %v3852_v10 = vsel %vm2571_vm10, 1.0, %v7263_v35  ;;  %v6475_v7 = vsel %vm2573_vm11, 1.0, %v7263_v35  ;;  %v7498_v8 = vld [vmem:[#allocation44_spill] sm:$0xff]  ;;  %v7510_v38 = vld [vmem:[#allocation74_spill] sm:$0xff] }
 0x38f   : > { %3272 = vrot.lane.b32.xlu0 %v3199_v48, %s4382_s21  ;;  %vm2579_vm14 = vcmp.eq.s32.totalorder %v5064_v34, %v7489_v63  ;;  %v6459_v48 = vsel %vm2206_vm6, 1.0, %v7263_v35  ;;  %v6483_v9 = vsel %vm2575_vm12, 1.0, %v7263_v35  ;;  %v6489_v40 = vsel %vm2577_vm13, 1.0, %v7263_v35  ;;  %v7496_v63 = vld [vmem:[#allocation72_spill] sm:$0xff] }
 0x390   : > { %v2680_v58 = vpop.permute.xlu1 %2679  ;;  %v2296_v32 = vpop.permute.xlu0 %2295  ;;  %7491 = vst [vmem:[#allocation14_spill] sm:$0xff] %v6459_v48  ;;  %vm1804_vm0 = vcmp.eq.s32.totalorder %v5064_v34, %v7494_v44  ;;  %vm1388_vm1 = vcmp.eq.s32.totalorder %v5064_v34, %v7496_v63  ;;  %vm1808_vm3 = vcmp.eq.s32.totalorder %v5064_v34, %v7498_v8  ;;  %vm1812_vm6 = vcmp.eq.s32.totalorder %v5064_v34, %v7503_v46 }
 0x391   : > { %v2410_v15 = vmul.f32 %v6255_v42, %v2296_v32  ;;  %v2794_v42 = vmul.f32 %v3851_v24, %v2680_v58  ;;  %v7492_v32 = vld [vmem:[#allocation36_spill] sm:$0xff]  ;;  %v7493_v58 = vld [vmem:[#allocation62_spill] sm:$0xff]  ;;  %v7497_v24 = vld [vmem:[#allocation43_spill] sm:$0xff]  ;;  %vm1816_vm8 = vcmp.eq.s32.totalorder %v5064_v34, %v7505_v57  ;;  %vm1818_vm10 = vcmp.eq.s32.totalorder %v5064_v34, %v7507_v0 }
 0x392   : > { %3270 = vrot.lane.b32.xlu1 %v3198_v50, %s4382_s21  ;;  %vm2581_vm15 = vcmp.eq.s32.totalorder %v5064_v34, %v7492_v32  ;;  %v3200_v18 = vmul.f32 0.17677669, %v7493_v58  ;;  %v6495_v50 = vsel %vm2579_vm14, 1.0, %v7263_v35  ;;  %vm1806_vm2 = vcmp.eq.s32.totalorder %v5064_v34, %v7497_v24  ;;  %v7499_v58 = vld [vmem:[#allocation45_spill] sm:$0xff]  ;;  %v7500_v35 = vld [vmem:[#allocation55_spill] sm:$0xff] }
 0x393   : > { %v2442_v33 = vadd.f32 %v2410_v15, %v2058_v45  ;;  %3276 = vrot.lane.b32.xlu0 %v3201_v54, %s4382_s21  ;;  %v3203_v54 = vmul.f32 0.17677669, %v7495_v2  ;;  %vm1810_vm4 = vcmp.eq.s32.totalorder %v5064_v34, %v7499_v58  ;;  %vm2187_vm5 = vcmp.eq.s32.totalorder %v5064_v34, %v7500_v35  ;;  %v7506_v32 = vld [vmem:[#allocation65_spill] sm:$0xff] }
 0x394   : > { %v3202_v17 = vmul.f32 0.17677669, %v7506_v32  ;;  %vm1390_vm12 = vcmp.eq.s32.totalorder %v5064_v34, %v7510_v38  ;;  %vm1392_vm13 = vcmp.eq.s32.totalorder %v5064_v34, %v7511_v6  ;;  %v7512_v38 = vld [vmem:[#allocation68_spill] sm:$0xff]  ;;  %v3207_v6 = vmul.f32 0.17677669, %v5587_v51 }
 0x395   : > { %v2826_v45 = vadd.f32 %v2794_v42, %v2442_v33  ;;  %v1506_v15 = vpop.permute.xlu1 %1505  ;;  %v1916_v61 = vpop.permute.xlu0 %1915  ;;  %v7501_v42 = vmov 0.0  }
 0x396   : > { %3274 = vrot.lane.b32.xlu1 %v3200_v18, %s4382_s21  ;;  %v6513_v33 = vsel %vm2581_vm15, 1.0, %v7501_v42  ;;  %v1643_v2 = vmul.f32 %v6291_v43, %v1506_v15  ;;  %v2027_v48 = vmul.f32 %v6137_v20, %v1916_v61  ;;  %v7504_v18 = vld [vmem:[#allocation47_spill] sm:$0xff]  ;;  %v7508_v43 = vld [vmem:[#allocation50_spill] sm:$0xff]  ;;  %v6539_v61 = vsel %vm1806_vm2, 1.0, %v7501_v42 }
 0x397   : > { %7502 = vst [vmem:[#allocation16_spill] sm:$0xff] %v6513_v33  ;;  %3280 = vrot.lane.b32.xlu0 %v3203_v54, %s4382_s21  ;;  %3982 = vmatprep.mubr.msk.f32.mxu1 %vm2864_vm9, %v2826_v45  ;;  %vm1814_vm7 = vcmp.eq.s32.totalorder %v5064_v34, %v7504_v18  ;;  %vm1820_vm11 = vcmp.eq.s32.totalorder %v5064_v34, %v7508_v43  ;;  %v7509_v20 = vld [vmem:[#allocation70_spill] sm:$0xff]  ;;  %v3757_v45 = vsel %vm1388_vm1, 1.0, %v7501_v42  ;;  %v6545_v54 = vsel %vm1808_vm3, 1.0, %v7501_v42 }
 0x398   : > { %v3205_v15 = vmul.f32 0.17677669, %v7509_v20  ;;  %v6551_v32 = vsel %vm1810_vm4, 1.0, %v7501_v42  ;;  %v3820_v63 = vsel %vm2187_vm5, 1.0, %v7501_v42  ;;  %v6564_v8 = vsel %vm1812_vm6, 1.0, %v7501_v42 }
 0x399   : > { %v2059_v58 = vadd.f32 %v2027_v48, %v1643_v2  ;;  %v6573_v35 = vsel %vm1814_vm7, 1.0, %v7501_v42  ;;  %v6579_v46 = vsel %vm1816_vm8, 1.0, %v7501_v42  ;;  %v7513_v48 = vld [vmem:[#allocation78_spill] sm:$0xff]  ;;  %v6590_v18 = vsel %vm1818_vm10, 1.0, %v7501_v42 }
 0x39a   : > { %v2300_v24 = vpop.permute.xlu1 %2299  ;;  %3278 = vrot.lane.b32.xlu1 %v3202_v17, %s4382_s21  ;;  %v2684_v20 = vpop.permute.xlu0 %2683  ;;  %v3204_v17 = vmul.f32 0.17677669, %v7512_v38  ;;  %vm1394_vm14 = vcmp.eq.s32.totalorder %v5064_v34, %v7513_v48  ;;  %7514 = vst [vmem:[#allocation21_spill] sm:$0xff] %v6590_v18  ;;  %v6596_v57 = vsel %vm1820_vm11, 1.0, %v7501_v42  ;;  %v3789_v51 = vsel %vm1804_vm0, 1.0, %v7501_v42  ;;  %v7519_v38 = vld [vmem:[#allocation56_spill] sm:$0xff] }
 0x39b   : > { %v2411_v14 = vmul.f32 %v3820_v63, %v2300_v24  ;;  %3284 = vrot.lane.b32.xlu0 %v3205_v15, %s4382_s21  ;;  %v2795_v15 = vmul.f32 %v3852_v10, %v2684_v20  ;;  %v3759_v63 = vsel %vm1390_vm12, 1.0, %v7501_v42  ;;  %7515 = vst [vmem:[#allocation22_spill] sm:$0xff] %v6596_v57  ;;  %v7517_v10 = vld [vmem:[#allocation83_spill] sm:$0xff]  ;;  %v6608_v0 = vsel %vm1392_vm13, 1.0, %v7501_v42  ;;  %v7522_v18 = vld [vmem:[#allocation58_spill] sm:$0xff]  ;;  %v7524_v48 = vld [vmem:[#allocation60_spill] sm:$0xff] }
 0x39c   : > { %vm1398_vm1 = vcmp.eq.s32.totalorder %v5064_v34, %v7517_v10  ;;  %vm2189_vm0 = vcmp.eq.s32.totalorder %v5064_v34, %v7519_v38  ;;  %v6619_v44 = vsel %vm1394_vm14, 1.0, %v7501_v42  ;;  %v7520_v57 = vld [vmem:[#allocation87_spill] sm:$0xff]  ;;  %vm2191_vm4 = vcmp.eq.s32.totalorder %v5064_v34, %v7521_v27 }
 0x39d   : > { %v2443_v2 = vadd.f32 %v2411_v14, %v2059_v58  ;;  %v7516_v14 = vld [vmem:[#allocation81_spill] sm:$0xff]  ;;  %v7518_v58 = vld [vmem:[#allocation84_spill] sm:$0xff]  ;;  %vm1402_vm3 = vcmp.eq.s32.totalorder %v5064_v34, %v7520_v57  ;;  %vm2193_vm5 = vcmp.eq.s32.totalorder %v5064_v34, %v7522_v18  ;;  %vm2195_vm7 = vcmp.eq.s32.totalorder %v5064_v34, %v7524_v48  ;;  %v7527_v10 = vld [vmem:[#allocation63_spill] sm:$0xff] }
 0x39e   : > { %3282 = vrot.lane.b32.xlu1 %v3204_v17, %s4382_s21  ;;  %vm1396_vm15 = vcmp.eq.s32.totalorder %v5064_v34, %v7516_v14  ;;  %vm1400_vm2 = vcmp.eq.s32.totalorder %v5064_v34, %v7518_v58  ;;  %v3206_v17 = vmul.f32 0.17677669, %v5579_v53  ;;  %vm2197_vm10 = vcmp.eq.s32.totalorder %v5064_v34, %v7527_v10 }
 0x39f   : > { %v2827_v24 = vadd.f32 %v2795_v15, %v2443_v2  ;;  %v1920_v43 = vpop.permute.xlu1 %1919  ;;  %3288 = vrot.lane.b32.xlu0 %v3207_v6, %s4382_s21  ;;  %v1511_v20 = vpop.permute.xlu0 %1510  ;;  %v3209_v6 = vmul.f32 0.17677669, %v5603_v12  ;;  %v6634_v53 = vsel %vm1396_vm15, 1.0, %v7501_v42  ;;  %v7523_v12 = vld [vmem:[#allocation89_spill] sm:$0xff]  ;;  %v6653_v14 = vsel %vm1400_vm2, 1.0, %v7501_v42 }
 0x3a0   : > { %v2028_v2 = vmul.f32 %v3789_v51, %v1920_v43  ;;  %v1644_v15 = vmul.f32 %v3757_v45, %v1511_v20  ;;  %v6640_v45 = vsel %vm1398_vm1, 1.0, %v7501_v42  ;;  %vm1404_vm6 = vcmp.eq.s32.totalorder %v5064_v34, %v7523_v12  ;;  %v7525_v51 = vld [vmem:[#allocation88_spill] sm:$0xff]  ;;  %7526 = vst [vmem:[#allocation23_spill] sm:$0xff] %v6653_v14 }
 0x3a1   : > { %3983 = vmatmul.mubr.msk.f32.gmra.mrb[52].mxu1 %vm2864_vm9, %v2827_v24  ;;  %vm2572_vm8 = vcmp.eq.s32.totalorder %v5064_v34, %v7525_v51  ;;  %v7528_v24 = vld [vmem:[#allocation66_spill] sm:$0xff]  ;;  %v6664_v43 = vsel %vm1402_vm3, 1.0, %v7501_v42  ;;  %v3208_v58 = vmul.f32 0.17677669, %v5593_v60  ;;  %vm2201_vm12 = vcmp.eq.s32.totalorder %v5064_v34, %v7530_v56 }
 0x3a2   : > { %3286 = vrot.lane.b32.xlu1 %v3206_v17, %s4382_s21  ;;  %vm2199_vm11 = vcmp.eq.s32.totalorder %v5064_v34, %v7528_v24  ;;  %7529 = vst [vmem:[#allocation24_spill] sm:$0xff] %v6664_v43  ;;  %v3211_v33 = vmul.f32 0.17677669, %v5617_v11  ;;  %v3824_v14 = vsel %vm2191_vm4, 1.0, %v7501_v42  ;;  %v3826_v57 = vsel %vm2193_vm5, 1.0, %v7501_v42 }
 0x3a3   : > { %3292 = vrot.lane.b32.xlu0 %v3209_v6, %s4382_s21  ;;  %v2060_v6 = vadd.f32 %v2028_v2, %v1644_v15  ;;  %v6683_v60 = vsel %vm1404_vm6, 1.0, %v7501_v42  ;;  %v3853_v11 = vsel %vm2572_vm8, 1.0, %v7501_v42  ;;  %v6700_v27 = vsel %vm2197_vm10, 1.0, %v7501_v42  ;;  %v7532_v15 = vld [vmem:[#allocation90_spill] sm:$0xff] }
 0x3a4   : > { %v2688_v20 = vpop.permute.xlu1 %2687  ;;  %v2304_v17 = vpop.permute.xlu0 %2303  ;;  %7531 = vst [vmem:[#allocation25_spill] sm:$0xff] %v6683_v60  ;;  %vm2574_vm13 = vcmp.eq.s32.totalorder %v5064_v34, %v7532_v15  ;;  %v6709_v12 = vsel %vm2199_vm11, 1.0, %v7501_v42  ;;  %v6715_v48 = vsel %vm2201_vm12, 1.0, %v7501_v42  ;;  %v3210_v51 = vmul.f32 0.17677669, %v5609_v29  ;;  %v7538_v15 = vld [vmem:[#allocation103_spill] sm:$0xff] }
 0x3a5   : > { %v2412_v28 = vmul.f32 %v6266_v16, %v2304_v17  ;;  %v6694_v16 = vsel %vm2195_vm7, 1.0, %v7501_v42  ;;  %v2796_v18 = vmul.f32 %v3853_v11, %v2688_v20  ;;  %7533 = vst [vmem:[#allocation26_spill] sm:$0xff] %v6715_v48  ;;  %v3213_v24 = vmul.f32 0.17677669, %v5631_v52  ;;  %v7537_v11 = vld [vmem:[#allocation100_spill] sm:$0xff] }
 0x3a6   : > { %3290 = vrot.lane.b32.xlu1 %v3208_v58, %s4382_s21  ;;  %v7536_v58 = vld [vmem:[#allocation99_spill] sm:$0xff]  ;;  %v1646_v56 = vmul.f32 %v3759_v63, %v7537_v11  ;;  %v1647_v60 = vmul.f32 %v6317_v21, %v7538_v15  ;;  %v7539_v29 = vld [vmem:[#allocation104_spill] sm:$0xff]  ;;  %v3855_v43 = vsel %vm2574_vm13, 1.0, %v7501_v42  ;;  %v3822_v52 = vsel %vm2189_vm0, 1.0, %v7501_v42  ;;  %v7540_v21 = vld [vmem:[#allocation102_spill] sm:$0xff] }
 0x3a7   : > { %v2444_v2 = vadd.f32 %v2412_v28, %v2060_v6  ;;  %3296 = vrot.lane.b32.xlu0 %v3211_v33, %s4382_s21  ;;  %v7534_v28 = vld [vmem:[#allocation92_spill] sm:$0xff]  ;;  %v7535_v33 = vld [vmem:[#allocation94_spill] sm:$0xff]  ;;  %v2030_v6 = vmul.f32 %v6539_v61, %v7536_v58  ;;  %v2031_v48 = vmul.f32 %v6168_v31, %v7539_v29  ;;  %v2414_v31 = vmul.f32 %v6297_v1, %v7540_v21  ;;  %v7541_v63 = vld [vmem:[#allocation105_spill] sm:$0xff] }
 0x3a8   : > { %vm2576_vm14 = vcmp.eq.s32.totalorder %v5064_v34, %v7534_v28  ;;  %vm2578_vm15 = vcmp.eq.s32.totalorder %v5064_v34, %v7535_v33  ;;  %v3215_v38 = vmul.f32 0.17677669, %v5647_v49  ;;  %v3216_v1 = vmul.f32 0.17677669, %v5651_v36  ;;  %v7542_v28 = vld [vmem:[#allocation107_spill] sm:$0xff]  ;;  %v7543_v58 = vld [vmem:[#allocation108_spill] sm:$0xff] }
 0x3a9   : > { %v2828_v10 = vadd.f32 %v2796_v18, %v2444_v2  ;;  %v1516_v20 = vpop.permute.xlu1 %1515  ;;  %v1924_v17 = vpop.permute.xlu0 %1923  ;;  %v3857_v61 = vsel %vm2576_vm14, 1.0, %v7501_v42  ;;  %v1648_v33 = vmul.f32 %v6608_v0, %v7543_v58  ;;  %v7544_v15 = vld [vmem:[#allocation71_spill] sm:$0xff]  ;;  %v7549_v21 = vld [vmem:[#allocation82_spill] sm:$0xff] }
 0x3aa   : > { %3294 = vrot.lane.b32.xlu1 %v3210_v51, %s4382_s21  ;;  %v1645_v18 = vmul.f32 %v6310_v26, %v1516_v20  ;;  %v2029_v2 = vmul.f32 %v6160_v59, %v1924_v17  ;;  %v6750_v59 = vsel %vm2578_vm15, 1.0, %v7501_v42  ;;  %v3212_v26 = vmul.f32 0.17677669, %v5621_v19  ;;  %v7545_v49 = vld [vmem:[#allocation111_spill] sm:$0xff] }
 0x3ab   : > { %3300 = vrot.lane.b32.xlu0 %v3213_v24, %s4382_s21  ;;  %3985 = vmatprep.mubr.msk.f32.mxu1 %vm2864_vm9, %v2828_v10  ;;  %v2415_v51 = vmul.f32 %v3824_v14, %v7541_v63  ;;  %v3214_v10 = vmul.f32 0.17677669, %v5637_v39  ;;  %v2062_v20 = vadd.f32 %v2030_v6, %v1646_v56  ;;  %v2063_v17 = vadd.f32 %v2031_v48, %v1647_v60  ;;  %v7546_v14 = vld [vmem:[#allocation112_spill] sm:$0xff]  ;;  %v7548_v56 = vld [vmem:[#allocation110_spill] sm:$0xff] }
 0x3ac   : > { %v2032_v24 = vmul.f32 %v6545_v54, %v7542_v28  ;;  %vm2203_vm1 = vcmp.eq.s32.totalorder %v5064_v34, %v7544_v15  ;;  %v1649_v39 = vmul.f32 %v6324_v3, %v7545_v49  ;;  %v2033_v36 = vmul.f32 %v6176_v47, %v7546_v14  ;;  %v7547_v54 = vld [vmem:[#allocation101_spill] sm:$0xff]  ;;  %v7550_v63 = vld [vmem:[#allocation96_spill] sm:$0xff] }
 0x3ad   : > { %v2061_v60 = vadd.f32 %v2029_v2, %v1645_v18  ;;  %v2798_v6 = vmul.f32 %v3855_v43, %v7547_v54  ;;  %v2446_v0 = vadd.f32 %v2414_v31, %v2062_v20  ;;  %v2416_v29 = vmul.f32 %v6303_v4, %v7548_v56  ;;  %v7551_v3 = vld [vmem:[#allocation113_spill] sm:$0xff]  ;;  %v7552_v18 = vld [vmem:[#allocation106_spill] sm:$0xff]  ;;  %v7553_v43 = vld [vmem:[#allocation115_spill] sm:$0xff] }
 0x3ae   : > { %3298 = vrot.lane.b32.xlu1 %v3212_v26, %s4382_s21  ;;  %v2308_v11 = vpop.permute.xlu1 %2307  ;;  %v2692_v19 = vpop.permute.xlu0 %2691  ;;  %v3217_v26 = vmul.f32 0.17677669, %v7549_v21  ;;  %vm2580_vm2 = vcmp.eq.s32.totalorder %v5064_v34, %v7550_v63  ;;  %v2447_v28 = vadd.f32 %v2415_v51, %v2063_v17  ;;  %v2417_v58 = vmul.f32 %v3826_v57, %v7551_v3  ;;  %v7555_v51 = vld [vmem:[#allocation98_spill] sm:$0xff]  ;;  %v7556_v17 = vld [vmem:[#allocation119_spill] sm:$0xff]  ;;  %v7565_v3 = vld [vmem:[#allocation128_spill] sm:$0xff] }
 0x3af   : > { %v2413_v48 = vmul.f32 %v3822_v52, %v2308_v11  ;;  %3304 = vrot.lane.b32.xlu0 %v3215_v38, %s4382_s21  ;;  %v2797_v47 = vmul.f32 %v6475_v7, %v2692_v19  ;;  %v2799_v2 = vmul.f32 %v6483_v9, %v7552_v18  ;;  %v2064_v52 = vadd.f32 %v2032_v24, %v1648_v33  ;;  %v7554_v38 = vld [vmem:[#allocation116_spill] sm:$0xff]  ;;  %v7561_v56 = vld [vmem:[#allocation123_spill] sm:$0xff] }
 0x3b0   : > { %v2034_v31 = vmul.f32 %v6551_v32, %v7553_v43  ;;  %v1650_v4 = vmul.f32 %v6619_v44, %v7554_v38  ;;  %vm2582_vm0 = vcmp.eq.s32.totalorder %v5064_v34, %v7555_v51  ;;  %v2065_v57 = vadd.f32 %v2033_v36, %v1649_v39  ;;  %v7557_v11 = vld [vmem:[#allocation120_spill] sm:$0xff]  ;;  %v7559_v39 = vld [vmem:[#allocation109_spill] sm:$0xff]  ;;  %v7586_v51 = vld [vmem:[#allocation7_spill] sm:$0xff] }
 0x3b1   : > { %v2445_v49 = vadd.f32 %v2413_v48, %v2061_v60  ;;  %v1651_v7 = vmul.f32 %v6354_v5, %v7556_v17  ;;  %v2035_v9 = vmul.f32 %v6182_v25, %v7557_v11  ;;  %v2830_v32 = vadd.f32 %v2798_v6, %v2446_v0  ;;  %v7560_v5 = vld [vmem:[#allocation121_spill] sm:$0xff]  ;;  %v7562_v6 = vld [vmem:[#allocation124_spill] sm:$0xff] }
 0x3b2   : > { %3302 = vrot.lane.b32.xlu1 %v3214_v10, %s4382_s21  ;;  %v6784_v20 = vpop.permute.xlu0 %2522  ;;  %v2448_v44 = vadd.f32 %v2416_v29, %v2064_v52  ;;  %v7558_v10 = vld [vmem:[#allocation118_spill] sm:$0xff]  ;;  %v3219_v14 = vmul.f32 0.17677669, %v5677_v41  ;;  %v2831_v60 = vadd.f32 %v2799_v2, %v2447_v28  ;;  %v2800_v36 = vmul.f32 %v3857_v61, %v7559_v39  ;;  %v7569_v43 = vld [vmem:[#allocation129_spill] sm:$0xff]  ;;  %v7571_v38 = vld [vmem:[#allocation20_spill] sm:$0xff] }
 0x3b3   : > { %v2829_v24 = vadd.f32 %v2797_v47, %v2445_v49  ;;  %v6792_v33 = vpop.permute.xlu1 %2727  ;;  %3308 = vrot.lane.b32.xlu0 %v3217_v26, %s4382_s21  ;;  %v2418_v19 = vmul.f32 %v6330_v30, %v7558_v10  ;;  %v2449_v48 = vadd.f32 %v2417_v58, %v2065_v57  ;;  %v2419_v54 = vmul.f32 %v6694_v16, %v7560_v5  ;;  %v7563_v61 = vld [vmem:[#allocation114_spill] sm:$0xff]  ;;  %v7564_v26 = vld [vmem:[#allocation127_spill] sm:$0xff]  ;;  %v7572_v57 = vld [vmem:[#allocation117_spill] sm:$0xff] }
 0x3b4   : > { %v2066_v25 = vadd.f32 %v2034_v31, %v1650_v4  ;;  %v2036_v21 = vmul.f32 %v6564_v8, %v7561_v56  ;;  %v1652_v0 = vmul.f32 %v6634_v53, %v7562_v6  ;;  %v3218_v30 = vmul.f32 0.17677669, %v5667_v55  ;;  %v7566_v8 = vld [vmem:[#allocation2_spill] sm:$0xff]  ;;  %v7576_v10 = vld [vmem:[#allocation133_spill] sm:$0xff] }
 0x3b5   : > { %3986 = vmatmul.mubr.msk.f32.gmra.mrb[54].mxu1 %vm2864_vm9, %v2829_v24  ;;  %v2801_v16 = vmul.f32 %v6489_v40, %v7563_v61  ;;  %v2067_v29 = vadd.f32 %v2035_v9, %v1651_v7  ;;  %v1653_v28 = vmul.f32 %v6369_v37, %v7564_v26  ;;  %v2037_v58 = vmul.f32 %v7566_v8, %v7565_v3  ;;  %v7567_v47 = vld [vmem:[#allocation126_spill] sm:$0xff]  ;;  %v7570_v37 = vld [vmem:[#allocation136_spill] sm:$0xff]  ;;  %v7579_v56 = vld [vmem:[#allocation137_spill] sm:$0xff] }
 0x3b6   : > { %3306 = vrot.lane.b32.xlu1 %v3216_v1, %s4382_s21  ;;  %3988 = vmatprep.mubr.msk.f32.mxu1 %vm2864_vm9, %v2830_v32  ;;  %v6808_v41 = vpop.permute.xlu0 %2731  ;;  %v2832_v53 = vadd.f32 %v2800_v36, %v2448_v44  ;;  %v2450_v1 = vadd.f32 %v2418_v19, %v2066_v25  ;;  %v2420_v18 = vmul.f32 %v6336_v62, %v7567_v47  ;;  %v7568_v55 = vld [vmem:[#allocation86_spill] sm:$0xff]  ;;  %v6836_v62 = vsel %vm2203_vm1, 1.0, %v7501_v42  ;;  %v7574_v32 = vld [vmem:[#allocation131_spill] sm:$0xff]  ;;  %v7575_v44 = vld [vmem:[#allocation132_spill] sm:$0xff] }
 0x3b7   : > { %v6817_v49 = vpop.permute.xlu1 %2525  ;;  %3312 = vrot.lane.b32.xlu0 %v3219_v14, %s4382_s21  ;;  %v3221_v2 = vmul.f32 0.17677669, %v7568_v55  ;;  %v2833_v52 = vadd.f32 %v2801_v16, %v2449_v48  ;;  %v2451_v40 = vadd.f32 %v2419_v54, %v2067_v29  ;;  %v2421_v31 = vmul.f32 %v6700_v27, %v7569_v43  ;;  %v7573_v7 = vld [vmem:[#allocation122_spill] sm:$0xff]  ;;  %v7583_v61 = vld [vmem:[#allocation16_spill] sm:$0xff]  ;;  %v7584_v26 = vld [vmem:[#allocation135_spill] sm:$0xff] }
 0x3b8   : > { %v2039_v4 = vmul.f32 %v7571_v38, %v7570_v37  ;;  %v2802_v17 = vmul.f32 %v6750_v59, %v7572_v57  ;;  %v2803_v11 = vmul.f32 %v6495_v50, %v7573_v7  ;;  %v2068_v9 = vadd.f32 %v2036_v21, %v1652_v0  ;;  %v7577_v5 = vld [vmem:[#allocation134_spill] sm:$0xff]  ;;  %v7581_v0 = vld [vmem:[#allocation23_spill] sm:$0xff]  ;;  %v7585_v8 = vld [vmem:[#allocation140_spill] sm:$0xff] }
 0x3b9   : > { %3989 = vmatmul.mubr.msk.f32.gmra.mrb[56].mxu1 %vm2864_vm9, %v2831_v60  ;;  %v2069_v24 = vadd.f32 %v2037_v58, %v1653_v28  ;;  %v2038_v59 = vmul.f32 %v6573_v35, %v7574_v32  ;;  %v1654_v50 = vmul.f32 %v6640_v45, %v7575_v44  ;;  %v1655_v19 = vmul.f32 %v6408_v13, %v7576_v10  ;;  %v7578_v13 = vld [vmem:[#allocation125_spill] sm:$0xff]  ;;  %v7580_v6 = vld [vmem:[#allocation138_spill] sm:$0xff]  ;;  %v7595_v57 = vld [vmem:[#allocation24_spill] sm:$0xff] }
 0x3ba   : > { %3310 = vrot.lane.b32.xlu1 %v3218_v30, %s4382_s21  ;;  %3991 = vmatprep.mubr.msk.f32.mxu1 %vm2864_vm9, %v2832_v53  ;;  %v6840_v27 = vpop.permute.xlu0 %2528  ;;  %v2834_v15 = vadd.f32 %v2802_v17, %v2450_v1  ;;  %v3861_v60 = vsel %vm2580_vm2, 1.0, %v7501_v42  ;;  %v2452_v39 = vadd.f32 %v2420_v18, %v2068_v9  ;;  %v3220_v36 = vmul.f32 0.17677669, %v5685_v23  ;;  %v7582_v30 = vld [vmem:[#allocation130_spill] sm:$0xff]  ;;  %v7587_v1 = vld [vmem:[#allocation51_spill] sm:$0xff]  ;;  %v7591_v43 = vld [vmem:[#allocation73_spill] sm:$0xff] }
 0x3bb   : > { %v2736_v14 = vpop.permute.xlu1 %2735  ;;  %3316 = vrot.lane.b32.xlu0 %v3221_v2, %s4382_s21  ;;  %v2835_v48 = vadd.f32 %v2803_v11, %v2451_v40  ;;  %v2453_v35 = vadd.f32 %v2421_v31, %v2069_v24  ;;  %v2422_v45 = vmul.f32 %v6375_v22, %v7577_v5  ;;  %v2071_v54 = vadd.f32 %v2039_v4, %v1655_v19  ;;  %v7588_v55 = vld [vmem:[#allocation142_spill] sm:$0xff]  ;;  %v7590_v40 = vld [vmem:[#allocation91_spill] sm:$0xff]  ;;  %v7593_v37 = vld [vmem:[#allocation21_spill] sm:$0xff] }
 0x3bc   : > { %v2804_v25 = vmul.f32 %v3861_v60, %v7578_v13  ;;  %v2040_v21 = vmul.f32 %v6579_v46, %v7579_v56  ;;  %v1656_v63 = vmul.f32 %v7581_v0, %v7580_v6  ;;  %v3863_v23 = vsel %vm2582_vm0, 1.0, %v7501_v42  ;;  %v7592_v31 = vld [vmem:[#allocation143_spill] sm:$0xff]  ;;  %v7594_v4 = vld [vmem:[#allocation144_spill] sm:$0xff]  ;;  %v7599_v60 = vld [vmem:[#allocation141_spill] sm:$0xff] }
 0x3bd   : > { %3992 = vmatmul.mubr.msk.f32.gmra.mrb[58].mxu1 %vm2864_vm9, %v2833_v52  ;;  %v2805_v16 = vmul.f32 %v7583_v61, %v7582_v30  ;;  %v2070_v29 = vadd.f32 %v2038_v59, %v1654_v50  ;;  %v2423_v46 = vmul.f32 %v6709_v12, %v7584_v26  ;;  %vm2583_vm3 = vcmp.eq.s32.totalorder %v5064_v34, %v6784_v20  ;;  %v7589_v12 = vld [vmem:[#allocation3_spill] sm:$0xff]  ;;  %v7597_v24 = vld [vmem:[#allocation8_spill] sm:$0xff]  ;;  %v7608_v6 = vld [vmem:[#allocation22_spill] sm:$0xff] }
 0x3be   : > { %3314 = vrot.lane.b32.xlu1 %v3220_v36, %s4382_s21  ;;  %3994 = vmatprep.mubr.msk.f32.mxu1 %vm2864_vm9, %v2834_v15  ;;  %v2740_v22 = vpop.permute.xlu0 %2739  ;;  %v2836_v3 = vadd.f32 %v2804_v25, %v2452_v39  ;;  %v2424_v58 = vmul.f32 %v7586_v51, %v7585_v8  ;;  %v2806_v53 = vmul.f32 %v3863_v23, %v6792_v33  ;;  %v3864_v7 = vsel %vm2583_vm3, 1.0, %v7501_v42  ;;  %v7596_v9 = vld [vmem:[#allocation139_spill] sm:$0xff]  ;;  %v7598_v15 = vld [vmem:[#allocation38_spill] sm:$0xff]  ;;  %v7605_v25 = vld [vmem:[#allocation145_spill] sm:$0xff] }
 0x3bf   : > { %v2532_v28 = vpop.permute.xlu1 %2531  ;;  %vm2584_vm4 = vcmp.eq.s32.totalorder %v5064_v34, %v6817_v49  ;;  %vm1822_vm5 = vcmp.eq.s32.totalorder %v5064_v34, %v7587_v1  ;;  %v2837_v47 = vadd.f32 %v2805_v16, %v2453_v35  ;;  %v2454_v18 = vadd.f32 %v2422_v45, %v2070_v29  ;;  %v7600_v39 = vld [vmem:[#allocation26_spill] sm:$0xff]  ;;  %v7602_v35 = vld [vmem:[#allocation9_spill] sm:$0xff]  ;;  %v7603_v45 = vld [vmem:[#allocation148_spill] sm:$0xff] }
 0x3c0   : > { %v2041_v2 = vmul.f32 %v7589_v12, %v7588_v55  ;;  %v2455_v52 = vadd.f32 %v2423_v46, %v2071_v54  ;;  %vm1406_vm6 = vcmp.eq.s32.totalorder %v5064_v34, %v7590_v40  ;;  %vm2205_vm7 = vcmp.eq.s32.totalorder %v5064_v34, %v7591_v43  ;;  %v7604_v54 = vld [vmem:[#allocation4_spill] sm:$0xff]  ;;  %v7609_v26 = vld [vmem:[#allocation150_spill] sm:$0xff]  ;;  %v7610_v46 = vld [vmem:[#allocation25_spill] sm:$0xff] }
 0x3c1   : > { %3995 = vmatmul.mubr.msk.f32.gmra.mrb[60].mxu1 %vm2864_vm9, %v2835_v48  ;;  %v2072_v33 = vadd.f32 %v2040_v21, %v1656_v63  ;;  %v2042_v38 = vmul.f32 %v7593_v37, %v7592_v31  ;;  %v1658_v17 = vmul.f32 %v7595_v57, %v7594_v4  ;;  %v1657_v32 = vmul.f32 %v7597_v24, %v7596_v9  ;;  %v7601_v48 = vld [vmem:[#allocation146_spill] sm:$0xff]  ;;  %v7607_v21 = vld [vmem:[#allocation149_spill] sm:$0xff]  ;;  %v7613_v55 = vld [vmem:[#allocation147_spill] sm:$0xff] }
 0x3c2   : > { %3997 = vmatprep.mubr.msk.f32.mxu1 %vm2864_vm9, %v2836_v3  ;;  %v2535_v11 = vpop.permute.xlu0 %2534  ;;  %v2807_v59 = vmul.f32 %v3864_v7, %v6808_v41  ;;  %vm2585_vm8 = vcmp.eq.s32.totalorder %v5064_v34, %v6840_v27  ;;  %v3865_v44 = vsel %vm2584_vm4, 1.0, %v7501_v42  ;;  %v2838_v20 = vadd.f32 %v2806_v53, %v2454_v18  ;;  %v7611_v53 = vld [vmem:[#allocation154_spill] sm:$0xff]  ;;  %v7614_v12 = vld [vmem:[#allocation151_spill] sm:$0xff] }
 0x3c3   : > { %v2744_v50 = vpop.permute.xlu1 %2743  ;;  %v2456_v10 = vadd.f32 %v2424_v58, %v2072_v33  ;;  %v2808_v19 = vmul.f32 %v3865_v44, %v2736_v14  ;;  %vm2586_vm10 = vcmp.eq.s32.totalorder %v5064_v34, %v2532_v28  ;;  %vm1407_vm11 = vcmp.eq.s32.totalorder %v5064_v34, %v7598_v15  ;;  %v7606_v14 = vld [vmem:[#allocation11_spill] sm:$0xff]  ;;  %v7616_v33 = vld [vmem:[#allocation152_spill] sm:$0xff]  ;;  %v7617_v31 = vld [vmem:[#allocation10_spill] sm:$0xff] }
 0x3c4   : > { %v2425_v41 = vmul.f32 %v7600_v39, %v7599_v60  ;;  %v2073_v36 = vadd.f32 %v2041_v2, %v1657_v32  ;;  %v2426_v5 = vmul.f32 %v7602_v35, %v7601_v48  ;;  %v2043_v49 = vmul.f32 %v7604_v54, %v7603_v45  ;;  %v7615_v2 = vld [vmem:[#allocation12_spill] sm:$0xff]  ;;  %v7622_v40 = vld [vmem:[#allocation6_spill] sm:$0xff] }
 0x3c5   : > { %3998 = vmatmul.mubr.msk.f32.gmra.mrb[62].mxu1 %vm2864_vm9, %v2837_v47  ;;  %v2074_v13 = vadd.f32 %v2042_v38, %v1658_v17  ;;  %v1659_v56 = vmul.f32 %v7606_v14, %v7605_v25  ;;  %v2044_v0 = vmul.f32 %v7608_v6, %v7607_v21  ;;  %v3866_v63 = vsel %vm2585_vm8, 1.0, %v7501_v42  ;;  %v7612_v47 = vld [vmem:[#allocation5_spill] sm:$0xff]  ;;  %v7619_v60 = vld [vmem:[#allocation156_spill] sm:$0xff]  ;;  %v7623_v25 = vld [vmem:[#allocation158_spill] sm:$0xff] }
 0x3c6   : > { %4000 = vmatprep.mubr.msk.f32.mxu1 %vm2864_vm9, %v2838_v20  ;;  %v2748_v23 = vpop.permute.xlu0 %2747  ;;  %v2839_v30 = vadd.f32 %v2807_v59, %v2455_v52  ;;  %v2809_v61 = vmul.f32 %v3866_v63, %v2740_v22  ;;  %vm2587_vm12 = vcmp.eq.s32.totalorder %v5064_v34, %v2535_v11  ;;  %v3867_v16 = vsel %vm2586_vm10, 1.0, %v7501_v42  ;;  %v7621_v35 = vld [vmem:[#allocation160_spill] sm:$0xff]  ;;  %v7624_v14 = vld [vmem:[#allocation14_spill] sm:$0xff]  ;;  %v7625_v6 = vld [vmem:[#allocation75_spill] sm:$0xff] }
 0x3c7   : > { %v2538_v29 = vpop.permute.xlu1 %2537  ;;  %v1660_v3 = vmul.f32 %v7610_v46, %v7609_v26  ;;  %v2840_v8 = vadd.f32 %v2808_v19, %v2456_v10  ;;  %v2810_v51 = vmul.f32 %v3867_v16, %v2744_v50  ;;  %v2458_v27 = vadd.f32 %v2426_v5, %v2074_v13  ;;  %v7618_v19 = vld [vmem:[#allocation155_spill] sm:$0xff] }
 0x3c8   : > { %vm2588_vm13 = vcmp.eq.s32.totalorder %v5064_v34, %v2538_v29  ;;  %v2075_v58 = vadd.f32 %v2043_v49, %v1659_v56  ;;  %v2045_v18 = vmul.f32 %v7612_v47, %v7611_v53  ;;  %v2457_v22 = vadd.f32 %v2425_v41, %v2073_v36  ;;  %v7620_v36 = vld [vmem:[#allocation153_spill] sm:$0xff] }
 0x3c9   : > { %4001 = vmatmul.mubr.msk.f32.gmra.mrb[64].mxu1 %vm2864_vm9, %v2839_v30  ;;  %v2427_v28 = vmul.f32 %v6836_v62, %v7613_v55  ;;  %v1661_v52 = vmul.f32 %v7615_v2, %v7614_v12  ;;  %v2428_v37 = vmul.f32 %v7617_v31, %v7616_v33  ;;  %v3868_v38 = vsel %vm2587_vm12, 1.0, %v7501_v42  ;;  %v7628_v55 = vld [vmem:[#allocation93_spill] sm:$0xff]  ;;  %v7632_v31 = vld [vmem:[#allocation28_spill] sm:$0xff] }
 0x3ca   : > { %4003 = vmatprep.mubr.msk.f32.mxu1 %vm2864_vm9, %v2840_v8  ;;  %v2541_v4 = vpop.permute.xlu0 %2540  ;;  %v2841_v57 = vadd.f32 %v2809_v61, %v2457_v22  ;;  %v2811_v17 = vmul.f32 %v3868_v38, %v2748_v23  ;;  %v3869_v7 = vsel %vm2588_vm13, 1.0, %v7501_v42  ;;  %v2076_v9 = vadd.f32 %v2044_v0, %v1660_v3  ;;  %v7626_v0 = vld [vmem:[#allocation157_spill] sm:$0xff] }
 0x3cb   : > { %vm2589_vm14 = vcmp.eq.s32.totalorder %v5064_v34, %v2541_v4  ;;  %v2752_v11 = vpop.permute.xlu1 %2751  ;;  %v3807_v62 = vsel %vm1822_vm5, 1.0, %v7501_v42  ;;  %v2842_v24 = vadd.f32 %v2810_v51, %v2458_v27  ;;  %v3838_v59 = vsel %vm2205_vm7, 1.0, %v7501_v42  ;;  %v7627_v51 = vld [vmem:[#allocation159_spill] sm:$0xff]  ;;  %v7630_v2 = vld [vmem:[#allocation17_spill] sm:$0xff] }
 0x3cc   : > { %v2812_v32 = vmul.f32 %v3869_v7, %v2752_v11  ;;  %v2077_v44 = vadd.f32 %v2045_v18, %v1661_v52  ;;  %v3775_v50 = vsel %vm1406_vm6, 1.0, %v7501_v42  ;;  %v2459_v10 = vadd.f32 %v2427_v28, %v2075_v58  ;;  %v7629_v28 = vld [vmem:[#allocation52_spill] sm:$0xff]  ;;  %v7631_v52 = vld [vmem:[#allocation39_spill] sm:$0xff]  ;;  %v7633_v38 = vld [vmem:[#allocation77_spill] sm:$0xff] }
 0x3cd   : > { %4004 = vmatmul.mubr.msk.f32.gmra.mrb[66].mxu1 %vm2864_vm9, %v2841_v57  ;;  %v2460_v20 = vadd.f32 %v2428_v37, %v2076_v9  ;;  %v2046_v1 = vmul.f32 %v3807_v62, %v7618_v19  ;;  %v1662_v39 = vmul.f32 %v3775_v50, %v7619_v60  ;;  %v3870_v43 = vsel %vm2589_vm14, 1.0, %v7501_v42  ;;  %v7635_v11 = vld [vmem:[#allocation162_spill] sm:$0xff]  ;;  %v7637_v50 = vld [vmem:[#allocation164_spill] sm:$0xff] }
 0x3ce   : > { %4006 = vmatprep.mubr.msk.f32.mxu1 %vm2864_vm9, %v2842_v24  ;;  %v2756_v41 = vpop.permute.xlu0 %2755  ;;  %v2429_v48 = vmul.f32 %v3838_v59, %v7620_v36  ;;  %v2047_v5 = vmul.f32 %v7622_v40, %v7621_v35  ;;  %v2843_v45 = vadd.f32 %v2811_v17, %v2459_v10  ;;  %v3776_v13 = vsel %vm1407_vm11, 1.0, %v7501_v42  ;;  %v7634_v17 = vld [vmem:[#allocation161_spill] sm:$0xff]  ;;  %v7636_v59 = vld [vmem:[#allocation163_spill] sm:$0xff] }
 0x3cf   : > { %v2813_v54 = vmul.f32 %v3870_v43, %v2756_v41  ;;  %v2544_v49 = vpop.permute.xlu1 %2543  ;;  %v2430_v56 = vmul.f32 %v7624_v14, %v7623_v25  ;;  %v2844_v21 = vadd.f32 %v2812_v32, %v2460_v20  ;;  %vm2207_vm1 = vcmp.eq.s32.totalorder %v5064_v34, %v7625_v6  ;;  %v7638_v14 = vld [vmem:[#allocation95_spill] sm:$0xff] }
 0x3d0   : > { %vm2590_vm15 = vcmp.eq.s32.totalorder %v5064_v34, %v2544_v49  ;;  %v1663_v63 = vmul.f32 %v3776_v13, %v7626_v0  ;;  %v2461_v23 = vadd.f32 %v2429_v48, %v2077_v44  ;;  %v2078_v30 = vadd.f32 %v2046_v1, %v1662_v39  ;;  %v7640_v0 = vld [vmem:[#allocation18_spill] sm:$0xff] }
 0x3d1   : > { %4007 = vmatmul.mubr.msk.f32.gmra.mrb[68].mxu1 %vm2864_vm9, %v2843_v45  ;;  %v3871_v29 = vsel %vm2590_vm15, 1.0, %v7501_v42  ;;  %v3840_v3 = vsel %vm2207_vm1, 1.0, %v7501_v42  ;;  %vm1408_vm0 = vcmp.eq.s32.totalorder %v5064_v34, %v7628_v55  ;;  %vm1824_vm3 = vcmp.eq.s32.totalorder %v5064_v34, %v7629_v28 }
 0x3d2   : > { %4009 = vmatprep.mubr.msk.f32.mxu1 %vm2864_vm9, %v2844_v21  ;;  %v2547_v61 = vpop.permute.xlu0 %2546  ;;  %v2079_v15 = vadd.f32 %v2047_v5, %v1663_v63  ;;  %v2845_v16 = vadd.f32 %v2813_v54, %v2461_v23  ;;  %v2462_v46 = vadd.f32 %v2430_v56, %v2078_v30  ;;  %v2431_v27 = vmul.f32 %v3840_v3, %v7627_v51  ;;  %v7639_v56 = vld [vmem:[#allocation53_spill] sm:$0xff]  ;;  %v7641_v63 = vld [vmem:[#allocation40_spill] sm:$0xff]  ;;  %v7643_v30 = vld [vmem:[#allocation79_spill] sm:$0xff] }
 0x3d3   : > { %vm2591_vm2 = vcmp.eq.s32.totalorder %v5064_v34, %v2547_v61  ;;  %v2760_v26 = vpop.permute.xlu1 %2759  ;;  %vm1825_vm4 = vcmp.eq.s32.totalorder %v5064_v34, %v7630_v2  ;;  %vm1409_vm5 = vcmp.eq.s32.totalorder %v5064_v34, %v7631_v52  ;;  %vm2208_vm6 = vcmp.eq.s32.totalorder %v5064_v34, %v7632_v31  ;;  %v7642_v23 = vld [vmem:[#allocation29_spill] sm:$0xff] }
 0x3d4   : > { %v2814_v8 = vmul.f32 %v3871_v29, %v2760_v26  ;;  %v3872_v53 = vsel %vm2591_vm2, 1.0, %v7501_v42  ;;  %v2463_v18 = vadd.f32 %v2431_v27, %v2079_v15  ;;  %vm2209_vm7 = vcmp.eq.s32.totalorder %v5064_v34, %v7633_v38  ;;  %v7645_v26 = vld [vmem:[#allocation166_spill] sm:$0xff] }
 0x3d5   : > { %4010 = vmatmul.mubr.msk.f32.gmra.mrb[70].mxu1 %vm2864_vm9, %v2845_v16  ;;  %v3809_v4 = vsel %vm1824_vm3, 1.0, %v7501_v42  ;;  %v3777_v57 = vsel %vm1408_vm0, 1.0, %v7501_v42  ;;  %v3778_v62 = vsel %vm1409_vm5, 1.0, %v7501_v42  ;;  %v3810_v24 = vsel %vm1825_vm4, 1.0, %v7501_v42  ;;  %v7644_v16 = vld [vmem:[#allocation165_spill] sm:$0xff] }
 0x3d6   : > { %v2846_v58 = vadd.f32 %v2814_v8, %v2462_v46  ;;  %v2764_v47 = vpop.permute.xlu0 %2763  ;;  %v2048_v7 = vmul.f32 %v3809_v4, %v7634_v17  ;;  %v1664_v9 = vmul.f32 %v3777_v57, %v7635_v11  ;;  %v1665_v44 = vmul.f32 %v3778_v62, %v7636_v59  ;;  %v7648_v62 = vld [vmem:[#allocation19_spill] sm:$0xff]  ;;  %v7650_v59 = vld [vmem:[#allocation97_spill] sm:$0xff] }
 0x3d7   : > { %v2815_v22 = vmul.f32 %v3872_v53, %v2764_v47  ;;  %v2049_v10 = vmul.f32 %v3810_v24, %v7637_v50  ;;  %v3841_v20 = vsel %vm2208_vm6, 1.0, %v7501_v42  ;;  %v3842_v1 = vsel %vm2209_vm7, 1.0, %v7501_v42  ;;  %v7647_v47 = vld [vmem:[#allocation168_spill] sm:$0xff]  ;;  %v7649_v24 = vld [vmem:[#allocation41_spill] sm:$0xff] }
 0x3d8   : > { %v2384_v12 = vpop.permute.xlu1 %2383  ;;  %4012 = vmatprep.mubr.msk.f32.mxu1 %vm2864_vm9, %v2846_v58  ;;  %v2080_v43 = vadd.f32 %v2048_v7, %v1664_v9  ;;  %vm1410_vm11 = vcmp.eq.s32.totalorder %v5064_v34, %v7638_v14  ;;  %vm1826_vm12 = vcmp.eq.s32.totalorder %v5064_v34, %v7639_v56  ;;  %vm1827_vm13 = vcmp.eq.s32.totalorder %v5064_v34, %v7640_v0  ;;  %v7646_v58 = vld [vmem:[#allocation167_spill] sm:$0xff] }
 0x3d9   : > { %v2847_v33 = vadd.f32 %v2815_v22, %v2463_v18  ;;  %v2432_v19 = vmul.f32 %v3841_v20, %v2384_v12  ;;  %v2081_v41 = vadd.f32 %v2049_v10, %v1665_v44  ;;  %vm1411_vm14 = vcmp.eq.s32.totalorder %v5064_v34, %v7641_v63  ;;  %v7651_v44 = vld [vmem:[#allocation54_spill] sm:$0xff]  ;;  %v7652_v10 = vld [vmem:[#allocation80_spill] sm:$0xff] }
 0x3da   : > { %v2550_v37 = vpop.permute.xlu0 %2549  ;;  %vm2210_vm15 = vcmp.eq.s32.totalorder %v5064_v34, %v7642_v23  ;;  %vm2211_vm1 = vcmp.eq.s32.totalorder %v5064_v34, %v7643_v30  ;;  %v3811_v61 = vsel %vm1826_vm12, 1.0, %v7501_v42  ;;  %v3779_v15 = vsel %vm1410_vm11, 1.0, %v7501_v42  ;;  %v7653_v20 = vld [vmem:[#allocation30_spill] sm:$0xff] }
 0x3db   : > { %4013 = vmatmul.mubr.msk.f32.gmra.mrb[72].mxu1 %vm2864_vm9, %v2847_v33  ;;  %vm2592_vm8 = vcmp.eq.s32.totalorder %v5064_v34, %v2550_v37  ;;  %v2464_v35 = vadd.f32 %v2432_v19, %v2080_v43  ;;  %v2050_v29 = vmul.f32 %v3811_v61, %v7644_v16  ;;  %v1666_v46 = vmul.f32 %v3779_v15, %v7645_v26 }
 0x3dc   : > { %v2388_v32 = vpop.permute.xlu1 %2387  ;;  %v3873_v48 = vsel %vm2592_vm8, 1.0, %v7501_v42  ;;  %v3780_v3 = vsel %vm1411_vm14, 1.0, %v7501_v42  ;;  %v3812_v8 = vsel %vm1827_vm13, 1.0, %v7501_v42  ;;  %v3843_v22 = vsel %vm2210_vm15, 1.0, %v7501_v42 }
 0x3dd   : > { %v2433_v39 = vmul.f32 %v3842_v1, %v2388_v32  ;;  %v1667_v53 = vmul.f32 %v3780_v3, %v7646_v58  ;;  %v2051_v18 = vmul.f32 %v3812_v8, %v7647_v47  ;;  %v3844_v28 = vsel %vm2211_vm1, 1.0, %v7501_v42 }
 0x3de   : > { %v2553_v60 = vpop.permute.xlu0 %2552  ;;  %v2082_v2 = vadd.f32 %v2050_v29, %v1666_v46  ;;  %vm1829_vm3 = vcmp.eq.s32.totalorder %v5064_v34, %v7648_v62  ;;  %vm1413_vm4 = vcmp.eq.s32.totalorder %v5064_v34, %v7649_v24  ;;  %vm1412_vm5 = vcmp.eq.s32.totalorder %v5064_v34, %v7650_v59 }
 0x3df   : > { %vm2593_vm10 = vcmp.eq.s32.totalorder %v5064_v34, %v2553_v60  ;;  %v2465_v54 = vadd.f32 %v2433_v39, %v2081_v41  ;;  %v2083_v31 = vadd.f32 %v2051_v18, %v1667_v53  ;;  %vm1828_vm6 = vcmp.eq.s32.totalorder %v5064_v34, %v7651_v44  ;;  %v7654_v41 = vld [vmem:[#allocation171_spill] sm:$0xff] }
 0x3e0   : > { %v3874_v5 = vsel %vm2593_vm10, 1.0, %v7501_v42  ;;  %vm2213_vm7 = vcmp.eq.s32.totalorder %v5064_v34, %v7652_v10  ;;  %vm2212_vm8 = vcmp.eq.s32.totalorder %v5064_v34, %v7653_v20  ;;  %v3782_v19 = vsel %vm1413_vm4, 1.0, %v7501_v42 }
 0x3e1   : > { %v2768_v36 = vpop.permute.xlu1 %2767  ;;  %v3814_v1 = vsel %vm1829_vm3, 1.0, %v7501_v42  ;;  %v3813_v39 = vsel %vm1828_vm6, 1.0, %v7501_v42  ;;  %v3781_v43 = vsel %vm1412_vm5, 1.0, %v7501_v42  ;;  %vm3350_vm12 = vcmask 228352  }
 0x3e2   : > { %v2816_v40 = vmul.f32 %v3873_v48, %v2768_v36  ;;  %v2772_v45 = vpop.permute.xlu0 %2771  ;;  %v1669_v36 = vmul.f32 %v3782_v19, %v7654_v41  ;;  %v7655_v48 = vld [vmem:[#allocation172_spill] sm:$0xff]  ;;  %vm3383_vm13 = vcmask 261120  }
 0x3e3   : > { %v2817_v49 = vmul.f32 %v3874_v5, %v2772_v45  ;;  %v7657_v45 = vld [vmem:[#allocation170_spill] sm:$0xff] }
 0x3e4   : > { %v2848_v13 = vadd.f32 %v2816_v40, %v2464_v35  ;;  %v2053_v35 = vmul.f32 %v3814_v1, %v7655_v48  ;;  %v7656_v40 = vld [vmem:[#allocation169_spill] sm:$0xff] }
 0x3e5   : > { %v2849_v25 = vadd.f32 %v2817_v49, %v2465_v54  ;;  %v2052_v5 = vmul.f32 %v3813_v39, %v7656_v40  ;;  %v1668_v54 = vmul.f32 %v3781_v43, %v7657_v45  ;;  %v3846_v49 = vsel %vm2213_vm7, 1.0, %v7501_v42 }
 0x3e6   : > { %v2392_v21 = vpop.permute.xlu1 %2391  ;;  %4015 = vmatprep.mubr.msk.f32.mxu1 %vm2864_vm9, %v2848_v13  ;;  %v2556_v6 = vpop.permute.xlu0 %2555 }
 0x3e7   : > { %4016 = vmatmul.mubr.msk.f32.gmra.mrb[74].mxu1 %vm2864_vm9, %v2849_v25  ;;  %v2434_v55 = vmul.f32 %v3843_v22, %v2392_v21  ;;  %vm2594_vm0 = vcmp.eq.s32.totalorder %v5064_v34, %v2556_v6  ;;  %v3845_v25 = vsel %vm2212_vm8, 1.0, %v7501_v42  ;;  %v2085_v6 = vadd.f32 %v2053_v35, %v1669_v36 }
 0x3e8   : > { %v3875_v4 = vsel %vm2594_vm0, 1.0, %v7501_v42  ;;  %v2084_v0 = vadd.f32 %v2052_v5, %v1668_v54 }
 0x3e9   : > { %v2466_v57 = vadd.f32 %v2434_v55, %v2082_v2 }
 0x3ea   : > { %v2396_v51 = vpop.permute.xlu1 %2395  ;;  %v2559_v27 = vpop.permute.xlu0 %2558 }
 0x3eb   : > { %vm2595_vm2 = vcmp.eq.s32.totalorder %v5064_v34, %v2559_v27  ;;  %v2435_v12 = vmul.f32 %v3844_v28, %v2396_v51 }
 0x3ec   : > { %v3876_v52 = vsel %vm2595_vm2, 1.0, %v7501_v42 }
 0x3ed   : > { %v2467_v7 = vadd.f32 %v2435_v12, %v2083_v31 }
 0x3ee   : > { %v2780_v33 = vpop.permute.xlu0 %2779 }
 0x3ef   : > { %v2819_v37 = vmul.f32 %v3876_v52, %v2780_v33  ;;  %v2776_v38 = vpop.permute.xlu1 %2775 }
 0x3f0   : > { %v2818_v17 = vmul.f32 %v3875_v4, %v2776_v38 }
 0x3f1   : > { %v2851_v32 = vadd.f32 %v2819_v37, %v2467_v7 }
 0x3f2   : > { %v2850_v11 = vadd.f32 %v2818_v17, %v2466_v57  ;;  %v2562_v9 = vpop.permute.xlu0 %2561 }
 0x3f3   : > { %vm2596_vm11 = vcmp.eq.s32.totalorder %v5064_v34, %v2562_v9 }
 0x3f4   : > { %v2400_v50 = vpop.permute.xlu1 %2399  ;;  %4018 = vmatprep.mubr.msk.f32.mxu1 %vm2864_vm9, %v2850_v11  ;;  %v3877_v15 = vsel %vm2596_vm11, 1.0, %v7501_v42 }
 0x3f5   : > { %4019 = vmatmul.mubr.msk.f32.gmra.mrb[76].mxu1 %vm2864_vm9, %v2851_v32  ;;  %v2436_v56 = vmul.f32 %v3845_v25, %v2400_v50 }
 0x3f6   : > { %v2565_v60 = vpop.permute.xlu0 %2564 }
 0x3f7   : > { %vm2597_vm10 = vcmp.eq.s32.totalorder %v5064_v34, %v2565_v60  ;;  %v2468_v16 = vadd.f32 %v2436_v56, %v2084_v0 }
 0x3f8   : > { %v2404_v13 = vpop.permute.xlu1 %2403  ;;  %v3878_v63 = vsel %vm2597_vm10, 1.0, %v7501_v42 }
 0x3f9   : > { %v2437_v14 = vmul.f32 %v3846_v49, %v2404_v13 }
 0x3fa   : > { %v2788_v21 = vpop.permute.xlu0 %2787 }
 0x3fb   : > { %v2469_v23 = vadd.f32 %v2437_v14, %v2085_v6  ;;  %v2821_v30 = vmul.f32 %v3878_v63, %v2788_v21 }
 0x3fd   : > { %v2784_v61 = vpop.permute.xlu1 %2783  ;;  %v2853_v46 = vadd.f32 %v2821_v30, %v2469_v23 }
 0x3fe   : > { %v2820_v29 = vmul.f32 %v3877_v15, %v2784_v61  ;;  %v3257_v34 = vpop.permute.xlu0 %3256 }
 0x400   : > { %v2852_v26 = vadd.f32 %v2820_v29, %v2468_v16 }
 0x401   : > { %v3255_v3 = vpop.permute.xlu1 %3254 }
 0x402   : > { %4021 = vmatprep.mubr.msk.f32.mxu1 %vm2864_vm9, %v2852_v26  ;;  %v3261_v58 = vpop.permute.xlu0 %3260 }
 0x403   : > { %4022 = vmatmul.mubr.msk.f32.gmra.mrb[78].mxu1 %vm2864_vm9, %v2853_v46 }
 0x405   : > { %v3259_v47 = vpop.permute.xlu1 %3258 }
 0x406   : > { %v3265_v28 = vpop.permute.xlu0 %3264 }
 0x409   : > { %v3263_v12 = vpop.permute.xlu1 %3262 }
 0x40a   : > { %v3269_v37 = vpop.permute.xlu0 %3268 }
 0x40d   : > { %v3267_v38 = vpop.permute.xlu1 %3266 }
 0x40e   : > { %v3273_v4 = vpop.permute.xlu0 %3272 }
 0x411   : > { %v3271_v57 = vpop.permute.xlu1 %3270 }
 0x412   : > { %v3277_v17 = vpop.permute.xlu0 %3276 }
 0x415   : > { %v3275_v7 = vpop.permute.xlu1 %3274 }
 0x416   : > { %v3281_v24 = vpop.permute.xlu0 %3280 }
 0x419   : > { %v3279_v59 = vpop.permute.xlu1 %3278 }
 0x41a   : > { %v3285_v19 = vpop.permute.xlu0 %3284 }
 0x41d   : > { %v3283_v60 = vpop.permute.xlu1 %3282 }
 0x41e   : > { %v3289_v40 = vpop.permute.xlu0 %3288 }
 0x421   : > { %v3287_v45 = vpop.permute.xlu1 %3286 }
 0x422   : > { %v3293_v14 = vpop.permute.xlu0 %3292 }
 0x425   : > { %v3291_v21 = vpop.permute.xlu1 %3290 }
 0x426   : > { %v3297_v15 = vpop.permute.xlu0 %3296 }
 0x429   : > { %v3295_v29 = vpop.permute.xlu1 %3294 }
 0x44c   : > { %v3978_v42 = vpop.f32.mrb[48].mxu1 }
 0x44d   : > { %v3352_v8 = vsel %vm3350_vm12, %v3978_v42, %v3257_v34  ;;  %v3031_v51 = vpop.f32.mrb[49].mxu1 }
 0x44e   : > { %3385 = vst.msk [vmem:[%s7075_s17 + $0x8] sm:$0xff] %vm3383_vm13, %v3352_v8  ;;  %v3351_v27 = vsel %vm3350_vm12, %v3031_v51, %v3255_v3  ;;  %v3301_v3 = vpop.permute.xlu0 %3300  ;;  %v3299_v51 = vpop.permute.xlu1 %3298 }
 0x44f   : > { %3384 = vst.msk [vmem:[%s7075_s17] sm:$0xff] %vm3383_vm13, %v3351_v27 }
 0x460   : > { %v3981_v53 = vpop.f32.mrb[50].mxu1 }
 0x461   : > { %v3354_v18 = vsel %vm3350_vm12, %v3981_v53, %v3261_v58  ;;  %v3041_v22 = vpop.f32.mrb[51].mxu1 }
 0x462   : > { %3387 = vst.msk [vmem:[%s7075_s17 + $0x18] sm:$0xff] %vm3383_vm13, %v3354_v18  ;;  %v3353_v55 = vsel %vm3350_vm12, %v3041_v22, %v3259_v47  ;;  %v3305_v47 = vpop.permute.xlu0 %3304  ;;  %v3303_v22 = vpop.permute.xlu1 %3302 }
 0x463   : > { %3386 = vst.msk [vmem:[%s7075_s17 + $0x10] sm:$0xff] %vm3383_vm13, %v3353_v55 }
 0x474   : > { %v3984_v2 = vpop.f32.mrb[52].mxu1 }
 0x475   : > { %v3356_v52 = vsel %vm3350_vm12, %v3984_v2, %v3265_v28  ;;  %v3051_v33 = vpop.f32.mrb[53].mxu1  ;;  %v3309_v2 = vpop.permute.xlu0 %3308 }
 0x476   : > { %3389 = vst.msk [vmem:[%s7075_s17 + $0x28] sm:$0xff] %vm3383_vm13, %v3356_v52  ;;  %v3355_v31 = vsel %vm3350_vm12, %v3051_v33, %v3263_v12  ;;  %v3307_v33 = vpop.permute.xlu1 %3306 }
 0x477   : > { %3388 = vst.msk [vmem:[%s7075_s17 + $0x20] sm:$0xff] %vm3383_vm13, %v3355_v31 }
 0x488   : > { %v3987_v11 = vpop.f32.mrb[54].mxu1 }
 0x489   : > { %v3358_v9 = vsel %vm3350_vm12, %v3987_v11, %v3269_v37  ;;  %v3061_v62 = vpop.f32.mrb[55].mxu1 }
 0x48a   : > { %3391 = vst.msk [vmem:[%s7075_s17 + $0x38] sm:$0xff] %vm3383_vm13, %v3358_v9  ;;  %v3357_v32 = vsel %vm3350_vm12, %v3061_v62, %v3267_v38 }
 0x48b   : > { %3390 = vst.msk [vmem:[%s7075_s17 + $0x30] sm:$0xff] %vm3383_vm13, %v3357_v32 }
 0x48c   : > { %v3990_v44 = vpop.f32.mrb[56].mxu1 }
 0x48d   : > { %v3360_v50 = vsel %vm3350_vm12, %v3990_v44, %v3273_v4  ;;  %v3071_v10 = vpop.f32.mrb[57].mxu1  ;;  %v3313_v4 = vpop.permute.xlu0 %3312 }
 0x48e   : > { %3393 = vst.msk [vmem:[%s7075_s17 + $0x48] sm:$0xff] %vm3383_vm13, %v3360_v50  ;;  %v3359_v20 = vsel %vm3350_vm12, %v3071_v10, %v3271_v57 }
 0x48f   : > { %3392 = vst.msk [vmem:[%s7075_s17 + $0x40] sm:$0xff] %vm3383_vm13, %v3359_v20 }
 0x490   : > { %v3993_v1 = vpop.f32.mrb[58].mxu1 }
 0x491   : > { %v3362_v39 = vsel %vm3350_vm12, %v3993_v1, %v3277_v17  ;;  %v3081_v43 = vpop.f32.mrb[59].mxu1  ;;  %v3311_v17 = vpop.permute.xlu1 %3310 }
 0x492   : > { %3395 = vst.msk [vmem:[%s7075_s17 + $0x58] sm:$0xff] %vm3383_vm13, %v3362_v39  ;;  %v3361_v41 = vsel %vm3350_vm12, %v3081_v43, %v3275_v7  ;;  %v3317_v62 = vpop.permute.xlu0 %3316 }
 0x493   : > { %3394 = vst.msk [vmem:[%s7075_s17 + $0x50] sm:$0xff] %vm3383_vm13, %v3361_v41 }
 0x494   : > { %v3996_v36 = vpop.f32.mrb[60].mxu1 }
 0x495   : > { %v3364_v48 = vsel %vm3350_vm12, %v3996_v36, %v3281_v24  ;;  %v3091_v35 = vpop.f32.mrb[61].mxu1  ;;  %v3315_v32 = vpop.permute.xlu1 %3314 }
 0x496   : > { %3397 = vst.msk [vmem:[%s7075_s17 + $0x68] sm:$0xff] %vm3383_vm13, %v3364_v48  ;;  %v3363_v5 = vsel %vm3350_vm12, %v3091_v35, %v3279_v59 }
 0x497   : > { %3396 = vst.msk [vmem:[%s7075_s17 + $0x60] sm:$0xff] %vm3383_vm13, %v3363_v5 }
 0x498   : > { %v3999_v54 = vpop.f32.mrb[62].mxu1 }
 0x499   : > { %v3366_v49 = vsel %vm3350_vm12, %v3999_v54, %v3285_v19  ;;  %v3101_v13 = vpop.f32.mrb[63].mxu1 }
 0x49a   : > { %3399 = vst.msk [vmem:[%s7075_s17 + $0x78] sm:$0xff] %vm3383_vm13, %v3366_v49  ;;  %v3365_v25 = vsel %vm3350_vm12, %v3101_v13, %v3283_v60 }
 0x49b   : > { %3398 = vst.msk [vmem:[%s7075_s17 + $0x70] sm:$0xff] %vm3383_vm13, %v3365_v25 }
 0x49c   : > { %v4002_v56 = vpop.f32.mrb[64].mxu1 }
 0x49d   : > { %v3368_v6 = vsel %vm3350_vm12, %v4002_v56, %v3289_v40  ;;  %v3111_v0 = vpop.f32.mrb[65].mxu1 }
 0x49e   : > { %3401 = vst.msk [vmem:[%s7075_s17 + $0x88] sm:$0xff] %vm3383_vm13, %v3368_v6  ;;  %v3367_v63 = vsel %vm3350_vm12, %v3111_v0, %v3287_v45 }
 0x49f   : > { %3400 = vst.msk [vmem:[%s7075_s17 + $0x80] sm:$0xff] %vm3383_vm13, %v3367_v63 }
 0x4a0   : > { %v4005_v23 = vpop.f32.mrb[66].mxu1 }
 0x4a1   : > { %v3370_v30 = vsel %vm3350_vm12, %v4005_v23, %v3293_v14  ;;  %v3121_v61 = vpop.f32.mrb[67].mxu1 }
 0x4a2   : > { %3403 = vst.msk [vmem:[%s7075_s17 + $0x98] sm:$0xff] %vm3383_vm13, %v3370_v30  ;;  %v3369_v16 = vsel %vm3350_vm12, %v3121_v61, %v3291_v21 }
 0x4a3   : > { %3402 = vst.msk [vmem:[%s7075_s17 + $0x90] sm:$0xff] %vm3383_vm13, %v3369_v16 }
 0x4a4   : > { %v4008_v26 = vpop.f32.mrb[68].mxu1 }
 0x4a5   : > { %v3372_v46 = vsel %vm3350_vm12, %v4008_v26, %v3297_v15  ;;  %v3131_v34 = vpop.f32.mrb[69].mxu1 }
 0x4a6   : > { %3405 = vst.msk [vmem:[%s7075_s17 + $0xa8] sm:$0xff] %vm3383_vm13, %v3372_v46  ;;  %v3371_v42 = vsel %vm3350_vm12, %v3131_v34, %v3295_v29 }
 0x4a7   : > { %3404 = vst.msk [vmem:[%s7075_s17 + $0xa0] sm:$0xff] %vm3383_vm13, %v3371_v42 }
 0x4a8   : > { %v4011_v8 = vpop.f32.mrb[70].mxu1 }
 0x4a9   : > { %v3374_v27 = vsel %vm3350_vm12, %v4011_v8, %v3301_v3  ;;  %v3141_v58 = vpop.f32.mrb[71].mxu1 }
 0x4aa   : > { %3407 = vst.msk [vmem:[%s7075_s17 + $0xb8] sm:$0xff] %vm3383_vm13, %v3374_v27  ;;  %v3373_v53 = vsel %vm3350_vm12, %v3141_v58, %v3299_v51 }
 0x4ab   : > { %3406 = vst.msk [vmem:[%s7075_s17 + $0xb0] sm:$0xff] %vm3383_vm13, %v3373_v53 }
 0x4ae   : > { %v4014_v18 = vpop.f32.mrb[72].mxu1 }
 0x4af   : > { %v3376_v55 = vsel %vm3350_vm12, %v4014_v18, %v3305_v47  ;;  %v3151_v28 = vpop.f32.mrb[73].mxu1 }
 0x4b0   : > { %3409 = vst.msk [vmem:[%s7075_s17 + $0xc8] sm:$0xff] %vm3383_vm13, %v3376_v55  ;;  %v3375_v12 = vsel %vm3350_vm12, %v3151_v28, %v3303_v22 }
 0x4b1   : > { %3408 = vst.msk [vmem:[%s7075_s17 + $0xc0] sm:$0xff] %vm3383_vm13, %v3375_v12 }
 0x4ba   : > { %v4017_v52 = vpop.f32.mrb[74].mxu1 }
 0x4bb   : > { %v3378_v31 = vsel %vm3350_vm12, %v4017_v52, %v3309_v2  ;;  %v3161_v37 = vpop.f32.mrb[75].mxu1 }
 0x4bc   : > { %3411 = vst.msk [vmem:[%s7075_s17 + $0xd8] sm:$0xff] %vm3383_vm13, %v3378_v31  ;;  %v3377_v38 = vsel %vm3350_vm12, %v3161_v37, %v3307_v33 }
 0x4bd   : > { %3410 = vst.msk [vmem:[%s7075_s17 + $0xd0] sm:$0xff] %vm3383_vm13, %v3377_v38 }
 0x4c8   : > { %v4020_v57 = vpop.f32.mrb[76].mxu1 }
 0x4c9   : > { %v3380_v7 = vsel %vm3350_vm12, %v4020_v57, %v3313_v4  ;;  %v3171_v11 = vpop.f32.mrb[77].mxu1 }
 0x4ca   : > { %3413 = vst.msk [vmem:[%s7075_s17 + $0xe8] sm:$0xff] %vm3383_vm13, %v3380_v7  ;;  %v3379_v9 = vsel %vm3350_vm12, %v3171_v11, %v3311_v17 }
 0x4cb   : > { %3412 = vst.msk [vmem:[%s7075_s17 + $0xe0] sm:$0xff] %vm3383_vm13, %v3379_v9 }
 0x4d6   : > { %v4023_v24 = vpop.f32.mrb[78].mxu1 }
 0x4d7   : > { %v3382_v59 = vsel %vm3350_vm12, %v4023_v24, %v3317_v62  ;;  %v3181_v44 = vpop.f32.mrb[79].mxu1 }
 0x4d8   : > { %3415 = vst.msk [vmem:[%s7075_s17 + $0xf8] sm:$0xff] %vm3383_vm13, %v3382_v59  ;;  %v3381_v50 = vsel %vm3350_vm12, %v3181_v44, %v3315_v32 }
 0x4d9   : > { %3414 = vst.msk [vmem:[%s7075_s17 + $0xf0] sm:$0xff] %vm3383_vm13, %v3381_v50 }
 0x4da PF: > { %s14_s15 = sadd.s32 1, %s4372_s15  }
 0x4db   : > { %p11_p4 = scmp.ge.s32.totalorder %s14_s15, 4  }
 0x4dd   :  { %13 = sbr.rel (!%p11_p4) target bundleno = 1 (0x1), region = 69 }

</bundles_post_ra>
